<compile_context>
chip_gen: v5e
topology: v5e:2x2
jax: 0.10.0
libtpu: 0.0.40
codegen_flags: <defaults>
</compile_context>

<pallas_src>
import functools

import numpy as np

import jax
import jax.numpy as jnp
from jax import lax
from jax.experimental import pallas as pl
from jax.experimental.pallas import tpu as pltpu


_SUB = 8  # anchors per inner sub-tile (static unroll width; bounds vreg live ranges)


def _round_up(x, m):
    return ((x + m - 1) // m) * m


def _build_distances(x_ref, dist_sc, *, angular, squared, eps, bf16_mxu):
    """L2-normalize, one MXU Gram matmul, write the pairwise-distance matrix."""
    x = x_ref[...].astype(jnp.float32)                          # (Bp, Dp)
    # F.normalize(p=2, eps): x / max(||x||_2, eps)  (zero rows stay zero)
    nrm = jnp.sqrt(jnp.sum(x * x, axis=-1, keepdims=True))
    xn = x / jnp.maximum(nrm, eps)
    xd = xn.astype(jnp.bfloat16) if bf16_mxu else xn
    g = lax.dot_general(xd, xd, (((1,), (1,)), ((), ())),
                        preferred_element_type=jnp.float32)     # (Bp, Bp)
    if angular:
        dist = jnp.maximum(1.0 - g, 0.0)
    else:
        # Gram diagonal == ||xn_i||^2 : one VPU pass + one skinny transpose
        # (replaces the two iota-masked (B,B) reductions of the old kernel).
        dsq = jnp.sum(xn * xn, axis=-1, keepdims=True)          # (Bp, 1)
        dist = jnp.maximum(dsq + jnp.transpose(dsq) - 2.0 * g, 0.0)
        if not squared:
            zmask = (dist == 0.0).astype(jnp.float32)
            dist = jnp.sqrt(dist + zmask * eps) * (1.0 - zmask)
    dist_sc[...] = dist


def _hard_triplet_kernel(lab_ref, x_ref, labc_ref, labr_ref, *refs,
                         n_true, tile_a, margin, hardest, angular, squared,
                         eps, bf16_mxu):
    if hardest:
        (sum_ref,) = refs[:1]
        cnt_ref = None
        (dist_sc,) = refs[1:]
    else:
        sum_ref, cnt_ref = refs[:2]
        (dist_sc,) = refs[2:]

    i = pl.program_id(0)
    b_pad = dist_sc.shape[0]

    # ---- step 0: init outputs + build the full pairwise-distance matrix.
    @pl.when(i == 0)
    def _():
        sum_ref[...] = jnp.zeros_like(sum_ref)
        if not hardest:
            cnt_ref[...] = jnp.zeros_like(cnt_ref)
        _build_distances(x_ref, dist_sc, angular=angular, squared=squared,
                         eps=eps, bf16_mxu=bf16_mxu)

    # ---- every step: one tile of tile_a anchors (only real anchors are gridded).
    a0 = pl.multiple_of(i * tile_a, tile_a)
    lab_row = labr_ref[...]                                     # (1, Bp) int32
    n_idx = lax.broadcasted_iota(jnp.int32, (1, b_pad), 1)
    valid_n = n_idx < n_true                                    # real columns

    if hardest:
        dt = dist_sc[pl.ds(a0, tile_a), :]                      # (TA, Bp)
        lab_a = labc_ref[pl.ds(a0, tile_a), :]                  # (TA, 1)
        a_idx = lax.broadcasted_iota(jnp.int32, (tile_a, 1), 0) + a0
        valid_a = a_idx < n_true                                # real anchors
        lab_eq = lab_a == lab_row                               # (TA, Bp)
        # Hardest positive: max over valid positives (masked -> 0; dist >= 0).
        pos_mask = lab_eq & (a_idx != n_idx) & valid_n
        hp = jnp.max(jnp.where(pos_mask, dt, 0.0), axis=-1, keepdims=True)
        # Hardest negative: min over (dist + rowmax * (1 - neg_mask)).
        row_max = jnp.max(jnp.where(valid_n, dt, -1e30), axis=-1, keepdims=True)
        neg_f = jnp.logical_not(lab_eq).astype(jnp.float32)
        anchor_neg = jnp.where(valid_n, dt + row_max * (1.0 - neg_f), 1e30)
        hn = jnp.min(anchor_neg, axis=-1, keepdims=True)
        # NOTE: the reference module hard-codes a 0.1 margin on this branch.
        tl = jnp.where(valid_a, jnp.maximum(hp - hn + 0.1, 0.0), 0.0)
        sum_ref[...] += jnp.sum(tl)                             # /b in the wrapper
    else:
        lab_col = labc_ref[...]                                 # (Bp, 1)
        p_idx = lax.broadcasted_iota(jnp.int32, (b_pad, 1), 0)
        valid_p = p_idx < n_true

        def sub_tile(t, carry):
            ps, pc = carry
            s0 = pl.multiple_of(a0 + t * _SUB, _SUB)
            dt = dist_sc[pl.ds(s0, _SUB), :]                    # (8, Bp)  d[a, n]
            dpT = jnp.transpose(dt)                             # (Bp, 8)  d[a, p] cols
            msum = jnp.zeros((b_pad, b_pad), jnp.float32)
            mcnt = jnp.zeros((b_pad, b_pad), jnp.float32)
            for j in range(_SUB):                               # static: static slices
                a = s0 + j
                la = lab_ref[a]                                 # scalar SMEM read
                dp_col = dpT[:, j:j + 1]                        # (Bp, 1)
                dn_row = dt[j:j + 1, :]                         # (1, Bp)
                pos = (lab_col == la) & (p_idx != a) & valid_p  # (Bp, 1)
                neg = (lab_row != la) & valid_n                 # (1, Bp)
                m = (pos & neg) & (a < n_true)                  # (Bp, Bp)
                t2 = jnp.where(m, jnp.maximum(dp_col - dn_row + margin, 0.0), 0.0)
                msum = msum + t2
                mcnt = mcnt + (t2 > 1e-16).astype(jnp.float32)
            # Two reductions per 8 anchors instead of two per anchor.
            return ps + jnp.sum(msum), pc + jnp.sum(mcnt)

        ps, pc = lax.fori_loop(0, tile_a // _SUB, sub_tile,
                               (jnp.zeros((), jnp.float32),
                                jnp.zeros((), jnp.float32)))
        sum_ref[...] += ps
        cnt_ref[...] += pc


def hard_triplet_loss(embeddings, labels, *, margin=0.1, hardest=False,
                      angular=True, squared=False, eps=1e-16, tile_a=None):
    """Pallas TPU implementation of HardTripletLoss.forward.

    embeddings: (B, D) (or (B, ...) -> flattened from dim 1), any float dtype.
    labels:     (B,) integer class labels.
    Note: `margin` is ignored when hardest=True (the reference hard-codes 0.1).
    """
    x = embeddings.reshape(embeddings.shape[0], -1)      # flatten(start_dim=1)
    b, d = x.shape
    lab = labels.reshape(-1).astype(jnp.int32)

    if tile_a is None:
        cap = 128 if hardest else 32
        tile_a = _SUB
        while tile_a < cap and tile_a < b:
            tile_a *= 2
    assert tile_a % _SUB == 0 and 128 % tile_a == 0, "tile_a must be 8/16/32/64/128"

    b_pad = _round_up(b, 128)          # lane-dense negatives / dist columns
    d_pad = _round_up(d, 128)          # lane-dense feature loads (zero-pad is exact)
    x = jnp.pad(x, ((0, b_pad - b), (0, d_pad - d)))
    lab_p = jnp.pad(lab, (0, b_pad - b))   # padded labels are never read unmasked
    lab_col = lab_p.reshape(b_pad, 1)
    lab_row = lab_p.reshape(1, b_pad)

    n_steps = -(-b // tile_a)          # grid over REAL anchors only
    bf16_mxu = (x.dtype == jnp.bfloat16)

    kernel = functools.partial(
        _hard_triplet_kernel, n_true=b, tile_a=tile_a, margin=float(margin),
        hardest=bool(hardest), angular=bool(angular), squared=bool(squared),
        eps=float(eps), bf16_mxu=bf16_mxu)

    if hardest:
        out_shape = jax.ShapeDtypeStruct((1, 1), jnp.float32)
        out_specs = pl.BlockSpec((1, 1), lambda i, lab: (0, 0))
    else:
        out_shape = (jax.ShapeDtypeStruct((1, 1), jnp.float32),
                     jax.ShapeDtypeStruct((1, 1), jnp.float32))
        out_specs = (pl.BlockSpec((1, 1), lambda i, lab: (0, 0)),
                     pl.BlockSpec((1, 1), lambda i, lab: (0, 0)))

    # Raise the scoped VMEM limit only when the resident dist matrix needs it.
    vmem_need = 4 * (2 * b_pad * d_pad + b_pad * b_pad) + (2 << 20)
    cp = {"dimension_semantics": ("arbitrary",)}      # sequential reduction grid
    if vmem_need > 16 * 2**20:
        cp["vmem_limit_bytes"] = int(min(vmem_need, 96 * 2**20))

    out = pl.pallas_call(
        kernel,
        out_shape=out_shape,
        grid_spec=pltpu.PrefetchScalarGridSpec(
            num_scalar_prefetch=1,                    # labels -> SMEM scalar table
            grid=(n_steps,),
            in_specs=[
                pl.BlockSpec((b_pad, d_pad), lambda i, lab: (0, 0)),  # embeddings
                pl.BlockSpec((b_pad, 1), lambda i, lab: (0, 0)),      # labels, column
                pl.BlockSpec((1, b_pad), lambda i, lab: (0, 0)),      # labels, row
            ],
            out_specs=out_specs,
            scratch_shapes=[pltpu.VMEM((b_pad, b_pad), jnp.float32)],  # pairwise dists
        ),
        compiler_params=pltpu.CompilerParams(**cp),
    )(lab_p, x, lab_col, lab_row)

    if hardest:
        return out[0, 0] / b                         # torch.mean over all b anchors
    s, c = out
    return s[0, 0] / (c[0, 0] + 1e-16)               # sum(loss) / (num_hard + 1e-16)


def _reference_hard_triplet_loss(embeddings, labels, margin=0.1, hardest=False,
                                 angular=True, squared=False, eps=1e-16):
    """NumPy float64 reference mirroring the PyTorch module."""
    x = np.asarray(embeddings, np.float64).reshape(embeddings.shape[0], -1)
    nrm = np.linalg.norm(x, axis=1, keepdims=True)
    xn = x / np.maximum(nrm, eps)
    cor = xn @ xn.T
    if angular:
        dist = np.maximum(1.0 - cor, 0.0)
    else:
        diag = np.diag(cor)
        dist = np.maximum(diag[:, None] - 2.0 * cor + diag[None, :], 0.0)
        if not squared:
            zmask = (dist == 0.0).astype(np.float64)
            dist = np.sqrt(dist + zmask * eps) * (1.0 - zmask)
    lab = np.asarray(labels).reshape(-1)
    b = lab.shape[0]
    eq = lab[None, :] == lab[:, None]
    eye = np.eye(b, dtype=bool)
    if hardest:
        mask_ap = ((~eye) & eq).astype(np.float64)
        hp = np.max(dist * mask_ap, axis=1, keepdims=True)
        mask_an = (~eq).astype(np.float64)
        max_neg = np.max(dist, axis=1, keepdims=True)
        anchor_neg = dist + max_neg * (1.0 - mask_an)
        hn = np.min(anchor_neg, axis=1, keepdims=True)
        tl = np.maximum(hp - hn + 0.1, 0.0)
        return float(np.mean(tl))
    loss = dist[:, :, None] - dist[:, None, :] + margin
    distinct = (~eye)[:, :, None] & (~eye)[:, None, :] & (~eye)[None, :, :]
    valid = eq[:, :, None] & (~eq)[:, None, :]
    mask = (distinct & valid).astype(np.float64)
    tl = np.maximum(loss * mask, 0.0)
    num_hard = np.sum(tl > 1e-16)
    return float(np.sum(tl) / (num_hard + 1e-16))


if __name__ == "__main__":
    key = jax.random.PRNGKey(0)
    kx, kl = jax.random.split(key)

    B, D, NUM_CLASSES = 12, 32, 3
    embeddings = jax.random.normal(kx, (B, D), dtype=jnp.float32)
    labels = jax.random.randint(kl, (B,), 0, NUM_CLASSES, dtype=jnp.int32)

    emb_np = np.asarray(embeddings)
    lab_np = np.asarray(labels)

    # Default module config: margin=0.1, hardest=False, angular=True, squared=False.
    out_all = jax.block_until_ready(
        hard_triplet_loss(embeddings, labels, margin=0.1, hardest=False, angular=True))
    ref_all = _reference_hard_triplet_loss(emb_np, lab_np, margin=0.1,
                                           hardest=False, angular=True)
    assert np.allclose(float(out_all), ref_all, rtol=1e-3, atol=1e-4), (float(out_all), ref_all)

    # Batch-hard branch.
    out_hard = jax.block_until_ready(
        hard_triplet_loss(embeddings, labels, margin=0.1, hardest=True, angular=True))
    ref_hard = _reference_hard_triplet_loss(emb_np, lab_np, margin=0.1,
                                            hardest=True, angular=True)
    assert np.allclose(float(out_hard), ref_hard, rtol=1e-3, atol=1e-4), (float(out_hard), ref_hard)

    # Euclidean (non-angular, non-squared) distance path.
    out_euc = jax.block_until_ready(
        hard_triplet_loss(embeddings, labels, margin=0.1, hardest=False,
                          angular=False, squared=False))
    ref_euc = _reference_hard_triplet_loss(emb_np, lab_np, margin=0.1,
                                           hardest=False, angular=False, squared=False)
    assert np.allclose(float(out_euc), ref_euc, rtol=1e-3, atol=1e-4), (float(out_euc), ref_euc)

    print("KERNEL_OK")
</pallas_src>

<mosaic_0001>
module attributes {stable_mosaic.version = 11 : i64} {
  func.func @_hard_triplet_kernel(%arg0: i32, %arg1: memref<128xi32, #tpu.memory_space<smem>>, %arg2: memref<128x128xf32, #tpu.memory_space<vmem>>, %arg3: memref<128x1xi32, #tpu.memory_space<vmem>>, %arg4: memref<1x128xi32, #tpu.memory_space<vmem>>, %arg5: memref<1x1xf32, #tpu.memory_space<vmem>>, %arg6: memref<1x1xf32, #tpu.memory_space<vmem>>, %arg7: memref<128x128xf32, #tpu.memory_space<vmem>>) attributes {dimension_semantics = [#tpu.dimension_semantics<arbitrary>], iteration_bounds = array<i64: 1>, scalar_prefetch = 1 : i64, scratch_operands = 1 : i64, tpu.core_type = #tpu.core_type<tc>, window_params = [{pipeline_mode = #tpu.pipeline_mode<synchronous>, transform_indices = @transform_0, window_bounds = array<i64: 128, 128>}, {pipeline_mode = #tpu.pipeline_mode<synchronous>, transform_indices = @transform_1, window_bounds = array<i64: 128, 1>}, {pipeline_mode = #tpu.pipeline_mode<synchronous>, transform_indices = @transform_2, window_bounds = array<i64: 1, 128>}, {pipeline_mode = #tpu.pipeline_mode<synchronous>, transform_indices = @transform_3, window_bounds = array<i64: 1, 1>}, {pipeline_mode = #tpu.pipeline_mode<synchronous>, transform_indices = @transform_4, window_bounds = array<i64: 1, 1>}]} {
    %c0_i32 = arith.constant 0 : i32
    %0 = arith.cmpi eq, %arg0, %c0_i32 : i32
    %1 = arith.extui %0 : i1 to i32
    %c0_i32_0 = arith.constant 0 : i32
    %2 = arith.cmpi ne, %1, %c0_i32_0 : i32
    scf.if %2 {
      %cst_16 = arith.constant 0.000000e+00 : f32
      %23 = vector.broadcast %cst_16 : f32 to vector<1x1xf32>
      %c0_17 = arith.constant 0 : index
      %c0_18 = arith.constant 0 : index
      %24 = vector.load %arg5[%c0_17, %c0_18] : memref<1x1xf32, #tpu.memory_space<vmem>>, vector<1x1xf32>
      tpu.vector_store %arg5[%c0_17, %c0_18], %23 {strides = array<i32>} : memref<1x1xf32, #tpu.memory_space<vmem>>, vector<1x1xf32>,
      %cst_19 = arith.constant 0.000000e+00 : f32
      %25 = vector.broadcast %cst_19 : f32 to vector<1x1xf32>
      %c0_20 = arith.constant 0 : index
      %c0_21 = arith.constant 0 : index
      %26 = vector.load %arg6[%c0_20, %c0_21] : memref<1x1xf32, #tpu.memory_space<vmem>>, vector<1x1xf32>
      tpu.vector_store %arg6[%c0_20, %c0_21], %25 {strides = array<i32>} : memref<1x1xf32, #tpu.memory_space<vmem>>, vector<1x1xf32>,
      %c0_22 = arith.constant 0 : index
      %c0_23 = arith.constant 0 : index
      %27 = vector.load %arg2[%c0_22, %c0_23] : memref<128x128xf32, #tpu.memory_space<vmem>>, vector<128x128xf32>
      %28 = arith.mulf %27, %27 : vector<128x128xf32>
      %cst_24 = arith.constant dense<0.000000e+00> : vector<128xf32>
      %29 = vector.multi_reduction <add>, %28, %cst_24 [1] : vector<128x128xf32> to vector<128xf32>
      %30 = vector.shape_cast %29 : vector<128xf32> to vector<128x1xf32>
      %31 = math.sqrt %30 : vector<128x1xf32>
      %cst_25 = arith.constant 1.000000e-16 : f32
      %32 = vector.broadcast %cst_25 : f32 to vector<128x1xf32>
      %33 = arith.maximumf %31, %32 : vector<128x1xf32>
      %34 = vector.broadcast %33 : vector<128x1xf32> to vector<128x128xf32>
      %35 = arith.divf %27, %34 : vector<128x128xf32>
      %cst_26 = arith.constant dense<0.000000e+00> : vector<128x128xf32>
      %36 = tpu.matmul %35, %35, %cst_26 {dimension_numbers = #tpu.dot_dimension_numbers<[1], [1], [0], [0], [0, 0, 1, 0], [], []>} : vector<128x128xf32>, vector<128x128xf32>, vector<128x128xf32> -> vector<128x128xf32>
      %cst_27 = arith.constant 1.000000e+00 : f32
      %37 = vector.broadcast %cst_27 : f32 to vector<128x128xf32>
      %38 = arith.subf %37, %36 : vector<128x128xf32>
      %cst_28 = arith.constant 0.000000e+00 : f32
      %39 = vector.broadcast %cst_28 : f32 to vector<128x128xf32>
      %40 = arith.maximumf %38, %39 : vector<128x128xf32>
      %c0_29 = arith.constant 0 : index
      %c0_30 = arith.constant 0 : index
      %41 = vector.load %arg7[%c0_29, %c0_30] : memref<128x128xf32, #tpu.memory_space<vmem>>, vector<128x128xf32>
      tpu.vector_store %arg7[%c0_29, %c0_30], %40 {strides = array<i32>} : memref<128x128xf32, #tpu.memory_space<vmem>>, vector<128x128xf32>,
    } else {
    }
    %c16_i32 = arith.constant 16 : i32
    %3 = arith.muli %arg0, %c16_i32 : i32
    %4 = tpu.assume_multiple %3, 16 : i32
    %c0 = arith.constant 0 : index
    %c0_1 = arith.constant 0 : index
    %5 = vector.load %arg4[%c0, %c0_1] : memref<1x128xi32, #tpu.memory_space<vmem>>, vector<1x128xi32>
    %6 = tpu.iota {dimensions = array<i32: 1>} : vector<1x128xi32>
    %c12_i32 = arith.constant 12 : i32
    %7 = vector.broadcast %c12_i32 : i32 to vector<1x128xi32>
    %8 = arith.cmpi slt, %6, %7 : vector<1x128xi32>
    %c0_2 = arith.constant 0 : index
    %c0_3 = arith.constant 0 : index
    %9 = vector.load %arg3[%c0_2, %c0_3] : memref<128x1xi32, #tpu.memory_space<vmem>>, vector<128x1xi32>
    %10 = tpu.iota {dimensions = array<i32: 0>} : vector<128x1xi32>
    %c12_i32_4 = arith.constant 12 : i32
    %11 = vector.broadcast %c12_i32_4 : i32 to vector<128x1xi32>
    %12 = arith.cmpi slt, %10, %11 : vector<128x1xi32>
    %cst = arith.constant 0.000000e+00 : f32
    %cst_5 = arith.constant 0.000000e+00 : f32
    %c0_i32_6 = arith.constant 0 : i32
    %c2_i32 = arith.constant 2 : i32
    %13 = arith.addi %c0_i32_6, %c2_i32 : i32
    %c1_i32 = arith.constant 1 : i32
    %14:2 = scf.for %arg8 = %c0_i32_6 to %13 step %c1_i32 iter_args(%arg9 = %cst, %arg10 = %cst_5) -> (f32, f32)  : i32 {
      %c8_i32 = arith.constant 8 : i32
      %23 = arith.muli %arg8, %c8_i32 : i32
      %24 = arith.addi %4, %23 : i32
      %25 = tpu.assume_multiple %24, 8 : i32
      %26 = arith.index_cast %25 : i32 to index
      %c0_16 = arith.constant 0 : index
      %27 = vector.load %arg7[%26, %c0_16] : memref<128x128xf32, #tpu.memory_space<vmem>>, vector<8x128xf32>
      %28 = tpu.transpose %27, [1, 0] : vector<8x128xf32> -> vector<128x8xf32>
      %cst_17 = arith.constant 0.000000e+00 : f32
      %29 = vector.broadcast %cst_17 : f32 to vector<128x128xf32>
      %cst_18 = arith.constant 0.000000e+00 : f32
      %30 = vector.broadcast %cst_18 : f32 to vector<128x128xf32>
      %c0_i32_19 = arith.constant 0 : i32
      %31 = arith.addi %25, %c0_i32_19 : i32
      %32 = arith.index_cast %31 : i32 to index
      %33 = memref.load %arg1[%32] : memref<128xi32, #tpu.memory_space<smem>>
      %34 = vector.extract_strided_slice %28 {offsets = [0, 0], sizes = [128, 1], strides = [1, 1]} : vector<128x8xf32> to vector<128x1xf32>
      %35 = vector.extract_strided_slice %27 {offsets = [0, 0], sizes = [1, 128], strides = [1, 1]} : vector<8x128xf32> to vector<1x128xf32>
      %36 = vector.broadcast %33 : i32 to vector<128x1xi32>
      %37 = arith.cmpi eq, %9, %36 : vector<128x1xi32>
      %38 = vector.broadcast %31 : i32 to vector<128x1xi32>
      %39 = arith.cmpi ne, %10, %38 : vector<128x1xi32>
      %40 = arith.andi %37, %39 : vector<128x1xi1>
      %41 = arith.andi %40, %12 : vector<128x1xi1>
      %42 = vector.broadcast %33 : i32 to vector<1x128xi32>
      %43 = arith.cmpi ne, %5, %42 : vector<1x128xi32>
      %44 = arith.andi %43, %8 : vector<1x128xi1>
      %45 = vector.broadcast %41 : vector<128x1xi1> to vector<128x128xi1>
      %46 = vector.broadcast %44 : vector<1x128xi1> to vector<128x128xi1>
      %47 = arith.andi %45, %46 : vector<128x128xi1>
      %c12_i32_20 = arith.constant 12 : i32
      %48 = arith.cmpi slt, %31, %c12_i32_20 : i32
      %49 = vector.broadcast %48 : i1 to vector<128x128xi1>
      %50 = arith.andi %47, %49 : vector<128x128xi1>
      %51 = vector.broadcast %34 : vector<128x1xf32> to vector<128x128xf32>
      %52 = vector.broadcast %35 : vector<1x128xf32> to vector<128x128xf32>
      %53 = arith.subf %51, %52 : vector<128x128xf32>
      %cst_21 = arith.constant 1.000000e-01 : f32
      %54 = vector.broadcast %cst_21 : f32 to vector<128x128xf32>
      %55 = arith.addf %53, %54 : vector<128x128xf32>
      %cst_22 = arith.constant 0.000000e+00 : f32
      %56 = vector.broadcast %cst_22 : f32 to vector<128x128xf32>
      %57 = arith.maximumf %55, %56 : vector<128x128xf32>
      %cst_23 = arith.constant 0.000000e+00 : f32
      %58 = vector.broadcast %cst_23 : f32 to vector<128x128xf32>
      %59 = arith.select %50, %57, %58 : vector<128x128xi1>, vector<128x128xf32>
      %60 = arith.addf %29, %59 : vector<128x128xf32>
      %cst_24 = arith.constant 1.000000e-16 : f32
      %61 = vector.broadcast %cst_24 : f32 to vector<128x128xf32>
      %62 = arith.cmpf ogt, %59, %61 : vector<128x128xf32>
      %63 = arith.extui %62 : vector<128x128xi1> to vector<128x128xi32>
      %64 = arith.sitofp %63 : vector<128x128xi32> to vector<128x128xf32>
      %65 = arith.addf %30, %64 : vector<128x128xf32>
      %c1_i32_25 = arith.constant 1 : i32
      %66 = arith.addi %25, %c1_i32_25 : i32
      %67 = arith.index_cast %66 : i32 to index
      %68 = memref.load %arg1[%67] : memref<128xi32, #tpu.memory_space<smem>>
      %69 = vector.extract_strided_slice %28 {offsets = [0, 1], sizes = [128, 1], strides = [1, 1]} : vector<128x8xf32> to vector<128x1xf32>
      %70 = vector.extract_strided_slice %27 {offsets = [1, 0], sizes = [1, 128], strides = [1, 1]} : vector<8x128xf32> to vector<1x128xf32>
      %71 = vector.broadcast %68 : i32 to vector<128x1xi32>
      %72 = arith.cmpi eq, %9, %71 : vector<128x1xi32>
      %73 = vector.broadcast %66 : i32 to vector<128x1xi32>
      %74 = arith.cmpi ne, %10, %73 : vector<128x1xi32>
      %75 = arith.andi %72, %74 : vector<128x1xi1>
      %76 = arith.andi %75, %12 : vector<128x1xi1>
      %77 = vector.broadcast %68 : i32 to vector<1x128xi32>
      %78 = arith.cmpi ne, %5, %77 : vector<1x128xi32>
      %79 = arith.andi %78, %8 : vector<1x128xi1>
      %80 = vector.broadcast %76 : vector<128x1xi1> to vector<128x128xi1>
      %81 = vector.broadcast %79 : vector<1x128xi1> to vector<128x128xi1>
      %82 = arith.andi %80, %81 : vector<128x128xi1>
      %c12_i32_26 = arith.constant 12 : i32
      %83 = arith.cmpi slt, %66, %c12_i32_26 : i32
      %84 = vector.broadcast %83 : i1 to vector<128x128xi1>
      %85 = arith.andi %82, %84 : vector<128x128xi1>
      %86 = vector.broadcast %69 : vector<128x1xf32> to vector<128x128xf32>
      %87 = vector.broadcast %70 : vector<1x128xf32> to vector<128x128xf32>
      %88 = arith.subf %86, %87 : vector<128x128xf32>
      %cst_27 = arith.constant 1.000000e-01 : f32
      %89 = vector.broadcast %cst_27 : f32 to vector<128x128xf32>
      %90 = arith.addf %88, %89 : vector<128x128xf32>
      %cst_28 = arith.constant 0.000000e+00 : f32
      %91 = vector.broadcast %cst_28 : f32 to vector<128x128xf32>
      %92 = arith.maximumf %90, %91 : vector<128x128xf32>
      %cst_29 = arith.constant 0.000000e+00 : f32
      %93 = vector.broadcast %cst_29 : f32 to vector<128x128xf32>
      %94 = arith.select %85, %92, %93 : vector<128x128xi1>, vector<128x128xf32>
      %95 = arith.addf %60, %94 : vector<128x128xf32>
      %cst_30 = arith.constant 1.000000e-16 : f32
      %96 = vector.broadcast %cst_30 : f32 to vector<128x128xf32>
      %97 = arith.cmpf ogt, %94, %96 : vector<128x128xf32>
      %98 = arith.extui %97 : vector<128x128xi1> to vector<128x128xi32>
      %99 = arith.sitofp %98 : vector<128x128xi32> to vector<128x128xf32>
      %100 = arith.addf %65, %99 : vector<128x128xf32>
      %c2_i32_31 = arith.constant 2 : i32
      %101 = arith.addi %25, %c2_i32_31 : i32
      %102 = arith.index_cast %101 : i32 to index
      %103 = memref.load %arg1[%102] : memref<128xi32, #tpu.memory_space<smem>>
      %104 = vector.extract_strided_slice %28 {offsets = [0, 2], sizes = [128, 1], strides = [1, 1]} : vector<128x8xf32> to vector<128x1xf32>
      %105 = vector.extract_strided_slice %27 {offsets = [2, 0], sizes = [1, 128], strides = [1, 1]} : vector<8x128xf32> to vector<1x128xf32>
      %106 = vector.broadcast %103 : i32 to vector<128x1xi32>
      %107 = arith.cmpi eq, %9, %106 : vector<128x1xi32>
      %108 = vector.broadcast %101 : i32 to vector<128x1xi32>
      %109 = arith.cmpi ne, %10, %108 : vector<128x1xi32>
      %110 = arith.andi %107, %109 : vector<128x1xi1>
      %111 = arith.andi %110, %12 : vector<128x1xi1>
      %112 = vector.broadcast %103 : i32 to vector<1x128xi32>
      %113 = arith.cmpi ne, %5, %112 : vector<1x128xi32>
      %114 = arith.andi %113, %8 : vector<1x128xi1>
      %115 = vector.broadcast %111 : vector<128x1xi1> to vector<128x128xi1>
      %116 = vector.broadcast %114 : vector<1x128xi1> to vector<128x128xi1>
      %117 = arith.andi %115, %116 : vector<128x128xi1>
      %c12_i32_32 = arith.constant 12 : i32
      %118 = arith.cmpi slt, %101, %c12_i32_32 : i32
      %119 = vector.broadcast %118 : i1 to vector<128x128xi1>
      %120 = arith.andi %117, %119 : vector<128x128xi1>
      %121 = vector.broadcast %104 : vector<128x1xf32> to vector<128x128xf32>
      %122 = vector.broadcast %105 : vector<1x128xf32> to vector<128x128xf32>
      %123 = arith.subf %121, %122 : vector<128x128xf32>
      %cst_33 = arith.constant 1.000000e-01 : f32
      %124 = vector.broadcast %cst_33 : f32 to vector<128x128xf32>
      %125 = arith.addf %123, %124 : vector<128x128xf32>
      %cst_34 = arith.constant 0.000000e+00 : f32
      %126 = vector.broadcast %cst_34 : f32 to vector<128x128xf32>
      %127 = arith.maximumf %125, %126 : vector<128x128xf32>
      %cst_35 = arith.constant 0.000000e+00 : f32
      %128 = vector.broadcast %cst_35 : f32 to vector<128x128xf32>
      %129 = arith.select %120, %127, %128 : vector<128x128xi1>, vector<128x128xf32>
      %130 = arith.addf %95, %129 : vector<128x128xf32>
      %cst_36 = arith.constant 1.000000e-16 : f32
      %131 = vector.broadcast %cst_36 : f32 to vector<128x128xf32>
      %132 = arith.cmpf ogt, %129, %131 : vector<128x128xf32>
      %133 = arith.extui %132 : vector<128x128xi1> to vector<128x128xi32>
      %134 = arith.sitofp %133 : vector<128x128xi32> to vector<128x128xf32>
      %135 = arith.addf %100, %134 : vector<128x128xf32>
      %c3_i32 = arith.constant 3 : i32
      %136 = arith.addi %25, %c3_i32 : i32
      %137 = arith.index_cast %136 : i32 to index
      %138 = memref.load %arg1[%137] : memref<128xi32, #tpu.memory_space<smem>>
      %139 = vector.extract_strided_slice %28 {offsets = [0, 3], sizes = [128, 1], strides = [1, 1]} : vector<128x8xf32> to vector<128x1xf32>
      %140 = vector.extract_strided_slice %27 {offsets = [3, 0], sizes = [1, 128], strides = [1, 1]} : vector<8x128xf32> to vector<1x128xf32>
      %141 = vector.broadcast %138 : i32 to vector<128x1xi32>
      %142 = arith.cmpi eq, %9, %141 : vector<128x1xi32>
      %143 = vector.broadcast %136 : i32 to vector<128x1xi32>
      %144 = arith.cmpi ne, %10, %143 : vector<128x1xi32>
      %145 = arith.andi %142, %144 : vector<128x1xi1>
      %146 = arith.andi %145, %12 : vector<128x1xi1>
      %147 = vector.broadcast %138 : i32 to vector<1x128xi32>
      %148 = arith.cmpi ne, %5, %147 : vector<1x128xi32>
      %149 = arith.andi %148, %8 : vector<1x128xi1>
      %150 = vector.broadcast %146 : vector<128x1xi1> to vector<128x128xi1>
      %151 = vector.broadcast %149 : vector<1x128xi1> to vector<128x128xi1>
      %152 = arith.andi %150, %151 : vector<128x128xi1>
      %c12_i32_37 = arith.constant 12 : i32
      %153 = arith.cmpi slt, %136, %c12_i32_37 : i32
      %154 = vector.broadcast %153 : i1 to vector<128x128xi1>
      %155 = arith.andi %152, %154 : vector<128x128xi1>
      %156 = vector.broadcast %139 : vector<128x1xf32> to vector<128x128xf32>
      %157 = vector.broadcast %140 : vector<1x128xf32> to vector<128x128xf32>
      %158 = arith.subf %156, %157 : vector<128x128xf32>
      %cst_38 = arith.constant 1.000000e-01 : f32
      %159 = vector.broadcast %cst_38 : f32 to vector<128x128xf32>
      %160 = arith.addf %158, %159 : vector<128x128xf32>
      %cst_39 = arith.constant 0.000000e+00 : f32
      %161 = vector.broadcast %cst_39 : f32 to vector<128x128xf32>
      %162 = arith.maximumf %160, %161 : vector<128x128xf32>
      %cst_40 = arith.constant 0.000000e+00 : f32
      %163 = vector.broadcast %cst_40 : f32 to vector<128x128xf32>
      %164 = arith.select %155, %162, %163 : vector<128x128xi1>, vector<128x128xf32>
      %165 = arith.addf %130, %164 : vector<128x128xf32>
      %cst_41 = arith.constant 1.000000e-16 : f32
      %166 = vector.broadcast %cst_41 : f32 to vector<128x128xf32>
      %167 = arith.cmpf ogt, %164, %166 : vector<128x128xf32>
      %168 = arith.extui %167 : vector<128x128xi1> to vector<128x128xi32>
      %169 = arith.sitofp %168 : vector<128x128xi32> to vector<128x128xf32>
      %170 = arith.addf %135, %169 : vector<128x128xf32>
      %c4_i32 = arith.constant 4 : i32
      %171 = arith.addi %25, %c4_i32 : i32
      %172 = arith.index_cast %171 : i32 to index
      %173 = memref.load %arg1[%172] : memref<128xi32, #tpu.memory_space<smem>>
      %174 = vector.extract_strided_slice %28 {offsets = [0, 4], sizes = [128, 1], strides = [1, 1]} : vector<128x8xf32> to vector<128x1xf32>
      %175 = vector.extract_strided_slice %27 {offsets = [4, 0], sizes = [1, 128], strides = [1, 1]} : vector<8x128xf32> to vector<1x128xf32>
      %176 = vector.broadcast %173 : i32 to vector<128x1xi32>
      %177 = arith.cmpi eq, %9, %176 : vector<128x1xi32>
      %178 = vector.broadcast %171 : i32 to vector<128x1xi32>
      %179 = arith.cmpi ne, %10, %178 : vector<128x1xi32>
      %180 = arith.andi %177, %179 : vector<128x1xi1>
      %181 = arith.andi %180, %12 : vector<128x1xi1>
      %182 = vector.broadcast %173 : i32 to vector<1x128xi32>
      %183 = arith.cmpi ne, %5, %182 : vector<1x128xi32>
      %184 = arith.andi %183, %8 : vector<1x128xi1>
      %185 = vector.broadcast %181 : vector<128x1xi1> to vector<128x128xi1>
      %186 = vector.broadcast %184 : vector<1x128xi1> to vector<128x128xi1>
      %187 = arith.andi %185, %186 : vector<128x128xi1>
      %c12_i32_42 = arith.constant 12 : i32
      %188 = arith.cmpi slt, %171, %c12_i32_42 : i32
      %189 = vector.broadcast %188 : i1 to vector<128x128xi1>
      %190 = arith.andi %187, %189 : vector<128x128xi1>
      %191 = vector.broadcast %174 : vector<128x1xf32> to vector<128x128xf32>
      %192 = vector.broadcast %175 : vector<1x128xf32> to vector<128x128xf32>
      %193 = arith.subf %191, %192 : vector<128x128xf32>
      %cst_43 = arith.constant 1.000000e-01 : f32
      %194 = vector.broadcast %cst_43 : f32 to vector<128x128xf32>
      %195 = arith.addf %193, %194 : vector<128x128xf32>
      %cst_44 = arith.constant 0.000000e+00 : f32
      %196 = vector.broadcast %cst_44 : f32 to vector<128x128xf32>
      %197 = arith.maximumf %195, %196 : vector<128x128xf32>
      %cst_45 = arith.constant 0.000000e+00 : f32
      %198 = vector.broadcast %cst_45 : f32 to vector<128x128xf32>
      %199 = arith.select %190, %197, %198 : vector<128x128xi1>, vector<128x128xf32>
      %200 = arith.addf %165, %199 : vector<128x128xf32>
      %cst_46 = arith.constant 1.000000e-16 : f32
      %201 = vector.broadcast %cst_46 : f32 to vector<128x128xf32>
      %202 = arith.cmpf ogt, %199, %201 : vector<128x128xf32>
      %203 = arith.extui %202 : vector<128x128xi1> to vector<128x128xi32>
      %204 = arith.sitofp %203 : vector<128x128xi32> to vector<128x128xf32>
      %205 = arith.addf %170, %204 : vector<128x128xf32>
      %c5_i32 = arith.constant 5 : i32
      %206 = arith.addi %25, %c5_i32 : i32
      %207 = arith.index_cast %206 : i32 to index
      %208 = memref.load %arg1[%207] : memref<128xi32, #tpu.memory_space<smem>>
      %209 = vector.extract_strided_slice %28 {offsets = [0, 5], sizes = [128, 1], strides = [1, 1]} : vector<128x8xf32> to vector<128x1xf32>
      %210 = vector.extract_strided_slice %27 {offsets = [5, 0], sizes = [1, 128], strides = [1, 1]} : vector<8x128xf32> to vector<1x128xf32>
      %211 = vector.broadcast %208 : i32 to vector<128x1xi32>
      %212 = arith.cmpi eq, %9, %211 : vector<128x1xi32>
      %213 = vector.broadcast %206 : i32 to vector<128x1xi32>
      %214 = arith.cmpi ne, %10, %213 : vector<128x1xi32>
      %215 = arith.andi %212, %214 : vector<128x1xi1>
      %216 = arith.andi %215, %12 : vector<128x1xi1>
      %217 = vector.broadcast %208 : i32 to vector<1x128xi32>
      %218 = arith.cmpi ne, %5, %217 : vector<1x128xi32>
      %219 = arith.andi %218, %8 : vector<1x128xi1>
      %220 = vector.broadcast %216 : vector<128x1xi1> to vector<128x128xi1>
      %221 = vector.broadcast %219 : vector<1x128xi1> to vector<128x128xi1>
      %222 = arith.andi %220, %221 : vector<128x128xi1>
      %c12_i32_47 = arith.constant 12 : i32
      %223 = arith.cmpi slt, %206, %c12_i32_47 : i32
      %224 = vector.broadcast %223 : i1 to vector<128x128xi1>
      %225 = arith.andi %222, %224 : vector<128x128xi1>
      %226 = vector.broadcast %209 : vector<128x1xf32> to vector<128x128xf32>
      %227 = vector.broadcast %210 : vector<1x128xf32> to vector<128x128xf32>
      %228 = arith.subf %226, %227 : vector<128x128xf32>
      %cst_48 = arith.constant 1.000000e-01 : f32
      %229 = vector.broadcast %cst_48 : f32 to vector<128x128xf32>
      %230 = arith.addf %228, %229 : vector<128x128xf32>
      %cst_49 = arith.constant 0.000000e+00 : f32
      %231 = vector.broadcast %cst_49 : f32 to vector<128x128xf32>
      %232 = arith.maximumf %230, %231 : vector<128x128xf32>
      %cst_50 = arith.constant 0.000000e+00 : f32
      %233 = vector.broadcast %cst_50 : f32 to vector<128x128xf32>
      %234 = arith.select %225, %232, %233 : vector<128x128xi1>, vector<128x128xf32>
      %235 = arith.addf %200, %234 : vector<128x128xf32>
      %cst_51 = arith.constant 1.000000e-16 : f32
      %236 = vector.broadcast %cst_51 : f32 to vector<128x128xf32>
      %237 = arith.cmpf ogt, %234, %236 : vector<128x128xf32>
      %238 = arith.extui %237 : vector<128x128xi1> to vector<128x128xi32>
      %239 = arith.sitofp %238 : vector<128x128xi32> to vector<128x128xf32>
      %240 = arith.addf %205, %239 : vector<128x128xf32>
      %c6_i32 = arith.constant 6 : i32
      %241 = arith.addi %25, %c6_i32 : i32
      %242 = arith.index_cast %241 : i32 to index
      %243 = memref.load %arg1[%242] : memref<128xi32, #tpu.memory_space<smem>>
      %244 = vector.extract_strided_slice %28 {offsets = [0, 6], sizes = [128, 1], strides = [1, 1]} : vector<128x8xf32> to vector<128x1xf32>
      %245 = vector.extract_strided_slice %27 {offsets = [6, 0], sizes = [1, 128], strides = [1, 1]} : vector<8x128xf32> to vector<1x128xf32>
      %246 = vector.broadcast %243 : i32 to vector<128x1xi32>
      %247 = arith.cmpi eq, %9, %246 : vector<128x1xi32>
      %248 = vector.broadcast %241 : i32 to vector<128x1xi32>
      %249 = arith.cmpi ne, %10, %248 : vector<128x1xi32>
      %250 = arith.andi %247, %249 : vector<128x1xi1>
      %251 = arith.andi %250, %12 : vector<128x1xi1>
      %252 = vector.broadcast %243 : i32 to vector<1x128xi32>
      %253 = arith.cmpi ne, %5, %252 : vector<1x128xi32>
      %254 = arith.andi %253, %8 : vector<1x128xi1>
      %255 = vector.broadcast %251 : vector<128x1xi1> to vector<128x128xi1>
      %256 = vector.broadcast %254 : vector<1x128xi1> to vector<128x128xi1>
      %257 = arith.andi %255, %256 : vector<128x128xi1>
      %c12_i32_52 = arith.constant 12 : i32
      %258 = arith.cmpi slt, %241, %c12_i32_52 : i32
      %259 = vector.broadcast %258 : i1 to vector<128x128xi1>
      %260 = arith.andi %257, %259 : vector<128x128xi1>
      %261 = vector.broadcast %244 : vector<128x1xf32> to vector<128x128xf32>
      %262 = vector.broadcast %245 : vector<1x128xf32> to vector<128x128xf32>
      %263 = arith.subf %261, %262 : vector<128x128xf32>
      %cst_53 = arith.constant 1.000000e-01 : f32
      %264 = vector.broadcast %cst_53 : f32 to vector<128x128xf32>
      %265 = arith.addf %263, %264 : vector<128x128xf32>
      %cst_54 = arith.constant 0.000000e+00 : f32
      %266 = vector.broadcast %cst_54 : f32 to vector<128x128xf32>
      %267 = arith.maximumf %265, %266 : vector<128x128xf32>
      %cst_55 = arith.constant 0.000000e+00 : f32
      %268 = vector.broadcast %cst_55 : f32 to vector<128x128xf32>
      %269 = arith.select %260, %267, %268 : vector<128x128xi1>, vector<128x128xf32>
      %270 = arith.addf %235, %269 : vector<128x128xf32>
      %cst_56 = arith.constant 1.000000e-16 : f32
      %271 = vector.broadcast %cst_56 : f32 to vector<128x128xf32>
      %272 = arith.cmpf ogt, %269, %271 : vector<128x128xf32>
      %273 = arith.extui %272 : vector<128x128xi1> to vector<128x128xi32>
      %274 = arith.sitofp %273 : vector<128x128xi32> to vector<128x128xf32>
      %275 = arith.addf %240, %274 : vector<128x128xf32>
      %c7_i32 = arith.constant 7 : i32
      %276 = arith.addi %25, %c7_i32 : i32
      %277 = arith.index_cast %276 : i32 to index
      %278 = memref.load %arg1[%277] : memref<128xi32, #tpu.memory_space<smem>>
      %279 = vector.extract_strided_slice %28 {offsets = [0, 7], sizes = [128, 1], strides = [1, 1]} : vector<128x8xf32> to vector<128x1xf32>
      %280 = vector.extract_strided_slice %27 {offsets = [7, 0], sizes = [1, 128], strides = [1, 1]} : vector<8x128xf32> to vector<1x128xf32>
      %281 = vector.broadcast %278 : i32 to vector<128x1xi32>
      %282 = arith.cmpi eq, %9, %281 : vector<128x1xi32>
      %283 = vector.broadcast %276 : i32 to vector<128x1xi32>
      %284 = arith.cmpi ne, %10, %283 : vector<128x1xi32>
      %285 = arith.andi %282, %284 : vector<128x1xi1>
      %286 = arith.andi %285, %12 : vector<128x1xi1>
      %287 = vector.broadcast %278 : i32 to vector<1x128xi32>
      %288 = arith.cmpi ne, %5, %287 : vector<1x128xi32>
      %289 = arith.andi %288, %8 : vector<1x128xi1>
      %290 = vector.broadcast %286 : vector<128x1xi1> to vector<128x128xi1>
      %291 = vector.broadcast %289 : vector<1x128xi1> to vector<128x128xi1>
      %292 = arith.andi %290, %291 : vector<128x128xi1>
      %c12_i32_57 = arith.constant 12 : i32
      %293 = arith.cmpi slt, %276, %c12_i32_57 : i32
      %294 = vector.broadcast %293 : i1 to vector<128x128xi1>
      %295 = arith.andi %292, %294 : vector<128x128xi1>
      %296 = vector.broadcast %279 : vector<128x1xf32> to vector<128x128xf32>
      %297 = vector.broadcast %280 : vector<1x128xf32> to vector<128x128xf32>
      %298 = arith.subf %296, %297 : vector<128x128xf32>
      %cst_58 = arith.constant 1.000000e-01 : f32
      %299 = vector.broadcast %cst_58 : f32 to vector<128x128xf32>
      %300 = arith.addf %298, %299 : vector<128x128xf32>
      %cst_59 = arith.constant 0.000000e+00 : f32
      %301 = vector.broadcast %cst_59 : f32 to vector<128x128xf32>
      %302 = arith.maximumf %300, %301 : vector<128x128xf32>
      %cst_60 = arith.constant 0.000000e+00 : f32
      %303 = vector.broadcast %cst_60 : f32 to vector<128x128xf32>
      %304 = arith.select %295, %302, %303 : vector<128x128xi1>, vector<128x128xf32>
      %305 = arith.addf %270, %304 : vector<128x128xf32>
      %cst_61 = arith.constant 1.000000e-16 : f32
      %306 = vector.broadcast %cst_61 : f32 to vector<128x128xf32>
      %307 = arith.cmpf ogt, %304, %306 : vector<128x128xf32>
      %308 = arith.extui %307 : vector<128x128xi1> to vector<128x128xi32>
      %309 = arith.sitofp %308 : vector<128x128xi32> to vector<128x128xf32>
      %310 = arith.addf %275, %309 : vector<128x128xf32>
      %311 = vector.shape_cast %305 : vector<128x128xf32> to vector<1x128x128xf32>
      %cst_62 = arith.constant dense<0.000000e+00> : vector<1xf32>
      %312 = vector.multi_reduction <add>, %311, %cst_62 [1, 2] : vector<1x128x128xf32> to vector<1xf32>
      %313 = vector.shape_cast %312 : vector<1xf32> to vector<1x1x1xf32>
      %314 = vector.extract %313[0, 0, 0] : f32 from vector<1x1x1xf32>
      %315 = arith.addf %arg9, %314 : f32
      %316 = vector.shape_cast %310 : vector<128x128xf32> to vector<1x128x128xf32>
      %cst_63 = arith.constant dense<0.000000e+00> : vector<1xf32>
      %317 = vector.multi_reduction <add>, %316, %cst_63 [1, 2] : vector<1x128x128xf32> to vector<1xf32>
      %318 = vector.shape_cast %317 : vector<1xf32> to vector<1x1x1xf32>
      %319 = vector.extract %318[0, 0, 0] : f32 from vector<1x1x1xf32>
      %320 = arith.addf %arg10, %319 : f32
      scf.yield %315, %320 : f32, f32
    }
    %c2_i32_7 = arith.constant 2 : i32
    %c0_8 = arith.constant 0 : index
    %c0_9 = arith.constant 0 : index
    %15 = vector.load %arg5[%c0_8, %c0_9] : memref<1x1xf32, #tpu.memory_space<vmem>>, vector<1x1xf32>
    %16 = vector.broadcast %14#0 : f32 to vector<1x1xf32>
    %17 = arith.addf %15, %16 : vector<1x1xf32>
    %c0_10 = arith.constant 0 : index
    %c0_11 = arith.constant 0 : index
    %18 = vector.load %arg5[%c0_10, %c0_11] : memref<1x1xf32, #tpu.memory_space<vmem>>, vector<1x1xf32>
    tpu.vector_store %arg5[%c0_10, %c0_11], %17 {strides = array<i32>} : memref<1x1xf32, #tpu.memory_space<vmem>>, vector<1x1xf32>,
    %c0_12 = arith.constant 0 : index
    %c0_13 = arith.constant 0 : index
    %19 = vector.load %arg6[%c0_12, %c0_13] : memref<1x1xf32, #tpu.memory_space<vmem>>, vector<1x1xf32>
    %20 = vector.broadcast %14#1 : f32 to vector<1x1xf32>
    %21 = arith.addf %19, %20 : vector<1x1xf32>
    %c0_14 = arith.constant 0 : index
    %c0_15 = arith.constant 0 : index
    %22 = vector.load %arg6[%c0_14, %c0_15] : memref<1x1xf32, #tpu.memory_space<vmem>>, vector<1x1xf32>
    tpu.vector_store %arg6[%c0_14, %c0_15], %21 {strides = array<i32>} : memref<1x1xf32, #tpu.memory_space<vmem>>, vector<1x1xf32>,
    return
  }
  func.func @transform_0(%arg0: i32, %arg1: memref<128xi32, #tpu.memory_space<smem>>) -> (i32, i32) {
    %c0_i32 = arith.constant 0 : i32
    %c0_i32_0 = arith.constant 0 : i32
    %c0_i32_1 = arith.constant 0 : i32
    return %c0_i32, %c0_i32_0 : i32, i32
  }
  func.func @transform_1(%arg0: i32, %arg1: memref<128xi32, #tpu.memory_space<smem>>) -> (i32, i32) {
    %c0_i32 = arith.constant 0 : i32
    %c0_i32_0 = arith.constant 0 : i32
    %c0_i32_1 = arith.constant 0 : i32
    return %c0_i32, %c0_i32_0 : i32, i32
  }
  func.func @transform_2(%arg0: i32, %arg1: memref<128xi32, #tpu.memory_space<smem>>) -> (i32, i32) {
    %c0_i32 = arith.constant 0 : i32
    %c0_i32_0 = arith.constant 0 : i32
    %c0_i32_1 = arith.constant 0 : i32
    return %c0_i32, %c0_i32_0 : i32, i32
  }
  func.func @transform_3(%arg0: i32, %arg1: memref<128xi32, #tpu.memory_space<smem>>) -> (i32, i32) {
    %c0_i32 = arith.constant 0 : i32
    %c0_i32_0 = arith.constant 0 : i32
    %c0_i32_1 = arith.constant 0 : i32
    return %c0_i32, %c0_i32_0 : i32, i32
  }
  func.func @transform_4(%arg0: i32, %arg1: memref<128xi32, #tpu.memory_space<smem>>) -> (i32, i32) {
    %c0_i32 = arith.constant 0 : i32
    %c0_i32_0 = arith.constant 0 : i32
    %c0_i32_1 = arith.constant 0 : i32
    return %c0_i32, %c0_i32_0 : i32, i32
  }
}

</mosaic_0001>

<bundles_post_ra>
// kernel: tpu_custom_call.1
= control target key start
LH: loop header
LB: loop body
LE: loop exit
PB: predicated region body
PF: predicated region fallthrough
CT: control target
= control target key end

     0   :  { %s4818_s21 = smov [#allocation4]   ;;  %s8989_s0 = inlined_call_operand.vmem [shape: s32[128], index: 0, kind: input, shape index: {}]   ;;  %s8990_s1 = inlined_call_operand.vmem [shape: f32[128,128], index: 1, kind: input, shape index: {}]   ;;  %s8991_s2 = inlined_call_operand.vmem [shape: s32[128,1], index: 2, kind: input, shape index: {}]   ;;  %s8992_s3 = inlined_call_operand.hbm [shape: s32[1,128], index: 3, kind: input, shape index: {}]   ;;  %s8993_s4 = inlined_call_operand.hbm [shape: f32[1,1], index: 4, kind: output, shape index: {0}]   ;;  %s8994_s5 = inlined_call_operand.hbm [shape: f32[1,1], index: 5, kind: output, shape index: {1}]  }
   0x1   :  { %s12_s20 = sshll.u32 %s8989_s0, 4  ;;  %s13_s20 = int_to_ptr.vmem [resolvable:$true] %s12_s20 }
   0x2   :  { %15 = dma.vmem_to_smem %s13_s20, 16, %s4818_s21, [#allocation3] }
   0x3   :  { %4798 = dma.done.wait [#allocation3], 16 }
   0x4   :  { %4799 = vsyncadd [#allocation3], 4294967280 }
   0x5   :  { %18 = sfence }
   0x6   :  { %19 = vsyncpa [#allocation6], 0 }
   0x7   :  { %20 = vsyncpa [#allocation7], 0 }
   0x8   :  { %21 = vsyncpa [#allocation10], 0  ;;  %s31_s24 = sshll.u32 %s8992_s3, 4  ;;  %s4819_s25 = smov [#allocation5]   ;;  %s32_s24 = int_to_ptr.hbm [resolvable:$true] %s31_s24 }
   0x9   :  { %s33_s26 = sshll.u32 %s4819_s25, 4  ;;  %s34_s26 = int_to_ptr.vmem [resolvable:$true] %s33_s26 }
   0xa   :  { %36 = dma.hbm_to_vmem [thread:$0]  %s32_s24, 16, %s34_s26, [#allocation6]  }
   0xb   :  { %4800 = dma.done.wait [#allocation6], 16  }
   0xc   :  { %4801 = vsyncadd [#allocation6], 4294967280  ;;  %vm8995_vm0 = vcmask 0   ;;  %v4820_v0 = vmov 0.0   ;;  %v4870_v1 = vld [vmem:[#allocation5] sm:$0x1] }
   0xd   :  { %46 = vst.msk [vmem:[#allocation8] sm:$0x1] %vm8995_vm0, %v4820_v0  ;;  %v4875_v2 = vld [vmem:[%s8991_s2] sm:$0xff]  ;;  %v4880_v3 = vld [vmem:[%s8991_s2 + $0x8] sm:$0xff]  ;;  %v4885_v4 = vld [vmem:[%s8990_s1 + $0x78] sm:$0xff]  ;;  %s5586_s17 = smov 0.0  }
   0xe   :  { %47 = vst.msk [vmem:[#allocation9] sm:$0x1] %vm8995_vm0, %v4820_v0  ;;  %v4890_v5 = vld [vmem:[%s8990_s1 + $0x68] sm:$0xff]  ;;  %v4895_v6 = vld [vmem:[%s8990_s1 + $0x58] sm:$0xff]  ;;  %v79_v7 = vmul.f32 %v4885_v4, %v4885_v4  ;;  %v4906_v10 = vld [vmem:[%s8990_s1 + $0x70] sm:$0xff]  ;;  %s5588_s18 = smov 0  }
   0xf   :  { %9085 = vst [vmem:[#allocation15_spill] sm:$0xff] %v4870_v1  ;;  %v77_v8 = vmul.f32 %v4890_v5, %v4890_v5  ;;  %v75_v9 = vmul.f32 %v4895_v6, %v4895_v6  ;;  %v4911_v11 = vld [vmem:[%s8990_s1 + $0x60] sm:$0xff]  ;;  %v4916_v12 = vld [vmem:[%s8990_s1 + $0x50] sm:$0xff]  ;;  %v78_v13 = vmul.f32 %v4906_v10, %v4906_v10  ;;  %v4927_v16 = vld [vmem:[%s8990_s1 + $0x48] sm:$0xff] }
  0x10   :  { %9086 = vst [vmem:[#allocation16_spill] sm:$0xff] %v4875_v2  ;;  %110 = vadd.xlane.f32.xlu0 %v79_v7  ;;  %v76_v14 = vmul.f32 %v4911_v11, %v4911_v11  ;;  %v74_v15 = vmul.f32 %v4916_v12, %v4916_v12  ;;  %v4932_v17 = vld [vmem:[%s8990_s1 + $0x40] sm:$0xff]  ;;  %v4937_v18 = vld [vmem:[%s8990_s1 + $0x38] sm:$0xff]  ;;  %v73_v19 = vmul.f32 %v4927_v16, %v4927_v16  ;;  %v4948_v22 = vld [vmem:[%s8990_s1 + $0x30] sm:$0xff] }
  0x11   :  { %9087 = vst [vmem:[#allocation17_spill] sm:$0xff] %v4880_v3  ;;  %106 = vadd.xlane.f32.xlu1 %v77_v8  ;;  %102 = vadd.xlane.f32.xlu2 %v75_v9  ;;  %v72_v20 = vmul.f32 %v4932_v17, %v4932_v17  ;;  %v71_v21 = vmul.f32 %v4937_v18, %v4937_v18  ;;  %v4953_v23 = vld [vmem:[%s8990_s1 + $0x28] sm:$0xff]  ;;  %v52_v24 = vld [vmem:[%s8990_s1 + $0x20] sm:$0xff]  ;;  %v51_v28 = vld [vmem:[%s8990_s1 + $0x18] sm:$0xff] }
  0x12   :  { %v70_v25 = vmul.f32 %v4948_v22, %v4948_v22  ;;  %v69_v26 = vmul.f32 %v4953_v23, %v4953_v23  ;;  %v68_v27 = vmul.f32 %v52_v24, %v52_v24  ;;  %v50_v29 = vld [vmem:[%s8990_s1 + $0x10] sm:$0xff]  ;;  %v49_v30 = vld [vmem:[%s8990_s1 + $0x8] sm:$0xff]  ;;  %v67_v31 = vmul.f32 %v51_v28, %v51_v28  ;;  %v48_v34 = vld [vmem:[%s8990_s1] sm:$0xff] }
  0x13   :  { %v66_v32 = vmul.f32 %v50_v29, %v50_v29  ;;  %v65_v33 = vmul.f32 %v49_v30, %v49_v30  ;;  %v64_v35 = vmul.f32 %v48_v34, %v48_v34 }
  0x18   :  { %108 = vadd.xlane.f32.xlu0 %v78_v13 }
  0x19   :  { %104 = vadd.xlane.f32.xlu1 %v76_v14  ;;  %100 = vadd.xlane.f32.xlu2 %v74_v15 }
  0x20   :  { %98 = vadd.xlane.f32.xlu0 %v73_v19 }
  0x21   :  { %96 = vadd.xlane.f32.xlu1 %v72_v20  ;;  %94 = vadd.xlane.f32.xlu2 %v71_v21 }
  0x28   :  { %92 = vadd.xlane.f32.xlu0 %v70_v25 }
  0x29   :  { %90 = vadd.xlane.f32.xlu1 %v69_v26  ;;  %88 = vadd.xlane.f32.xlu2 %v68_v27 }
  0x30   :  { %86 = vadd.xlane.f32.xlu0 %v67_v31 }
  0x31   :  { %84 = vadd.xlane.f32.xlu1 %v66_v32  ;;  %82 = vadd.xlane.f32.xlu2 %v65_v33 }
  0x38   :  { %80 = vadd.xlane.f32.xlu0 %v64_v35 }
  0x83   :  { %v4974_v36 = vpop.xlane.xlu0 %110 }
  0x84   :  { %v4976_v37 = vpop.xlane.xlu1 %106  ;;  %4294 = vrsqrt.f32 %v4974_v36  ;;  %v4979_v38 = vpop.xlane.xlu2 %102  ;;  %vm299_vm1 = vcmp.eq.f32.partialorder %v4974_v36, inf  ;;  %vm301_vm2 = vcmp.eq.f32.partialorder %v4974_v36, 0.0  ;;  %v302_v24 = vand.u32 2147483648, %v4974_v36 }
  0x85   :  { %4296 = vrsqrt.f32 %v4976_v37  ;;  %vm275_vm3 = vcmp.eq.f32.partialorder %v4976_v37, inf  ;;  %vm277_vm4 = vcmp.eq.f32.partialorder %v4976_v37, 0.0  ;;  %v278_v32 = vand.u32 2147483648, %v4976_v37 }
  0x86   :  { %4298 = vrsqrt.f32 %v4979_v38  ;;  %vm251_vm5 = vcmp.eq.f32.partialorder %v4979_v38, inf  ;;  %vm253_vm6 = vcmp.eq.f32.partialorder %v4979_v38, 0.0 }
  0x8a   :  { %v4295_v39 = vpop.eup %4294 }
  0x8b   :  { %v4297_v40 = vpop.eup %4296  ;;  %v293_v41 = vmul.f32 %v4295_v39, %v4974_v36  ;;  %v4984_v42 = vpop.xlane.xlu0 %108 }
  0x8c   :  { %v4986_v43 = vpop.xlane.xlu1 %104  ;;  %v4299_v44 = vpop.eup %4298  ;;  %v269_v45 = vmul.f32 %v4297_v40, %v4976_v37  ;;  %4300 = vrsqrt.f32 %v4984_v42  ;;  %vm287_vm7 = vcmp.eq.f32.partialorder %v4984_v42, inf  ;;  %vm289_vm9 = vcmp.eq.f32.partialorder %v4984_v42, 0.0 }
  0x8d   :  { %v4990_v46 = vpop.xlane.xlu2 %100  ;;  %v294_v47 = vmul.f32 %v4295_v39, %v293_v41  ;;  %v245_v48 = vmul.f32 %v4299_v44, %v4979_v38  ;;  %4302 = vrsqrt.f32 %v4986_v43  ;;  %vm263_vm8 = vcmp.eq.f32.partialorder %v4986_v43, inf }
  0x8e   :  { %v270_v49 = vmul.f32 %v4297_v40, %v269_v45  ;;  %4304 = vrsqrt.f32 %v4990_v46  ;;  %vm265_vm10 = vcmp.eq.f32.partialorder %v4986_v43, 0.0  ;;  %vm239_vm11 = vcmp.eq.f32.partialorder %v4990_v46, inf }
  0x8f   :  { %v295_v50 = vmul.f32 0.5, %v294_v47  ;;  %v246_v51 = vmul.f32 %v4299_v44, %v245_v48  ;;  %vm241_vm12 = vcmp.eq.f32.partialorder %v4990_v46, 0.0 }
  0x90   :  { %v271_v52 = vmul.f32 0.5, %v270_v49 }
  0x91   :  { %v296_v53 = vsub.f32 1.5, %v295_v50  ;;  %v247_v54 = vmul.f32 0.5, %v246_v51  ;;  %v254_v50 = vand.u32 2147483648, %v4979_v38 }
  0x92   :  { %v4301_v55 = vpop.eup %4300  ;;  %v272_v56 = vsub.f32 1.5, %v271_v52 }
  0x93   :  { %v4303_v57 = vpop.eup %4302  ;;  %v297_v58 = vmul.f32 %v4295_v39, %v296_v53  ;;  %v248_v59 = vsub.f32 1.5, %v247_v54  ;;  %v281_v60 = vmul.f32 %v4301_v55, %v4984_v42  ;;  %v4996_v61 = vpop.xlane.xlu0 %98 }
  0x94   :  { %v273_v62 = vmul.f32 %v4297_v40, %v272_v56  ;;  %v257_v63 = vmul.f32 %v4303_v57, %v4986_v43  ;;  %4306 = vrsqrt.f32 %v4996_v61  ;;  %v5000_v0 = vpop.xlane.xlu1 %96  ;;  %v4305_v7 = vpop.eup %4304  ;;  %vm227_vm13 = vcmp.eq.f32.partialorder %v4996_v61, inf }
  0x95   :  { %v298_v8 = vmul.f32 %v297_v58, %v4974_v36  ;;  %v249_v9 = vmul.f32 %v4299_v44, %v248_v59  ;;  %v282_v13 = vmul.f32 %v4301_v55, %v281_v60  ;;  %v233_v19 = vmul.f32 %v4305_v7, %v4990_v46  ;;  %v5005_v20 = vpop.xlane.xlu2 %94 }
  0x96   :  { %v274_v14 = vmul.f32 %v273_v62, %v4976_v37  ;;  %v258_v15 = vmul.f32 %v4303_v57, %v257_v63  ;;  %4308 = vrsqrt.f32 %v5000_v0  ;;  %v290_v63 = vand.u32 2147483648, %v4984_v42 }
  0x97   :  { %v283_v21 = vmul.f32 0.5, %v282_v13  ;;  %v250_v25 = vmul.f32 %v249_v9, %v4979_v38  ;;  %v234_v27 = vmul.f32 %v4305_v7, %v233_v19  ;;  %v300_v28 = vsel %vm299_vm1, %v4974_v36, %v298_v8 }
  0x98   :  { %v259_v26 = vmul.f32 0.5, %v258_v15  ;;  %v276_v31 = vsel %vm275_vm3, %v4976_v37, %v274_v14  ;;  %v303_v41 = vsel %vm301_vm2, %v302_v24, %v300_v28  ;;  %4310 = vrsqrt.f32 %v5005_v20 }
  0x99   :  { %v284_v29 = vsub.f32 1.5, %v283_v21  ;;  %v235_v34 = vmul.f32 0.5, %v234_v27  ;;  %v252_v44 = vsel %vm251_vm5, %v4979_v38, %v250_v25  ;;  %v279_v49 = vsel %vm277_vm4, %v278_v32, %v276_v31 }
  0x9a   :  { %v4307_v30 = vpop.eup %4306  ;;  %v260_v33 = vsub.f32 1.5, %v259_v26  ;;  %v255_v56 = vsel %vm253_vm6, %v254_v50, %v252_v44  ;;  %v5039_v58 = vmax.f32 %v279_v49, 1e-16  ;;  %v266_v13 = vand.u32 2147483648, %v4986_v43 }
  0x9b   :  { %v285_v35 = vmul.f32 %v4301_v55, %v284_v29  ;;  %v221_v39 = vmul.f32 %v4307_v30, %v4996_v61  ;;  %v5020_v40 = vpop.xlane.xlu0 %92  ;;  %v236_v47 = vsub.f32 1.5, %v235_v34  ;;  %v5032_v55 = vmax.f32 %v303_v41, 1e-16 }
  0x9c   :  { %v261_v45 = vmul.f32 %v4303_v57, %v260_v33  ;;  %v4309_v48 = vpop.eup %4308  ;;  %v5037_v37 = vpop.xlane.xlu1 %90  ;;  %v5048_v9 = vmax.f32 %v255_v56, 1e-16  ;;  %vm229_vm14 = vcmp.eq.f32.partialorder %v4996_v61, 0.0  ;;  %v230_v41 = vand.u32 2147483648, %v4996_v61 }
  0x9d   :  { %v286_v51 = vmul.f32 %v285_v35, %v4984_v42  ;;  %v222_v52 = vmul.f32 %v4307_v30, %v221_v39  ;;  %v237_v54 = vmul.f32 %v4305_v7, %v236_v47  ;;  %v209_v36 = vmul.f32 %v4309_v48, %v5000_v0  ;;  %v5043_v62 = vpop.xlane.xlu2 %88 }
  0x9e   :  { %v262_v53 = vmul.f32 %v261_v45, %v4986_v43  ;;  %4312 = vrcp.f32 %v5032_v55  ;;  %v4311_v25 = vpop.eup %4310  ;;  %vm215_vm15 = vcmp.eq.f32.partialorder %v5000_v0, inf  ;;  %vm217_vm1 = vcmp.eq.f32.partialorder %v5000_v0, 0.0 }
  0x9f   :  { %v223_v57 = vmul.f32 0.5, %v222_v52  ;;  %v288_v59 = vsel %vm287_vm7, %v4984_v42, %v286_v51  ;;  %v210_v60 = vmul.f32 %v4309_v48, %v209_v36  ;;  %v238_v38 = vmul.f32 %v237_v54, %v4990_v46 }
  0xa0   :  { %v264_v7 = vsel %vm263_vm8, %v4986_v43, %v262_v53  ;;  %v291_v15 = vsel %vm289_vm9, %v290_v63, %v288_v59  ;;  %4314 = vrcp.f32 %v5039_v58  ;;  %v242_v43 = vand.u32 2147483648, %v4990_v46 }
  0xa1   :  { %v224_v8 = vsub.f32 1.5, %v223_v57  ;;  %v211_v14 = vmul.f32 0.5, %v210_v60  ;;  %v267_v21 = vsel %vm265_vm10, %v266_v13, %v264_v7  ;;  %v240_v26 = vsel %vm239_vm11, %v4990_v46, %v238_v38 }
  0xa2   :  { %4316 = vrsqrt.f32 %v5020_v40  ;;  %v5062_v28 = vmax.f32 %v291_v15, 1e-16  ;;  %v197_v29 = vmul.f32 %v4311_v25, %v5005_v20  ;;  %v243_v31 = vsel %vm241_vm12, %v242_v43, %v240_v26 }
  0xa3   :  { %v225_v19 = vmul.f32 %v4307_v30, %v224_v8  ;;  %v5056_v24 = vpop.xlane.xlu0 %86  ;;  %v212_v27 = vsub.f32 1.5, %v211_v14  ;;  %4318 = vrcp.f32 %v5048_v9  ;;  %v5066_v30 = vmax.f32 %v267_v21, 1e-16 }
  0xa4   :  { %4320 = vrsqrt.f32 %v5037_v37  ;;  %v198_v32 = vmul.f32 %v4311_v25, %v197_v29  ;;  %v5072_v33 = vpop.eup %4312  ;;  %v5077_v39 = vpop.xlane.xlu1 %84  ;;  %v5087_v49 = vmax.f32 %v243_v31, 1e-16  ;;  %vm203_vm2 = vcmp.eq.f32.partialorder %v5005_v20, inf }
  0xa5   :  { %v226_v42 = vmul.f32 %v225_v19, %v4996_v61  ;;  %4322 = vrsqrt.f32 %v5043_v62  ;;  %v213_v35 = vmul.f32 %v4309_v48, %v212_v27  ;;  %v5084_v45 = vpop.xlane.xlu2 %82  ;;  %v218_v48 = vand.u32 2147483648, %v5000_v0 }
  0xa6   :  { %4324 = vrsqrt.f32 %v5056_v24  ;;  %v5079_v46 = vpop.eup %4314  ;;  %v199_v44 = vmul.f32 0.5, %v198_v32  ;;  %vm205_vm3 = vcmp.eq.f32.partialorder %v5005_v20, 0.0  ;;  %v206_v56 = vand.u32 2147483648, %v5005_v20 }
  0xa7   :  { %v228_v34 = vsel %vm227_vm13, %v4996_v61, %v226_v42  ;;  %4326 = vrcp.f32 %v5062_v28  ;;  %v214_v36 = vmul.f32 %v213_v35, %v5000_v0  ;;  %vm191_vm4 = vcmp.eq.f32.partialorder %v5020_v40, inf }
  0xa8   :  { %v4317_v47 = vpop.eup %4316  ;;  %4328 = vrcp.f32 %v5066_v30  ;;  %v231_v51 = vsel %vm229_vm14, %v230_v41, %v228_v34  ;;  %v200_v52 = vsub.f32 1.5, %v199_v44  ;;  %vm179_vm5 = vcmp.eq.f32.partialorder %v5037_v37, inf }
  0xa9   :  { %v5092_v50 = vpop.eup %4318  ;;  %v185_v53 = vmul.f32 %v4317_v47, %v5020_v40  ;;  %4330 = vrsqrt.f32 %v5077_v39  ;;  %v5107_v8 = vmax.f32 %v231_v51, 1e-16  ;;  %vm167_vm6 = vcmp.eq.f32.partialorder %v5043_v62, inf }
  0xaa   :  { %v4321_v54 = vpop.eup %4320  ;;  %4332 = vrsqrt.f32 %v5084_v45  ;;  %v201_v59 = vmul.f32 %v4311_v25, %v200_v52  ;;  %v216_v27 = vsel %vm215_vm15, %v5000_v0, %v214_v36  ;;  %vm181_vm7 = vcmp.eq.f32.partialorder %v5037_v37, 0.0 }
  0xab   :  { %v4323_v57 = vpop.eup %4322  ;;  %v186_v60 = vmul.f32 %v4317_v47, %v185_v53  ;;  %v173_v63 = vmul.f32 %v4321_v54, %v5037_v37  ;;  %v5104_v7 = vpop.xlane.xlu0 %80  ;;  %4334 = vrcp.f32 %v5087_v49  ;;  %v170_v29 = vand.u32 2147483648, %v5043_v62 }
  0xac   :  { %v4325_v38 = vpop.eup %4324  ;;  %v161_v14 = vmul.f32 %v4323_v57, %v5043_v62  ;;  %v202_v19 = vmul.f32 %v201_v59, %v5005_v20  ;;  %4336 = vrsqrt.f32 %v5104_v7  ;;  %vm193_vm8 = vcmp.eq.f32.partialorder %v5020_v40, 0.0 }
  0xad   :  { %v5113_v15 = vpop.eup %4326  ;;  %v187_v21 = vmul.f32 0.5, %v186_v60  ;;  %v174_v25 = vmul.f32 %v4321_v54, %v173_v63  ;;  %v149_v26 = vmul.f32 %v4325_v38, %v5056_v24  ;;  %vm169_vm9 = vcmp.eq.f32.partialorder %v5043_v62, 0.0 }
  0xae   :  { %v5118_v42 = vpop.eup %4328  ;;  %v162_v43 = vmul.f32 %v4323_v57, %v161_v14  ;;  %v204_v32 = vsel %vm203_vm2, %v5005_v20, %v202_v19  ;;  %vm155_vm10 = vcmp.eq.f32.partialorder %v5056_v24, inf  ;;  %4338 = vrcp.f32 %v5107_v8 }
  0xaf   :  { %v4331_v31 = vpop.eup %4330  ;;  %v188_v34 = vsub.f32 1.5, %v187_v21  ;;  %v175_v35 = vmul.f32 0.5, %v174_v25  ;;  %v150_v41 = vmul.f32 %v4325_v38, %v149_v26  ;;  %v546_v53 = vmul.f32 %v5072_v33, %v5032_v55 }
  0xb0   :  { %v4333_v44 = vpop.eup %4332  ;;  %v163_v51 = vmul.f32 0.5, %v162_v43  ;;  %v137_v52 = vmul.f32 %v4331_v31, %v5077_v39  ;;  %v219_v36 = vsel %vm217_vm1, %v218_v48, %v216_v27  ;;  %v207_v19 = vsel %vm205_vm3, %v206_v56, %v204_v32 }
  0xb1   :  { %v189_v59 = vmul.f32 %v4317_v47, %v188_v34  ;;  %v176_v60 = vsub.f32 1.5, %v175_v35  ;;  %v151_v63 = vmul.f32 0.5, %v150_v41  ;;  %v5138_v14 = vpop.eup %4334  ;;  %vm157_vm11 = vcmp.eq.f32.partialorder %v5056_v24, 0.0 }
  0xb2   :  { %v164_v21 = vsub.f32 1.5, %v163_v51  ;;  %v138_v25 = vmul.f32 %v4331_v31, %v137_v52  ;;  %v125_v26 = vmul.f32 %v4333_v44, %v5084_v45  ;;  %v547_v0 = vsub.f32 1.0, %v546_v53  ;;  %v5145_v48 = vpop.eup %4336 }
  0xb3   :  { %v190_v43 = vmul.f32 %v189_v59, %v5020_v40  ;;  %v177_v13 = vmul.f32 %v4321_v54, %v176_v60  ;;  %v152_v61 = vsub.f32 1.5, %v151_v63  ;;  %v158_v27 = vand.u32 2147483648, %v5056_v24 }
  0xb4   :  { %v165_v47 = vmul.f32 %v4323_v57, %v164_v21  ;;  %v139_v34 = vmul.f32 0.5, %v138_v25  ;;  %v126_v35 = vmul.f32 %v4333_v44, %v125_v26  ;;  %v5148_v20 = vmax.f32 %v219_v36, 1e-16  ;;  %v5154_v51 = vpop.eup %4338 }
  0xb5   :  { %v192_v56 = vsel %vm191_vm4, %v5020_v40, %v190_v43  ;;  %v178_v32 = vmul.f32 %v177_v13, %v5037_v37  ;;  %v153_v41 = vmul.f32 %v4325_v38, %v152_v61  ;;  %v5156_v54 = vmax.f32 %v207_v19, 1e-16 }
  0xb6   :  { %v166_v52 = vmul.f32 %v165_v47, %v5043_v62  ;;  %v140_v57 = vsub.f32 1.5, %v139_v34  ;;  %v127_v53 = vmul.f32 0.5, %v126_v35  ;;  %v113_v60 = vmul.f32 %v5145_v48, %v5104_v7 }
  0xb7   :  { %v180_v36 = vsel %vm179_vm5, %v5037_v37, %v178_v32  ;;  %v154_v59 = vmul.f32 %v153_v41, %v5056_v24  ;;  %v548_v13 = vmul.f32 %v5072_v33, %v547_v0  ;;  %v9088_v61 = vand.u32 2147483648, %v5020_v40 }
  0xb8   :  { %v168_v63 = vsel %vm167_vm6, %v5043_v62, %v166_v52  ;;  %v141_v19 = vmul.f32 %v4331_v31, %v140_v57  ;;  %v128_v21 = vsub.f32 1.5, %v127_v53  ;;  %v9089_v25 = vand.u32 2147483648, %v5037_v37 }
  0xb9   :  { %v195_v38 = vsel %vm193_vm8, %v9088_v61, %v192_v56  ;;  %vm143_vm12 = vcmp.eq.f32.partialorder %v5077_v39, inf  ;;  %vm145_vm13 = vcmp.eq.f32.partialorder %v5077_v39, 0.0  ;;  %v146_v43 = vand.u32 2147483648, %v5077_v39 }
  0xba   :  { %v183_v26 = vsel %vm181_vm7, %v9089_v25, %v180_v36  ;;  %v171_v40 = vsel %vm169_vm9, %v170_v29, %v168_v63  ;;  %v156_v0 = vsel %vm155_vm10, %v5056_v24, %v154_v59  ;;  %v142_v31 = vmul.f32 %v141_v19, %v5077_v39 }
  0xbb   :  { %v129_v47 = vmul.f32 %v4333_v44, %v128_v21  ;;  %4340 = vrcp.f32 %v5148_v20  ;;  %v5187_v37 = vmax.f32 %v195_v38, 1e-16  ;;  %vm131_vm14 = vcmp.eq.f32.partialorder %v5084_v45, inf }
  0xbc   :  { %v549_v34 = vadd.f32 %v5072_v33, %v548_v13  ;;  %4342 = vrcp.f32 %v5156_v54  ;;  %v5192_v35 = vmax.f32 %v183_v26, 1e-16  ;;  %vm133_vm15 = vcmp.eq.f32.partialorder %v5084_v45, 0.0 }
  0xbd   :  { %v114_v62 = vmul.f32 %v5145_v48, %v113_v60  ;;  %v5196_v29 = vmax.f32 %v171_v40, 1e-16  ;;  %v159_v44 = vsel %vm157_vm11, %v158_v27, %v156_v0  ;;  %vm550_vm1 = vweird.f32 %v5032_v55 }
  0xbe   :  { %vm551_vm2 = vweird.f32 %v5072_v33  ;;  %v144_v56 = vsel %vm143_vm12, %v5077_v39, %v142_v31  ;;  %v130_v32 = vmul.f32 %v129_v47, %v5084_v45  ;;  %v554_v52 = vand.u32 2147483647, %v5032_v55 }
  0xbf   :  { %vm5206_vm3 = vmor %vm550_vm1, %vm551_vm2  ;;  %v556_v57 = vand.u32 2147483648, %v5032_v55  ;;  %4344 = vrcp.f32 %v5187_v37  ;;  %v134_v24 = vand.u32 2147483648, %v5084_v45  ;;  %v531_v53 = vmul.f32 %v5113_v15, %v5062_v28 }
  0xc0   :  { %v553_v27 = vsel %vm5206_vm3, %v5072_v33, %v549_v34  ;;  %4346 = vrcp.f32 %v5192_v35  ;;  %v5220_v36 = vmax.f32 %v159_v44, 1e-16  ;;  %v115_v59 = vmul.f32 0.5, %v114_v62 }
  0xc1   :  { %v557_v60 = vor.u32 1.1754944e-38, %v556_v57  ;;  %v5222_v13 = vpop.eup %4340  ;;  %4348 = vrcp.f32 %v5196_v29  ;;  %v147_v55 = vsel %vm145_vm13, %v146_v43, %v144_v56  ;;  %vm555_vm4 = vcmp.eq.f32.partialorder %v554_v52, 8.507059e+37 }
  0xc2   :  { %v532_v61 = vsub.f32 1.0, %v531_v53  ;;  %v5227_v38 = vpop.eup %4342  ;;  %v132_v33 = vsel %vm131_vm14, %v5084_v45, %v130_v32  ;;  %v539_v19 = vand.u32 2147483647, %v5062_v28  ;;  %v541_v21 = vand.u32 2147483648, %v5062_v28 }
  0xc3   :  { %v558_v63 = vsel %vm555_vm4, %v557_v60, %v553_v27  ;;  %vm536_vm5 = vweird.f32 %v5113_v15  ;;  %v516_v39 = vmul.f32 %v5079_v46, %v5039_v58  ;;  %4350 = vrcp.f32 %v5220_v36 }
  0xc4   :  { %v5235_v25 = vmul.f32 %v558_v63, %v4885_v4  ;;  %v533_v26 = vmul.f32 %v5113_v15, %v532_v61  ;;  %v5242_v43 = vmax.f32 %v147_v55, 1e-16  ;;  %v116_v40 = vsub.f32 1.5, %v115_v59 }
  0xc5   :  { %v122_v0 = vand.u32 2147483648, %v5104_v7  ;;  %v5245_v31 = vpop.eup %4344  ;;  %v5249_v4 = vsel %vm133_vm15, %v134_v24, %v132_v33  ;;  %vm535_vm6 = vweird.f32 %v5062_v28  ;;  %v517_v34 = vsub.f32 1.0, %v516_v39 }
  0xc6   :  { %560 = vmatpush.xpose.msra.mxu0 %v5235_v25  ;;  %4204 = vmatpush.xpose.msra.mxu1 %v5235_v25  ;;  %v534_v47 = vadd.f32 %v5113_v15, %v533_v26  ;;  %v5255_v62 = vpop.eup %4346  ;;  %vm537_vm7 = vmor %vm535_vm6, %vm536_vm5  ;;  %vm540_vm8 = vcmp.eq.f32.partialorder %v539_v19, 8.507059e+37  ;;  %v542_v45 = vor.u32 1.1754944e-38, %v541_v21  ;;  %v526_v44 = vand.u32 2147483648, %v5039_v58 }
  0xc7   :  { %4205 = vmatpush.xpose.msra.mxu2 %v5235_v25  ;;  %4206 = vmatpush.xpose.msra.mxu3 %v5235_v25  ;;  %v501_v56 = vmul.f32 %v5118_v42, %v5066_v30  ;;  %v5264_v32 = vpop.eup %4348  ;;  %v518_v41 = vmul.f32 %v5079_v46, %v517_v34  ;;  %vm521_vm9 = vweird.f32 %v5079_v46  ;;  %v524_v52 = vand.u32 2147483647, %v5039_v58 }
  0xc8   :  { %v538_v28 = vsel %vm537_vm7, %v5113_v15, %v534_v47  ;;  %v117_v57 = vmul.f32 %v5145_v48, %v116_v40  ;;  %vm520_vm10 = vweird.f32 %v5039_v58  ;;  %vm506_vm11 = vweird.f32 %v5118_v42 }
  0xc9   :  { %v543_v24 = vsel %vm540_vm8, %v542_v45, %v538_v28  ;;  %v502_v27 = vsub.f32 1.0, %v501_v56  ;;  %v519_v59 = vadd.f32 %v5079_v46, %v518_v41  ;;  %v511_v15 = vand.u32 2147483648, %v5066_v30  ;;  %v5278_v60 = vpop.eup %4350  ;;  %vm522_vm12 = vmor %vm520_vm10, %vm521_vm9 }
  0xca   :  { %v5273_v53 = vmul.f32 %v543_v24, %v4906_v10  ;;  %v527_v55 = vor.u32 1.1754944e-38, %v526_v44  ;;  %v509_v48 = vand.u32 2147483647, %v5066_v30  ;;  %v486_v58 = vmul.f32 %v5092_v50, %v5048_v9 }
  0xcb   :  { %v503_v61 = vmul.f32 %v5118_v42, %v502_v27  ;;  %4352 = vrcp.f32 %v5242_v43  ;;  %v523_v10 = vsel %vm522_vm12, %v5079_v46, %v519_v59  ;;  %vm525_vm13 = vcmp.eq.f32.partialorder %v524_v52, 8.507059e+37 }
  0xcc   :  { %561 = vmatpush.xpose.msra.mxu0 %v5273_v53  ;;  %4207 = vmatpush.xpose.msra.mxu1 %v5273_v53  ;;  %vm505_vm14 = vweird.f32 %v5066_v30  ;;  %vm119_vm15 = vcmp.eq.f32.partialorder %v5104_v7, inf  ;;  %v528_v33 = vsel %vm525_vm13, %v527_v55, %v523_v10  ;;  %v487_v19 = vsub.f32 1.0, %v486_v58 }
  0xcd   :  { %4208 = vmatpush.xpose.msra.mxu2 %v5273_v53  ;;  %4209 = vmatpush.xpose.msra.mxu3 %v5273_v53  ;;  %v504_v63 = vadd.f32 %v5118_v42, %v503_v61  ;;  %vm491_vm1 = vweird.f32 %v5092_v50  ;;  %v5295_v21 = vmul.f32 %v528_v33, %v4890_v5  ;;  %vm507_vm2 = vmor %vm505_vm14, %vm506_vm11  ;;  %v512_v46 = vor.u32 1.1754944e-38, %v511_v15 }
  0xce   :  { %v496_v30 = vand.u32 2147483648, %v5048_v9  ;;  %v471_v26 = vmul.f32 %v5138_v14, %v5087_v49  ;;  %vm510_vm3 = vcmp.eq.f32.partialorder %v509_v48, 8.507059e+37  ;;  %v488_v40 = vmul.f32 %v5092_v50, %v487_v19 }
  0xcf   :  { %v508_v39 = vsel %vm507_vm2, %v5118_v42, %v504_v63  ;;  %v494_v47 = vand.u32 2147483647, %v5048_v9  ;;  %v118_v34 = vmul.f32 %v117_v57, %v5104_v7  ;;  %v479_v44 = vand.u32 2147483647, %v5087_v49 }
  0xd0   :  { %562 = vmatpush.xpose.msra.mxu0 %v5295_v21  ;;  %4210 = vmatpush.xpose.msra.mxu1 %v5295_v21  ;;  %v513_v5 = vsel %vm510_vm3, %v512_v46, %v508_v39  ;;  %v472_v45 = vsub.f32 1.0, %v471_v26  ;;  %vm121_vm4 = vcmp.eq.f32.partialorder %v5104_v7, 0.0  ;;  %v489_v42 = vadd.f32 %v5092_v50, %v488_v40 }
  0xd1   :  { %4211 = vmatpush.xpose.msra.mxu2 %v5295_v21  ;;  %4212 = vmatpush.xpose.msra.mxu3 %v5295_v21  ;;  %vm490_vm5 = vweird.f32 %v5048_v9  ;;  %v481_v56 = vand.u32 2147483648, %v5087_v49  ;;  %v456_v28 = vmul.f32 %v5154_v51, %v5107_v8  ;;  %v5317_v41 = vpop.eup %4352  ;;  %v5320_v52 = vmul.f32 %v513_v5, %v4911_v11 }
  0xd2   :  { %vm492_vm6 = vmor %vm490_vm5, %vm491_vm1  ;;  %v497_v57 = vor.u32 1.1754944e-38, %v496_v30  ;;  %v473_v24 = vmul.f32 %v5138_v14, %v472_v45  ;;  %vm476_vm7 = vweird.f32 %v5138_v14  ;;  %vm495_vm8 = vcmp.eq.f32.partialorder %v494_v47, 8.507059e+37 }
  0xd3   :  { %v493_v9 = vsel %vm492_vm6, %v5092_v50, %v489_v42  ;;  %vm475_vm9 = vweird.f32 %v5087_v49  ;;  %v457_v27 = vsub.f32 1.0, %v456_v28  ;;  %vm480_vm10 = vcmp.eq.f32.partialorder %v479_v44, 8.507059e+37 }
  0xd4   :  { %563 = vmatpush.xpose.msra.mxu0 %v5320_v52  ;;  %4213 = vmatpush.xpose.msra.mxu1 %v5320_v52  ;;  %v498_v11 = vsel %vm495_vm8, %v497_v57, %v493_v9  ;;  %v474_v59 = vadd.f32 %v5138_v14, %v473_v24  ;;  %v441_v15 = vmul.f32 %v5222_v13, %v5148_v20  ;;  %vm477_vm11 = vmor %vm475_vm9, %vm476_vm7  ;;  %v482_v50 = vor.u32 1.1754944e-38, %v481_v56 }
  0xd5   :  { %4214 = vmatpush.xpose.msra.mxu2 %v5320_v52  ;;  %4215 = vmatpush.xpose.msra.mxu3 %v5320_v52  ;;  %v458_v49 = vmul.f32 %v5154_v51, %v457_v27  ;;  %vm461_vm12 = vweird.f32 %v5154_v51  ;;  %v466_v55 = vand.u32 2147483648, %v5107_v8  ;;  %v5339_v61 = vmul.f32 %v498_v11, %v4895_v6 }
  0xd6   :  { %v478_v48 = vsel %vm477_vm11, %v5138_v14, %v474_v59  ;;  %v464_v58 = vand.u32 2147483647, %v5107_v8  ;;  %v442_v10 = vsub.f32 1.0, %v441_v15  ;;  %vm460_vm13 = vweird.f32 %v5107_v8 }
  0xd7   :  { %v483_v33 = vsel %vm480_vm10, %v482_v50, %v478_v48  ;;  %v459_v63 = vadd.f32 %v5154_v51, %v458_v49  ;;  %v426_v19 = vmul.f32 %v5227_v38, %v5156_v54  ;;  %v120_v46 = vsel %vm119_vm15, %v5104_v7, %v118_v34  ;;  %vm5352_vm14 = vmor %vm460_vm13, %vm461_vm12 }
  0xd8   :  { %564 = vmatpush.xpose.msra.mxu0 %v5339_v61  ;;  %4216 = vmatpush.xpose.msra.mxu1 %v5339_v61  ;;  %v443_v14 = vmul.f32 %v5222_v13, %v442_v10  ;;  %vm446_vm1 = vweird.f32 %v5222_v13  ;;  %v449_v8 = vand.u32 2147483647, %v5148_v20  ;;  %v467_v26 = vor.u32 1.1754944e-38, %v466_v55 }
  0xd9   :  { %4217 = vmatpush.xpose.msra.mxu2 %v5339_v61  ;;  %4218 = vmatpush.xpose.msra.mxu3 %v5339_v61  ;;  %v463_v30 = vsel %vm5352_vm14, %v5154_v51, %v459_v63  ;;  %v451_v39 = vand.u32 2147483648, %v5148_v20  ;;  %v427_v40 = vsub.f32 1.0, %v426_v19  ;;  %v5366_v47 = vmul.f32 %v483_v33, %v4916_v12 }
  0xda   :  { %vm465_vm15 = vcmp.eq.f32.partialorder %v464_v58, 8.507059e+37  ;;  %v444_v34 = vadd.f32 %v5222_v13, %v443_v14  ;;  %vm445_vm2 = vweird.f32 %v5148_v20  ;;  %v5371_v5 = vmax.f32 %v5249_v4, 1e-16 }
  0xdb   :  { %v468_v45 = vsel %vm465_vm15, %v467_v26, %v463_v30  ;;  %vm5373_vm3 = vmor %vm445_vm2, %vm446_vm1  ;;  %v428_v51 = vmul.f32 %v5227_v38, %v427_v40  ;;  %v411_v42 = vmul.f32 %v5245_v31, %v5187_v37  ;;  %v123_v12 = vsel %vm121_vm4, %v122_v0, %v120_v46 }
  0xdc   :  { %565 = vmatpush.xpose.msra.mxu0 %v5366_v47  ;;  %4219 = vmatpush.xpose.msra.mxu1 %v5366_v47  ;;  %v448_v20 = vsel %vm5373_vm3, %v5222_v13, %v444_v34  ;;  %vm450_vm5 = vcmp.eq.f32.partialorder %v449_v8, 8.507059e+37  ;;  %vm431_vm6 = vweird.f32 %v5227_v38  ;;  %v452_v4 = vor.u32 1.1754944e-38, %v451_v39 }
  0xdd   :  { %4220 = vmatpush.xpose.msra.mxu2 %v5366_v47  ;;  %4221 = vmatpush.xpose.msra.mxu3 %v5366_v47  ;;  %v429_v56 = vadd.f32 %v5227_v38, %v428_v51  ;;  %v436_v7 = vand.u32 2147483648, %v5156_v54  ;;  %v412_v0 = vsub.f32 1.0, %v411_v42  ;;  %v5395_v28 = vmul.f32 %v468_v45, %v4927_v16 }
  0xde   :  { %vm430_vm4 = vweird.f32 %v5156_v54  ;;  %v434_v13 = vand.u32 2147483647, %v5156_v54  ;;  %v396_v57 = vmul.f32 %v5255_v62, %v5192_v35  ;;  %4354 = vrcp.f32 %v5371_v5 }
  0xdf   :  { %v5402_v24 = vmax.f32 %v123_v12, 1e-16  ;;  %v453_v9 = vsel %vm450_vm5, %v452_v4, %v448_v20  ;;  %vm5404_vm7 = vmor %vm430_vm4, %vm431_vm6  ;;  %v413_v11 = vmul.f32 %v5245_v31, %v412_v0  ;;  %vm415_vm8 = vweird.f32 %v5187_v37 }
  0xe0   :  { %566 = vmatpush.xpose.msra.mxu0 %v5395_v28  ;;  %4222 = vmatpush.xpose.msra.mxu1 %v5395_v28  ;;  %v433_v16 = vsel %vm5404_vm7, %v5227_v38, %v429_v56  ;;  %vm416_vm9 = vweird.f32 %v5245_v31  ;;  %v397_v54 = vsub.f32 1.0, %v396_v57  ;;  %v437_v59 = vor.u32 1.1754944e-38, %v436_v7 }
  0xe1   :  { %4223 = vmatpush.xpose.msra.mxu2 %v5395_v28  ;;  %4224 = vmatpush.xpose.msra.mxu3 %v5395_v28  ;;  %v414_v15 = vadd.f32 %v5245_v31, %v413_v11  ;;  %v421_v50 = vand.u32 2147483648, %v5187_v37  ;;  %v381_v49 = vmul.f32 %v5264_v32, %v5196_v29  ;;  %v5423_v55 = vmul.f32 %v453_v9, %v4932_v17  ;;  %vm5427_vm11 = vmor %vm415_vm8, %vm416_vm9 }
  0xe2   :  { %vm435_vm10 = vcmp.eq.f32.partialorder %v434_v13, 8.507059e+37  ;;  %v419_v38 = vand.u32 2147483647, %v5187_v37  ;;  %v398_v48 = vmul.f32 %v5255_v62, %v397_v54  ;;  %vm401_vm12 = vweird.f32 %v5255_v62 }
  0xe3   :  { %v438_v58 = vsel %vm435_vm10, %v437_v59, %v433_v16  ;;  %v382_v33 = vsub.f32 1.0, %v381_v49  ;;  %4356 = vrcp.f32 %v5402_v24  ;;  %v418_v17 = vsel %vm5427_vm11, %v5245_v31, %v414_v15  ;;  %v4358_v49 = vld [vmem:[%s8990_s1 + $0x20] sm:$0xff] }
  0xe4   :  { %567 = vmatpush.xpose.msra.mxu0 %v5423_v55  ;;  %4225 = vmatpush.xpose.msra.mxu1 %v5423_v55  ;;  %v399_v37 = vadd.f32 %v5255_v62, %v398_v48  ;;  %v366_v63 = vmul.f32 %v5278_v60, %v5220_v36  ;;  %v5441_v19 = vpop.eup %4354  ;;  %v422_v46 = vor.u32 1.1754944e-38, %v421_v50  ;;  %vm400_vm13 = vweird.f32 %v5192_v35 }
  0xe5   :  { %4226 = vmatpush.xpose.msra.mxu2 %v5423_v55  ;;  %4227 = vmatpush.xpose.msra.mxu3 %v5423_v55  ;;  %v406_v6 = vand.u32 2147483648, %v5192_v35  ;;  %v383_v14 = vmul.f32 %v5264_v32, %v382_v33  ;;  %v5449_v31 = vmul.f32 %v438_v58, %v4937_v18  ;;  %vm420_vm14 = vcmp.eq.f32.partialorder %v419_v38, 8.507059e+37  ;;  %vm5453_vm1 = vmor %vm400_vm13, %vm401_vm12 }
  0xe6   :  { %v404_v30 = vand.u32 2147483647, %v5192_v35  ;;  %v367_v26 = vsub.f32 1.0, %v366_v63  ;;  %v423_v39 = vsel %vm420_vm14, %v422_v46, %v418_v17  ;;  %v403_v40 = vsel %vm5453_vm1, %v5255_v62, %v399_v37  ;;  %v4359_v63 = vld [vmem:[%s8990_s1 + $0x18] sm:$0xff] }
  0xe7   :  { %v384_v18 = vadd.f32 %v5264_v32, %v383_v14  ;;  %vm386_vm15 = vweird.f32 %v5264_v32  ;;  %v351_v45 = vmul.f32 %v5317_v41, %v5242_v43  ;;  %v407_v35 = vor.u32 1.1754944e-38, %v406_v6 }
  0xe8   :  { %568 = vmatpush.xpose.msra.mxu0 %v5449_v31  ;;  %4228 = vmatpush.xpose.msra.mxu1 %v5449_v31  ;;  %v368_v34 = vmul.f32 %v5278_v60, %v367_v26  ;;  %v389_v62 = vand.u32 2147483647, %v5196_v29  ;;  %v391_v44 = vand.u32 2147483648, %v5196_v29  ;;  %v5475_v42 = vmul.f32 %v423_v39, %v4948_v22 }
  0xe9   :  { %4229 = vmatpush.xpose.msra.mxu2 %v5449_v31  ;;  %4230 = vmatpush.xpose.msra.mxu3 %v5449_v31  ;;  %v5472_v51 = vpop.eup %4356  ;;  %vm405_vm2 = vcmp.eq.f32.partialorder %v404_v30, 8.507059e+37  ;;  %vm385_vm3 = vweird.f32 %v5196_v29  ;;  %v352_v12 = vsub.f32 1.0, %v351_v45  ;;  %v336_v56 = vmul.f32 %v5441_v19, %v5371_v5 }
  0xea   :  { %v408_v20 = vsel %vm405_vm2, %v407_v35, %v403_v40  ;;  %vm5478_vm5 = vmor %vm385_vm3, %vm386_vm15  ;;  %v369_v7 = vadd.f32 %v5278_v60, %v368_v34  ;;  %vm371_vm6 = vweird.f32 %v5278_v60  ;;  %vm390_vm4 = vcmp.eq.f32.partialorder %v389_v62, 8.507059e+37  ;;  %v4361_v35 = vld [vmem:[%s8990_s1 + $0x8] sm:$0xff] }
  0xeb   :  { %v388_v22 = vsel %vm5478_vm5, %v5264_v32, %v384_v18  ;;  %v353_v29 = vmul.f32 %v5317_v41, %v352_v12  ;;  %v392_v0 = vor.u32 1.1754944e-38, %v391_v44  ;;  %v376_v13 = vand.u32 2147483648, %v5220_v36 }
  0xec   :  { %569 = vmatpush.xpose.msra.mxu0 %v5475_v42  ;;  %4231 = vmatpush.xpose.msra.mxu1 %v5475_v42  ;;  %v337_v57 = vsub.f32 1.0, %v336_v56  ;;  %v5496_v9 = vmul.f32 %v408_v20, %v4953_v23  ;;  %vm370_vm7 = vweird.f32 %v5220_v36  ;;  %v374_v32 = vand.u32 2147483647, %v5220_v36 }
  0xed   :  { %4232 = vmatpush.xpose.msra.mxu2 %v5475_v42  ;;  %4233 = vmatpush.xpose.msra.mxu3 %v5475_v42  ;;  %v321_v27 = vmul.f32 %v5472_v51, %v5402_v24  ;;  %v393_v11 = vsel %vm390_vm4, %v392_v0, %v388_v22  ;;  %vm5502_vm8 = vmor %vm370_vm7, %vm371_vm6  ;;  %vm356_vm9 = vweird.f32 %v5317_v41  ;;  %v354_v36 = vadd.f32 %v5317_v41, %v353_v29 }
  0xee   :  { %v373_v23 = vsel %vm5502_vm8, %v5278_v60, %v369_v7  ;;  %v338_v54 = vmul.f32 %v5441_v19, %v337_v57  ;;  %v377_v15 = vor.u32 1.1754944e-38, %v376_v13  ;;  %v361_v50 = vand.u32 2147483648, %v5242_v43 }
  0xef   :  { %v322_v59 = vsub.f32 1.0, %v321_v27  ;;  %v394_v38 = vmul.f32 %v4358_v49, %v393_v11  ;;  %vm375_vm10 = vcmp.eq.f32.partialorder %v374_v32, 8.507059e+37  ;;  %vm355_vm11 = vweird.f32 %v5242_v43 }
  0xf0   :  { %570 = vmatpush.xpose.msra.mxu0 %v5496_v9  ;;  %4234 = vmatpush.xpose.msra.mxu1 %v5496_v9  ;;  %v359_v60 = vand.u32 2147483647, %v5242_v43  ;;  %v378_v48 = vsel %vm375_vm10, %v377_v15, %v373_v23  ;;  %vm5524_vm12 = vmor %vm355_vm11, %vm356_vm9  ;;  %vm340_vm13 = vweird.f32 %v5371_v5  ;;  %v339_v33 = vadd.f32 %v5441_v19, %v338_v54 }
  0xf1   :  { %4235 = vmatpush.xpose.msra.mxu2 %v5496_v9  ;;  %4236 = vmatpush.xpose.msra.mxu3 %v5496_v9  ;;  %v358_v10 = vsel %vm5524_vm12, %v5317_v41, %v354_v36  ;;  %vm341_vm14 = vweird.f32 %v5441_v19  ;;  %v323_v43 = vmul.f32 %v5472_v51, %v322_v59  ;;  %v362_v17 = vor.u32 1.1754944e-38, %v361_v50 }
  0xf2   :  { %v346_v37 = vand.u32 2147483648, %v5371_v5  ;;  %v379_v46 = vmul.f32 %v4359_v63, %v378_v48  ;;  %vm360_vm1 = vcmp.eq.f32.partialorder %v359_v60, 8.507059e+37  ;;  %v344_v6 = vand.u32 2147483647, %v5371_v5  ;;  %vm5542_vm15 = vmor %vm340_vm13, %vm341_vm14  ;;  %v4360_v5 = vld [vmem:[%s8990_s1 + $0x10] sm:$0xff] }
  0xf3   :  { %v363_v41 = vsel %vm360_vm1, %v362_v17, %v358_v10  ;;  %v343_v8 = vsel %vm5542_vm15, %v5441_v19, %v339_v33  ;;  %v324_v30 = vadd.f32 %v5472_v51, %v323_v43  ;;  %vm326_vm2 = vweird.f32 %v5472_v51 }
  0xf4   :  { %571 = vmatpush.xpose.msra.mxu0 %v394_v38  ;;  %4237 = vmatpush.xpose.msra.mxu1 %v394_v38  ;;  %v347_v26 = vor.u32 1.1754944e-38, %v346_v37  ;;  %v331_v39 = vand.u32 2147483648, %v5402_v24  ;;  %v364_v40 = vmul.f32 %v4360_v5, %v363_v41  ;;  %vm345_vm3 = vcmp.eq.f32.partialorder %v344_v6, 8.507059e+37 }
  0xf5   :  { %4238 = vmatpush.xpose.msra.mxu2 %v394_v38  ;;  %4239 = vmatpush.xpose.msra.mxu3 %v394_v38  ;;  %vm325_vm5 = vweird.f32 %v5402_v24  ;;  %v329_v18 = vand.u32 2147483647, %v5402_v24  ;;  %v4362_v24 = vld [vmem:[%s8990_s1] sm:$0xff]  ;;  %v675_v4 = vlaneseq  ;;  %s5584_s1 = smov 0.0  }
  0xf6   :  { %v348_v19 = vsel %vm345_vm3, %v347_v26, %v343_v8  ;;  %vm327_vm6 = vmor %vm325_vm5, %vm326_vm2  ;;  %v332_v45 = vor.u32 1.1754944e-38, %v331_v39 }
  0xf7   :  { %v328_v34 = vsel %vm327_vm6, %v5472_v51, %v324_v30  ;;  %v349_v62 = vmul.f32 %v4361_v35, %v348_v19  ;;  %vm330_vm4 = vcmp.eq.f32.partialorder %v329_v18, 8.507059e+37  ;;  %v5575_v56 = vand.u32 127, %v675_v4 }
  0xf8   :  { %572 = vmatpush.xpose.msra.mxu0 %v379_v46  ;;  %4240 = vmatpush.xpose.msra.mxu1 %v379_v46  ;;  %v333_v44 = vsel %vm330_vm4, %v332_v45, %v328_v34 }
  0xf9   :  { %4241 = vmatpush.xpose.msra.mxu2 %v379_v46  ;;  %4242 = vmatpush.xpose.msra.mxu3 %v379_v46  ;;  %v334_v12 = vmul.f32 %v4362_v24, %v333_v44  ;;  %9110 = vst [vmem:[#allocation18_spill] sm:$0xff] %v5575_v56 }
  0xfc   :  { %573 = vmatpush.xpose.msra.mxu0 %v364_v40  ;;  %4243 = vmatpush.xpose.msra.mxu1 %v364_v40 }
  0xfd   :  { %4244 = vmatpush.xpose.msra.mxu2 %v364_v40  ;;  %4245 = vmatpush.xpose.msra.mxu3 %v364_v40 }
 0x100   :  { %574 = vmatpush.xpose.msra.mxu0 %v349_v62  ;;  %4246 = vmatpush.xpose.msra.mxu1 %v349_v62 }
 0x101   :  { %4247 = vmatpush.xpose.msra.mxu2 %v349_v62  ;;  %4248 = vmatpush.xpose.msra.mxu3 %v349_v62 }
 0x104   :  { %575 = vmatpush.xpose.msra.mxu0 %v334_v12  ;;  %4249 = vmatpush.xpose.msra.mxu1 %v334_v12 }
 0x105   :  { %4250 = vmatpush.xpose.msra.mxu2 %v334_v12  ;;  %4251 = vmatpush.xpose.msra.mxu3 %v334_v12 }
 0x107   :  { %576 = vmatmul.f32.vlgmr.msra.gmra.mxu0 %v334_v12  ;;  %588 = vmatmul.f32.vlgmr.msra.gmra.mxu1 %v394_v38 }
 0x108   :  { %600 = vmatmul.f32.vlgmr.msra.gmra.mxu2 %v5423_v55  ;;  %612 = vmatmul.f32.vlgmr.msra.gmra.mxu3 %v5320_v52 }
 0x10f   :  { %579 = vmatmul.f32.gmra.mxu0 %v349_v62  ;;  %591 = vmatmul.f32.gmra.mxu1 %v5496_v9 }
 0x110   :  { %603 = vmatmul.f32.gmra.mxu2 %v5395_v28  ;;  %615 = vmatmul.f32.gmra.mxu3 %v5295_v21 }
 0x117   :  { %582 = vmatmul.f32.gmra.mxu0 %v364_v40  ;;  %594 = vmatmul.f32.gmra.mxu1 %v5475_v42 }
 0x118   :  { %606 = vmatmul.f32.gmra.mxu2 %v5366_v47  ;;  %618 = vmatmul.f32.gmra.mxu3 %v5273_v53  ;;  %v5577_v53 = vshrl.u32 %v675_v4, 7 }
 0x11a   :  { %9111 = vst [vmem:[#allocation19_spill] sm:$0xff] %v5577_v53  ;;  %v5581_v0 = vadd.s32 8, %v5577_v53 }
 0x11c   :  { %9112 = vst [vmem:[#allocation20_spill] sm:$0xff] %v5581_v0 }
 0x11f   :  { %585 = vmatmul.f32.gmra.mxu0 %v379_v46  ;;  %597 = vmatmul.f32.gmra.mxu1 %v5449_v31 }
 0x120   :  { %609 = vmatmul.f32.gmra.mxu2 %v5339_v61  ;;  %621 = vmatmul.f32.gmra.mxu3 %v5235_v25 }
 0x184   :  { %v577_v52 = vpop.f32.mrf.mxu0  ;;  %v589_v55 = vpop.f32.mrf.mxu1 }
 0x185   :  { %v625_v51 = vsub.f32 1.0, %v577_v52  ;;  %v629_v28 = vsub.f32 1.0, %v589_v55 }
 0x187   :  { %v641_v20 = vmax.f32 %v625_v51, 0.0  ;;  %v645_v21 = vmax.f32 %v629_v28, 0.0 }
 0x189   :  { %657 = vst [vmem:[#allocation2] sm:$0xff] %v641_v20 }
 0x18a   :  { %661 = vst [vmem:[#allocation2 + $0x20] sm:$0xff] %v645_v21 }
 0x18b   :  { %v601_v42 = vpop.f32.mrf.mxu2  ;;  %v613_v47 = vpop.f32.mrf.mxu3 }
 0x18c   :  { %v633_v31 = vsub.f32 1.0, %v601_v42  ;;  %v637_v22 = vsub.f32 1.0, %v613_v47  ;;  %v580_v61 = vpop.f32.mrf.mxu0  ;;  %v592_v7 = vpop.f32.mrf.mxu1 }
 0x18d   :  { %v626_v25 = vsub.f32 1.0, %v580_v61  ;;  %v630_v29 = vsub.f32 1.0, %v592_v7 }
 0x18e   :  { %v649_v13 = vmax.f32 %v633_v31, 0.0  ;;  %v653_v57 = vmax.f32 %v637_v22, 0.0 }
 0x18f   :  { %v642_v9 = vmax.f32 %v626_v25, 0.0  ;;  %v646_v32 = vmax.f32 %v630_v29, 0.0 }
 0x190   :  { %665 = vst [vmem:[#allocation2 + $0x40] sm:$0xff] %v649_v13 }
 0x191   :  { %669 = vst [vmem:[#allocation2 + $0x60] sm:$0xff] %v653_v57 }
 0x192   :  { %658 = vst [vmem:[#allocation2 + $0x8] sm:$0xff] %v642_v9 }
 0x193   :  { %662 = vst [vmem:[#allocation2 + $0x28] sm:$0xff] %v646_v32  ;;  %v604_v27 = vpop.f32.mrf.mxu2  ;;  %v616_v11 = vpop.f32.mrf.mxu3 }
 0x194   :  { %v634_v16 = vsub.f32 1.0, %v604_v27  ;;  %v638_v23 = vsub.f32 1.0, %v616_v11  ;;  %v583_v36 = vpop.f32.mrf.mxu0  ;;  %v595_v54 = vpop.f32.mrf.mxu1 }
 0x195   :  { %v627_v59 = vsub.f32 1.0, %v583_v36  ;;  %v631_v15 = vsub.f32 1.0, %v595_v54 }
 0x196   :  { %v650_v50 = vmax.f32 %v634_v16, 0.0  ;;  %v654_v49 = vmax.f32 %v638_v23, 0.0 }
 0x197   :  { %v643_v38 = vmax.f32 %v627_v59, 0.0  ;;  %v647_v60 = vmax.f32 %v631_v15, 0.0 }
 0x198   :  { %666 = vst [vmem:[#allocation2 + $0x48] sm:$0xff] %v650_v50 }
 0x199   :  { %670 = vst [vmem:[#allocation2 + $0x68] sm:$0xff] %v654_v49 }
 0x19a   :  { %659 = vst [vmem:[#allocation2 + $0x10] sm:$0xff] %v643_v38 }
 0x19b   :  { %663 = vst [vmem:[#allocation2 + $0x30] sm:$0xff] %v647_v60  ;;  %v607_v48 = vpop.f32.mrf.mxu2  ;;  %v619_v58 = vpop.f32.mrf.mxu3 }
 0x19c   :  { %v635_v10 = vsub.f32 1.0, %v607_v48  ;;  %v639_v33 = vsub.f32 1.0, %v619_v58  ;;  %v586_v43 = vpop.f32.mrf.mxu0  ;;  %v598_v17 = vpop.f32.mrf.mxu1 }
 0x19d   :  { %v628_v37 = vsub.f32 1.0, %v586_v43  ;;  %v632_v63 = vsub.f32 1.0, %v598_v17 }
 0x19e   :  { %v651_v46 = vmax.f32 %v635_v10, 0.0  ;;  %v655_v6 = vmax.f32 %v639_v33, 0.0 }
 0x19f   :  { %v644_v41 = vmax.f32 %v628_v37, 0.0  ;;  %v648_v14 = vmax.f32 %v632_v63, 0.0 }
 0x1a0   :  { %667 = vst [vmem:[#allocation2 + $0x50] sm:$0xff] %v651_v46 }
 0x1a1   :  { %671 = vst [vmem:[#allocation2 + $0x70] sm:$0xff] %v655_v6 }
 0x1a2   :  { %660 = vst [vmem:[#allocation2 + $0x18] sm:$0xff] %v644_v41 }
 0x1a3   :  { %664 = vst [vmem:[#allocation2 + $0x38] sm:$0xff] %v648_v14  ;;  %v610_v8 = vpop.f32.mrf.mxu2  ;;  %v622_v30 = vpop.f32.mrf.mxu3 }
 0x1a4   :  { %v636_v26 = vsub.f32 1.0, %v610_v8  ;;  %v640_v39 = vsub.f32 1.0, %v622_v30 }
 0x1a6   :  { %v652_v5 = vmax.f32 %v636_v26, 0.0  ;;  %v656_v40 = vmax.f32 %v640_v39, 0.0 }
 0x1a8   :  { %668 = vst [vmem:[#allocation2 + $0x58] sm:$0xff] %v652_v5 }
 0x1a9   :  { %672 = vst [vmem:[#allocation2 + $0x78] sm:$0xff] %v656_v40 }
 0x1aa LB: > { %v9113_v53 = vld [vmem:[#allocation19_spill] sm:$0xff]  ;;  %v9114_v2 = vld [vmem:[#allocation16_spill] sm:$0xff]  ;;  %v9116_v56 = vld [vmem:[#allocation18_spill] sm:$0xff]  ;;  %v9014_v18 = vmov 0   ;;  %s5602_s19 = sshll.u32 %s4816_s18, 3  ;;  %v9123_v29 = vmov 0  ;;  %s4816_s18 = sphi %s5588_s18, %s732_s18   ;;  %s4812_s17 = sphi %s5586_s17, %s9676_s17   ;;  %s4808_s1 = sphi %s5584_s1, %s9675_s1  }
 0x1ab   : > { %v9115_v1 = vld [vmem:[#allocation15_spill] sm:$0xff]  ;;  %v9117_v0 = vld [vmem:[#allocation20_spill] sm:$0xff]  ;;  %v9118_v3 = vld [vmem:[#allocation17_spill] sm:$0xff]  ;;  %4363 = vset.pattern.permute.xlu1 %v9014_v18  ;;  %4369 = vset.pattern.permute.xlu2 %v9014_v18  ;;  %s771_s20 = sld [smem:[#allocation4 + %s5602_s19]]  ;;  %s5608_s21 = scalar_lea.vmem [#allocation2], %s5602_s19  ;;  %v9001_v34 = vstv %s5602_s19  ;;  %vm9120_vm7 = vcmp.lt.s32.totalorder %v9116_v56, 12 }
 0x1ac   : > { %4365 = vperm.xlu1 %4363, %v9014_v18   ;;  %4371 = vperm.xlu2 %4369, %v9014_v18   ;;  %vm791_vm9 = vcmp.ne.s32.totalorder %v9117_v0, %v9001_v34  ;;  %s5624_s22 = sadd.s32 1, %s5602_s19  ;;  %vm9119_vm8 = vcmp.lt.s32.totalorder %v9117_v0, 12  ;;  %v9126_v13 = vmov 0  ;;  %v9129_v16 = vmov 0  ;;  %s5881_s25 = sadd.s32 2, %s5602_s19 }
 0x1ad   : > { %s1185_s23 = sld [smem:[#allocation4 + %s5624_s22]]  ;;  %v1203_v44 = vstv %s5624_s22  ;;  %p1353_p0 = scmp.lt.s32.totalorder %s5624_s22, 12  ;;  %v4822_v54 = vmov 1   ;;  %v9002_v59 = vmov 2   ;;  %v9134_v10 = vmov 0 }
 0x1ae   : > { %vm1205_vm14 = vcmp.ne.s32.totalorder %v9117_v0, %v1203_v44  ;;  %vm1204_vm2 = vcmp.ne.s32.totalorder %v9113_v53, %v1203_v44  ;;  %v9139_v37 = vmov 0  ;;  %v9142_v63 = vmov 0  ;;  %s1583_s26 = sld [smem:[#allocation4 + %s5881_s25]]  ;;  %s6008_s0 = sadd.s32 3, %s5602_s19 }
 0x1af   : > { %s1354_s24 = scalar_select %p1353_p0, 1, 0  ;;  %v9145_v46 = vmov 0  ;;  %v9149_v41 = vmov 0 }
 0x1b0   : > { %v5611_v19 = vld [vmem:[%s5608_s21] sm:$0xff]  ;;  %s1981_s27 = sld [smem:[#allocation4 + %s6008_s0]]  ;;  %p939_p1 = scmp.lt.s32.totalorder %s5602_s19, 12 }
 0x1b1   : > { %739 = vxpose.xlu0.b32.start.end [1/1] (short) %v5611_v19, 128  ;;  %v5618_v45 = vstv %s771_s20  ;;  %v1355_v61 = vstv %s1354_s24  ;;  %p1751_p2 = scmp.lt.s32.totalorder %s5881_s25, 12  ;;  %s6232_s29 = sadd.s32 4, %s5602_s19 }
 0x1b2   : > { %vm774_vm10 = vcmp.eq.s32.totalorder %v9118_v3, %v5618_v45  ;;  %s6059_s3 = scalar_select %p939_p1, 1, 0 }
 0x1b3   : > { %vm807_vm11 = vmand %vm774_vm10, %vm791_vm9  ;;  %v1186_v62 = vstv %s1185_s23  ;;  %s6181_s28 = scalar_select %p1751_p2, 1, 0 }
 0x1b4   : > { %4376 = vperm.xlu2 %4369, %v9014_v18   ;;  %vm823_vm12 = vmand %vm807_vm11, %vm9119_vm8  ;;  %vm1188_vm13 = vcmp.eq.s32.totalorder %v9118_v3, %v1186_v62  ;;  %vm1187_vm15 = vcmp.eq.s32.totalorder %v9114_v2, %v1186_v62  ;;  %vm1252_vm6 = vcmp.ne.s32.totalorder %v9115_v1, %v1186_v62  ;;  %vm5676_vm11 = vcmp.eq.s32.totalorder %v1355_v61, 1  ;;  %s6273_s30 = sld [smem:[#allocation4 + %s6232_s29]]  ;;  %s6511_s6 = sadd.s32 5, %s5602_s19 }
 0x1b5   : > { %v841_v35 = vsel %vm823_vm12, 1, %v9014_v18  ;;  %vm1221_vm1 = vmand %vm1188_vm13, %vm1205_vm14  ;;  %v9124_v29 = vsel %vm5676_vm11, 4294967295, %v9123_v29  ;;  %v1753_v33 = vstv %s6181_s28  ;;  %s6530_s7 = sld [smem:[#allocation4 + %s6511_s6]]  ;;  %p2149_p3 = scmp.lt.s32.totalorder %s6008_s0, 12 }
 0x1b6   : > { %860 = vperm.xlu1 %4363, %v841_v35   ;;  %vm1237_vm3 = vmand %vm1221_vm1, %vm9119_vm8  ;;  %9125 = vst [vmem:[#allocation21_spill] sm:$0xff] %v9124_v29  ;;  %s6770_s8 = sadd.s32 6, %s5602_s19  ;;  %s7025_s10 = sadd.s32 7, %s5602_s19 }
 0x1b7   : > { %vm1220_vm5 = vmand %vm1187_vm15, %vm1204_vm2  ;;  %v1255_v24 = vsel %vm1237_vm3, 1, %v9014_v18  ;;  %s6784_s9 = scalar_select %p2149_p3, 1, 0 }
 0x1b8   : > { %v1254_v12 = vsel %vm1220_vm5, 1, %v9014_v18  ;;  %vm1253_vm4 = vmand %vm1252_vm6, %vm9120_vm7  ;;  %s6804_s2 = sld [smem:[#allocation4 + %s6770_s8]]  ;;  %p2547_p4 = scmp.lt.s32.totalorder %s6232_s29, 12 }
 0x1b9   : > { %v1334_v42 = vsel %vm1253_vm4, 1, %v9014_v18  ;;  %s7054_s11 = sld [smem:[#allocation4 + %s7025_s10]]  ;;  %p2945_p5 = scmp.lt.s32.totalorder %s6511_s6, 12 }
 0x1ba   : > { %v1335_v47 = vperm.slane %v1334_v42, 0  ;;  %v9161_v42 = vmov 0  ;;  %s2548_s12 = scalar_select %p2547_p4, 1, 0 }
 0x1bb   : > { %s2946_s13 = scalar_select %p2945_p5, 1, 0 }
 0x1bc   : > { %4386 = vperm.xlu2 %4369, %v9014_v18   ;;  %vm5670_vm9 = vcmp.eq.s32.totalorder %v1335_v47, 1  ;;  %p3343_p6 = scmp.lt.s32.totalorder %s6770_s8, 12  ;;  %p3741_p7 = scmp.lt.s32.totalorder %s7025_s10, 12 }
 0x1bd   : > { %s732_s18 = sadd.s32 1, %s4816_s18  }
 0x1be   : > { %4381 = vperm.xlu1 %4363, %v9014_v18   ;;  %s3344_s14 = scalar_select %p3343_p6, 1, 0 }
 0x1bf   : > { %s3742_s15 = scalar_select %p3741_p7, 1, 0 }
 0x1c0   : > { %p729_p8 = scmp.ge.s32.totalorder %s732_s18, 2  }
 0x1c1   :  { %s4036_s24 = sshll.u32 (%p729_p8), %s8993_s4, 4  ;;  %s4037_s24 = int_to_ptr.hbm [resolvable:$true] %s4036_s24 }
 0x1c4   : > { %4396 = vperm.xlu2 %4369, %v9014_v18  }
 0x1c6   : > { %4391 = vperm.xlu1 %4363, %v9014_v18  }
 0x1cc   : > { %1274 = vperm.xlu2 %4369, %v1255_v24   ;;  %v8999_v24 = vmov 3  }
 0x1ce   : > { %1271 = vperm.xlu1 %4363, %v1254_v12   ;;  %v9158_v12 = vmov 0 }
 0x1d4   : > { %4406 = vperm.xlu2 %4369, %v9014_v18  }
 0x1d6   : > { %4401 = vperm.xlu1 %4363, %v9014_v18  }
 0x1dc   : > { %4416 = vperm.xlu2 %4369, %v9014_v18  }
 0x206   : > { %v5646_v52 = vpop.permute.xlu2 %4371 }
 0x20e   : > { %v5648_v55 = vpop.permute.xlu2 %4376 }
 0x216   : > { %v5652_v28 = vpop.permute.xlu2 %4386 }
 0x218   : > { %4496 = vset.pattern.permute.xlu0 %v9002_v59 }
 0x21e   : > { %v5650_v51 = vpop.permute.xlu1 %4365  ;;  %v5663_v4 = vpop.permute.xlu2 %4396 }
 0x226   : > { %v1275_v25 = vpop.permute.xlu2 %1274 }
 0x227   : > { %vm1319_vm10 = vcmp.eq.s32.totalorder %v1275_v25, 1 }
 0x228   : > { %v5661_v21 = vpop.permute.xlu1 %860  ;;  %vm5682_vm12 = vmand %vm1319_vm10, %vm5670_vm9 }
 0x229   : > { %v9127_v13 = vsel %vm5682_vm12, 4294967295, %v9126_v13 }
 0x22e   : > { %v4407_v27 = vpop.permute.xlu2 %4406 }
 0x22f   : > { %v4408_v23 = vunpack.i.l.bf16 %v4407_v27  ;;  %v4409_v58 = vunpack.i.h.bf16 %v4407_v27 }
 0x230   : > { %v5674_v7 = vpop.permute.xlu1 %4381 }
 0x231   : > { %vm1322_vm2 = vcmp.eq.s32.totalorder %v4408_v23, 1 }
 0x232   : > { %vm1341_vm3 = vmand %vm1322_vm2, %vm5670_vm9 }
 0x233   : > { %vm5724_vm4 = vmand %vm1341_vm3, %vm5676_vm11 }
 0x234   : > { %v9135_v10 = vsel %vm5724_vm4, 4294967295, %v9134_v10 }
 0x236   : > { %v4417_v49 = vpop.permute.xlu2 %4416 }
 0x237   : > { %v4418_v60 = vunpack.i.l.bf16 %v4417_v49  ;;  %v4419_v43 = vunpack.i.h.bf16 %v4417_v49 }
 0x238   : > { %v5694_v9 = vpop.permute.xlu1 %4391 }
 0x240   : > { %v1272_v11 = vpop.permute.xlu1 %1271 }
 0x241   : > { %vm1318_vm14 = vcmp.eq.s32.totalorder %v1272_v11, 1 }
 0x242   : > { %vm5702_vm1 = vmand %vm1318_vm14, %vm5670_vm9  ;;  %vm1326_vm14 = vcmp.eq.s32.totalorder %v4418_v60, 1  ;;  %v9168_v60 = vmov 0 }
 0x243   : > { %v9130_v16 = vsel %vm5702_vm1, 4294967295, %v9129_v16  ;;  %vm1345_vm0 = vmand %vm1326_vm14, %vm5670_vm9 }
 0x244   : > { %9131 = vst [vmem:[#allocation23_spill] sm:$0xff] %v9130_v16  ;;  %v9178_v16 = vmov 0 }
 0x248   : > { %v4402_v15 = vpop.permute.xlu1 %4401 }
 0x249   : > { %v4403_v50 = vunpack.i.l.bf16 %v4402_v15  ;;  %v4404_v38 = vunpack.i.h.bf16 %v4402_v15 }
 0x24b   : > { %vm1320_vm5 = vcmp.eq.s32.totalorder %v4403_v50, 1  ;;  %vm1321_vm10 = vcmp.eq.s32.totalorder %v4404_v38, 1 }
 0x24c   : > { %vm1339_vm6 = vmand %vm1320_vm5, %vm5670_vm9  ;;  %vm1323_vm5 = vcmp.eq.s32.totalorder %v4409_v58, 1 }
 0x24d   : > { %vm5733_vm2 = vmand %vm1339_vm6, %vm5676_vm11 }
 0x24e   : > { %vm1340_vm3 = vmand %vm1321_vm10, %vm5670_vm9  ;;  %vm1327_vm10 = vcmp.eq.s32.totalorder %v4419_v43, 1 }
 0x24f   : > { %vm1342_vm15 = vmand %vm1323_vm5, %vm5670_vm9 }
 0x250   : > { %vm5747_vm13 = vmand %vm1340_vm3, %vm5676_vm11 }
 0x251   : > { %v9140_v37 = vsel %vm5747_vm13, 4294967295, %v9139_v37  ;;  %vm5754_vm6 = vmand %vm1345_vm0, %vm5676_vm11 }
 0x252   : > { %9141 = vst [vmem:[#allocation27_spill] sm:$0xff] %v9140_v37  ;;  %v9143_v63 = vsel %vm5754_vm6, 4294967295, %v9142_v63  ;;  %vm5762_vm14 = vmand %vm1342_vm15, %vm5676_vm11  ;;  %vm9177_vm6 = vcmp.lt.s32.totalorder %v9117_v0, 12  ;;  %v9019_v37 = vmov 6  }
 0x253   : > { %9144 = vst [vmem:[#allocation28_spill] sm:$0xff] %v9143_v63  ;;  %v9146_v46 = vsel %vm5762_vm14, 4294967295, %v9145_v46  ;;  %vm1346_vm5 = vmand %vm1327_vm10, %vm5670_vm9 }
 0x254   : > { %9147 = vst [vmem:[#allocation29_spill] sm:$0xff] %v9146_v46  ;;  %vm5772_vm0 = vmand %vm1346_vm5, %vm5676_vm11 }
 0x255   : > { %v5657_v20 = vpop.trf.xlu0  ;;  %v9150_v41 = vsel %vm5772_vm0, 4294967295, %v9149_v41 }
 0x256   : > { %961 = vperm.xlu1 %4363, %v5657_v20   ;;  %9151 = vst [vmem:[#allocation31_spill] sm:$0xff] %v9150_v41 }
 0x25d   : > { %v5666_v31 = vpop.trf.xlu0 }
 0x25e   : > { %4411 = vperm.xlu1 %4363, %v9014_v18   ;;  %966 = vperm.xlu2 %4369, %v5666_v31  }
 0x265   : > { %v5686_v57 = vpop.trf.xlu0 }
 0x266   : > { %9128 = vst [vmem:[#allocation22_spill] sm:$0xff] %v5686_v57  ;;  %4426 = vperm.xlu2 %4369, %v9014_v18   ;;  %971 = vperm.xlu1 %4363, %v5686_v57  }
 0x26d   : > { %v5696_v32 = vpop.trf.xlu0 }
 0x26e   : > { %4421 = vperm.xlu1 %4363, %v9014_v18   ;;  %976 = vperm.xlu2 %4369, %v5696_v32  }
 0x275   : > { %v5710_v36 = vpop.trf.xlu0 }
 0x276   : > { %9132 = vst [vmem:[#allocation24_spill] sm:$0xff] %v5710_v36  ;;  %4435 = vset.pattern.permute.xlu2 %v4822_v54  ;;  %981 = vperm.xlu1 %4363, %v5710_v36  }
 0x277   : > { %1374 = vperm.xlu2 %4435, %v5657_v20  }
 0x27d   : > { %v5720_v48 = vpop.trf.xlu0 }
 0x27e   : > { %9133 = vst [vmem:[#allocation25_spill] sm:$0xff] %v5720_v48  ;;  %4431 = vperm.xlu1 %4363, %v9014_v18  }
 0x27f   : > { %4436 = vset.pattern.permute.xlu2 %v9014_v18 }
 0x280   : > { %986 = vperm.xlu2 %4436, %v5720_v48  }
 0x285   : > { %v5743_v17 = vpop.trf.xlu0 }
 0x286   : > { %9138 = vst [vmem:[#allocation26_spill] sm:$0xff] %v5743_v17  ;;  %991 = vperm.xlu1 %4363, %v5743_v17  }
 0x288   : > { %4438 = vset.pattern.permute.xlu2 %v4822_v54 }
 0x289   : > { %1382 = vperm.xlu2 %4438, %v5686_v57  }
 0x28d   : > { %v5768_v6 = vpop.trf.xlu0 }
 0x28e   : > { %9148 = vst [vmem:[#allocation30_spill] sm:$0xff] %v5768_v6  ;;  %4437 = vset.pattern.permute.xlu1 %v4822_v54 }
 0x28f   : > { %1378 = vperm.xlu1 %4437, %v5666_v31  }
 0x291   : > { %4439 = vset.pattern.permute.xlu2 %v9014_v18 }
 0x292   : > { %996 = vperm.xlu2 %4439, %v5768_v6  }
 0x295   : > { %v5780_v14 = vpop.trf.xlu0 }
 0x296   : > { %9152 = vst [vmem:[#allocation32_spill] sm:$0xff] %v5780_v14 }
 0x297   : > { %1780 = vperm.xlu0 %4496, %v5686_v57   ;;  %4440 = vset.pattern.permute.xlu1 %v9014_v18 }
 0x298   : > { %1001 = vperm.xlu1 %4440, %v5780_v14  }
 0x29a   : > { %4442 = vset.pattern.permute.xlu2 %v4822_v54 }
 0x29b   : > { %1390 = vperm.xlu2 %4442, %v5710_v36  }
 0x29d   : > { %v5787_v8 = vpop.trf.xlu0 }
 0x29e   : > { %9153 = vst [vmem:[#allocation33_spill] sm:$0xff] %v5787_v8 }
 0x29f   : > { %1800 = vperm.xlu0 %4496, %v5768_v6  }
 0x2a0   : > { %4441 = vset.pattern.permute.xlu1 %v4822_v54 }
 0x2a1   : > { %1386 = vperm.xlu1 %4441, %v5696_v32  }
 0x2a3   : > { %4443 = vset.pattern.permute.xlu2 %v9014_v18 }
 0x2a4   : > { %1006 = vperm.xlu2 %4443, %v5787_v8  }
 0x2a5   : > { %v5794_v30 = vpop.trf.xlu0 }
 0x2a6   : > { %9154 = vst [vmem:[#allocation34_spill] sm:$0xff] %v5794_v30 }
 0x2a7   : > { %1812 = vperm.xlu0 %4496, %v5794_v30  }
 0x2a9   : > { %4444 = vset.pattern.permute.xlu1 %v9014_v18 }
 0x2aa   : > { %1011 = vperm.xlu1 %4444, %v5794_v30  }
 0x2ac   : > { %4446 = vset.pattern.permute.xlu2 %v4822_v54 }
 0x2ad   : > { %1398 = vperm.xlu2 %4446, %v5743_v17   ;;  %v5801_v26 = vpop.trf.xlu0 }
 0x2ae   : > { %9155 = vst [vmem:[#allocation35_spill] sm:$0xff] %v5801_v26 }
 0x2b2   : > { %4445 = vset.pattern.permute.xlu1 %v4822_v54 }
 0x2b3   : > { %1394 = vperm.xlu1 %4445, %v5720_v48  }
 0x2b5   : > { %4447 = vset.pattern.permute.xlu2 %v9014_v18  ;;  %v5806_v39 = vpop.trf.xlu0 }
 0x2b6   : > { %9156 = vst [vmem:[#allocation36_spill] sm:$0xff] %v5806_v39  ;;  %1016 = vperm.xlu2 %4447, %v5801_v26  }
 0x2b8   : > { %v5809_v5 = vpop.permute.xlu2 %966 }
 0x2bb   : > { %4448 = vset.pattern.permute.xlu1 %v9014_v18 }
 0x2bc   : > { %1021 = vperm.xlu1 %4448, %v5806_v39  }
 0x2bd   : > { %v5813_v40 = vpop.trf.xlu0 }
 0x2be   : > { %9157 = vst [vmem:[#allocation37_spill] sm:$0xff] %v5813_v40  ;;  %4450 = vset.pattern.permute.xlu2 %v4822_v54  ;;  %1824 = vperm.xlu0 %4496, %v5813_v40  }
 0x2bf   : > { %1406 = vperm.xlu2 %4450, %v5780_v14  }
 0x2c0   : > { %v4427_v35 = vpop.permute.xlu2 %4426 }
 0x2c1   : > { %v4429_v62 = vunpack.i.h.bf16 %v4427_v35  ;;  %v4428_v44 = vunpack.i.l.bf16 %v4427_v35 }
 0x2c3   : > { %vm1331_vm15 = vcmp.eq.s32.totalorder %v4429_v62, 1  ;;  %vm1330_vm3 = vcmp.eq.s32.totalorder %v4428_v44, 1 }
 0x2c4   : > { %vm1350_vm10 = vmand %vm1331_vm15, %vm5670_vm9  ;;  %4449 = vset.pattern.permute.xlu1 %v4822_v54 }
 0x2c5   : > { %vm1349_vm5 = vmand %vm1330_vm3, %vm5670_vm9  ;;  %1402 = vperm.xlu1 %4449, %v5768_v6   ;;  %v5844_v25 = vpop.trf.xlu0 }
 0x2c6   : > { %4526 = vset.pattern.permute.xlu0 %v8999_v24  ;;  %vm5827_vm7 = vmand %vm1349_vm5, %vm5676_vm11  ;;  %9165 = vst [vmem:[#allocation41_spill] sm:$0xff] %v5844_v25 }
 0x2c7   : > { %v9159_v12 = vsel %vm5827_vm7, 4294967295, %v9158_v12  ;;  %4451 = vset.pattern.permute.xlu2 %v9014_v18  ;;  %2178 = vperm.xlu0 %4526, %v5686_v57   ;;  %vm5835_vm15 = vmand %vm1350_vm10, %vm5676_vm11 }
 0x2c8   : > { %9160 = vst [vmem:[#allocation38_spill] sm:$0xff] %v9159_v12  ;;  %v9162_v42 = vsel %vm5835_vm15, 4294967295, %v9161_v42  ;;  %v5839_v47 = vpop.permute.xlu1 %961  ;;  %v5841_v61 = vpop.permute.xlu2 %976  ;;  %1026 = vperm.xlu2 %4451, %v5813_v40  }
 0x2c9   : > { %9163 = vst [vmem:[#allocation39_spill] sm:$0xff] %v9162_v42 }
 0x2ca   : > { %9164 = vst [vmem:[#allocation40_spill] sm:$0xff] %v5839_v47 }
 0x2cd   : > { %4452 = vset.pattern.permute.xlu1 %v9014_v18  ;;  %v5858_v50 = vpop.trf.xlu0 }
 0x2ce   : > { %1031 = vperm.xlu1 %4452, %v5844_v25   ;;  %9167 = vst [vmem:[#allocation43_spill] sm:$0xff] %v5858_v50 }
 0x2cf   : > { %2198 = vperm.xlu0 %4526, %v5768_v6  }
 0x2d0   : > { %v4412_v27 = vpop.permute.xlu1 %4411  ;;  %4454 = vset.pattern.permute.xlu2 %v4822_v54 }
 0x2d1   : > { %v4414_v11 = vunpack.i.h.bf16 %v4412_v27  ;;  %v4413_v23 = vunpack.i.l.bf16 %v4412_v27  ;;  %v5850_v15 = vpop.permute.xlu2 %1374  ;;  %1414 = vperm.xlu2 %4454, %v5794_v30   ;;  %v9172_v27 = vmov 0 }
 0x2d2   : > { %9166 = vst [vmem:[#allocation42_spill] sm:$0xff] %v5850_v15  ;;  %v9009_v15 = vmov 5  }
 0x2d3   : > { %vm1324_vm3 = vcmp.eq.s32.totalorder %v4413_v23, 1  ;;  %vm1325_vm10 = vcmp.eq.s32.totalorder %v4414_v11, 1  ;;  %v8997_v11 = vmov 4  }
 0x2d4   : > { %vm1343_vm5 = vmand %vm1324_vm3, %vm5670_vm9 }
 0x2d5   : > { %vm1344_vm8 = vmand %vm1325_vm10, %vm5670_vm9 }
 0x2d6   : > { %4453 = vset.pattern.permute.xlu1 %v4822_v54  ;;  %vm5870_vm3 = vmand %vm1343_vm5, %vm5676_vm11 }
 0x2d7   : > { %2210 = vperm.xlu0 %4526, %v5794_v30   ;;  %1410 = vperm.xlu1 %4453, %v5787_v8   ;;  %v9169_v60 = vsel %vm5870_vm3, 4294967295, %v9168_v60  ;;  %vm5876_vm1 = vmand %vm1344_vm8, %vm5676_vm11 }
 0x2d8   : > { %v5862_v49 = vpop.permute.xlu1 %971 }
 0x2d9   : > { %4455 = vset.pattern.permute.xlu2 %v9014_v18 }
 0x2da   : > { %v5865_v38 = vpop.permute.xlu2 %986  ;;  %1036 = vperm.xlu2 %4455, %v5858_v50  }
 0x2df   : > { %2222 = vperm.xlu0 %4526, %v5813_v40   ;;  %1418 = vperm.xlu1 %4453, %v5801_v26  }
 0x2e0   : > { %v4422_v43 = vpop.permute.xlu1 %4421 }
 0x2e1   : > { %v4424_v35 = vunpack.i.h.bf16 %v4422_v43  ;;  %v4423_v62 = vunpack.i.l.bf16 %v4422_v43  ;;  %v5911_v43 = vstv %s1583_s26 }
 0x2e2   : > { %4456 = vset.pattern.permute.xlu2 %v4822_v54  ;;  %v9174_v54 = vmov 0 }
 0x2e3   : > { %vm1329_vm10 = vcmp.eq.s32.totalorder %v4424_v35, 1  ;;  %vm1328_vm5 = vcmp.eq.s32.totalorder %v4423_v62, 1  ;;  %v5887_v44 = vpop.permute.xlu2 %1382  ;;  %1422 = vperm.xlu2 %4456, %v5806_v39   ;;  %v1601_v35 = vstv %s5881_s25  ;;  %s4830_s25 = smov (%p729_p8), [#allocation8]  }
 0x2e4   : > { %vm1348_vm8 = vmand %vm1329_vm10, %vm5670_vm9  ;;  %vm1602_vm10 = vcmp.ne.s32.totalorder %v9113_v53, %v1601_v35  ;;  %s4034_s26 = sshll.u32 (%p729_p8), %s4830_s25, 4  ;;  %s4035_s26 = int_to_ptr.vmem [resolvable:$true] %s4034_s26 }
 0x2e5   : > { %vm1347_vm7 = vmand %vm1328_vm5, %vm5670_vm9  ;;  %vm1586_vm5 = vcmp.eq.s32.totalorder %v9118_v3, %v5911_v43 }
 0x2e6   : > { %vm5896_vm0 = vmand %vm1347_vm7, %vm5676_vm11  ;;  %vm1585_vm7 = vcmp.eq.s32.totalorder %v9114_v2, %v5911_v43 }
 0x2e7   : > { %v9173_v27 = vsel %vm5896_vm0, 4294967295, %v9172_v27  ;;  %4556 = vset.pattern.permute.xlu0 %v8997_v11  ;;  %1426 = vperm.xlu1 %4453, %v5813_v40   ;;  %vm5904_vm15 = vmand %vm1348_vm8, %vm5676_vm11  ;;  %vm1603_vm8 = vcmp.ne.s32.totalorder %v9117_v0, %v1601_v35 }
 0x2e8   : > { %v9175_v54 = vsel %vm5904_vm15, 4294967295, %v9174_v54  ;;  %v5908_v23 = vpop.permute.xlu1 %981  ;;  %2576 = vperm.xlu0 %4556, %v5686_v57   ;;  %vm1618_vm15 = vmand %vm1585_vm7, %vm1602_vm10 }
 0x2e9   : > { %9176 = vst [vmem:[#allocation44_spill] sm:$0xff] %v9175_v54  ;;  %vm1619_vm14 = vmand %vm1586_vm5, %vm1603_vm8  ;;  %v1652_v59 = vsel %vm1618_vm15, 1, %v9014_v18  ;;  %vm773_vm8 = vcmp.eq.s32.totalorder %v9114_v2, %v5618_v45 }
 0x2ea   : > { %vm1635_vm13 = vmand %vm1619_vm14, %vm9177_vm6 }
 0x2eb   : > { %1430 = vperm.xlu2 %4456, %v5844_v25  }
 0x2ec   : > { %v5918_v62 = vpop.permute.xlu2 %996 }
 0x2ef   : > { %1434 = vperm.xlu1 %4453, %v5858_v50  }
 0x2f0   : > { %v4432_v11 = vpop.permute.xlu1 %4431  ;;  %2596 = vperm.xlu0 %4556, %v5768_v6  }
 0x2f1   : > { %v4434_v24 = vunpack.i.h.bf16 %v4432_v11  ;;  %v4433_v34 = vunpack.i.l.bf16 %v4432_v11  ;;  %v1653_v11 = vsel %vm1635_vm13, 1, %v9014_v18 }
 0x2f3   : > { %vm1333_vm3 = vcmp.eq.s32.totalorder %v4434_v24, 1  ;;  %vm1332_vm12 = vcmp.eq.s32.totalorder %v4433_v34, 1  ;;  %4457 = vset.pattern.permute.xlu2 %v9014_v18  ;;  %v9181_v34 = vmov 0 }
 0x2f4   : > { %vm1352_vm7 = vmand %vm1333_vm3, %vm5670_vm9  ;;  %1669 = vperm.xlu2 %4457, %v1652_v59  }
 0x2f5   : > { %vm1351_vm10 = vmand %vm1332_vm12, %vm5670_vm9  ;;  %v5933_v35 = vpop.permute.xlu2 %1390  ;;  %vm838_vm9 = vcmp.ne.s32.totalorder %v9115_v1, %v5618_v45  ;;  %vm9191_vm12 = vcmp.lt.s32.totalorder %v9116_v56, 12  ;;  %v4379_v45 = vunpack.i.h.bf16 %v5648_v55 }
 0x2f6   : > { %vm5938_vm15 = vmand %vm1351_vm10, %vm5676_vm11  ;;  %vm9197_vm10 = vcmp.lt.s32.totalorder %v9117_v0, 12 }
 0x2f7   : > { %v9179_v16 = vsel %vm5938_vm15, 4294967295, %v9178_v16  ;;  %4458 = vset.pattern.permute.xlu1 %v9014_v18  ;;  %vm5945_vm6 = vmand %vm1352_vm7, %vm5676_vm11  ;;  %vm9216_vm15 = vcmp.lt.s32.totalorder %v9116_v56, 12 }
 0x2f8   : > { %9180 = vst [vmem:[#allocation45_spill] sm:$0xff] %v9179_v16  ;;  %v9182_v34 = vsel %vm5945_vm6, 4294967295, %v9181_v34  ;;  %v5949_v22 = vpop.permute.xlu1 %991  ;;  %2608 = vperm.xlu0 %4556, %v5794_v30   ;;  %1672 = vperm.xlu1 %4458, %v1653_v11   ;;  %vm839_vm13 = vmand %vm838_vm9, %vm9191_vm12 }
 0x2f9   : > { %9183 = vst [vmem:[#allocation46_spill] sm:$0xff] %v9182_v34 }
 0x2fc   : > { %4460 = vperm.xlu2 %4457, %v9014_v18  }
 0x2fe   : > { %v5953_v59 = vpop.permute.xlu2 %1006 }
 0x300   : > { %2620 = vperm.xlu0 %4556, %v5813_v40   ;;  %4465 = vperm.xlu1 %4458, %v9014_v18  }
 0x301   : > { %v5957_v24 = vpop.permute.xlu1 %1378 }
 0x304   : > { %4470 = vperm.xlu2 %4457, %v9014_v18  }
 0x307   : > { %v5960_v47 = vpop.permute.xlu2 %1398 }
 0x308   : > { %4586 = vset.pattern.permute.xlu0 %v9009_v15  ;;  %4475 = vperm.xlu1 %4458, %v9014_v18   ;;  %v9185_v15 = vmov 2  }
 0x309   : > { %2974 = vperm.xlu0 %4586, %v5686_v57   ;;  %v5975_v34 = vpop.permute.xlu0 %1780 }
 0x30a   : > { %v5965_v11 = vpop.permute.xlu1 %1001 }
 0x30c   : > { %4480 = vperm.xlu2 %4457, %v9014_v18  }
 0x310   : > { %v5968_v16 = vpop.permute.xlu2 %1016  ;;  %4485 = vperm.xlu1 %4458, %v9014_v18  }
 0x311   : > { %9184 = vst [vmem:[#allocation47_spill] sm:$0xff] %v5968_v16  ;;  %2994 = vperm.xlu0 %4586, %v5768_v6   ;;  %v5986_v42 = vpop.permute.xlu0 %1800 }
 0x313   : > { %v5972_v54 = vpop.permute.xlu1 %1386 }
 0x314   : > { %4490 = vperm.xlu2 %4457, %v9014_v18  }
 0x318   : > { %4494 = vset.pattern.permute.xlu1 %v9185_v15 }
 0x319   : > { %v5978_v12 = vpop.permute.xlu2 %1406  ;;  %3006 = vperm.xlu0 %4586, %v5794_v30   ;;  %1772 = vperm.xlu1 %4494, %v5657_v20   ;;  %v5995_v63 = vpop.permute.xlu0 %1812 }
 0x31c   : > { %v5982_v41 = vpop.permute.xlu1 %1011  ;;  %4495 = vset.pattern.permute.xlu2 %v9185_v15 }
 0x31d   : > { %1776 = vperm.xlu2 %4495, %v5666_v31  }
 0x321   : > { %3018 = vperm.xlu0 %4586, %v5813_v40   ;;  %1784 = vperm.xlu1 %4494, %v5696_v32  }
 0x322   : > { %v5990_v18 = vpop.permute.xlu2 %1026 }
 0x323   : > { %9186 = vst [vmem:[#allocation48_spill] sm:$0xff] %v5990_v18 }
 0x325   : > { %v5992_v46 = vpop.permute.xlu1 %1394  ;;  %1788 = vperm.xlu2 %4495, %v5710_v36  }
 0x329   : > { %4616 = vset.pattern.permute.xlu0 %v9019_v37  ;;  %1792 = vperm.xlu1 %4494, %v5720_v48  }
 0x32a   : > { %3372 = vperm.xlu0 %4616, %v5686_v57  }
 0x32b   : > { %v6000_v15 = vpop.permute.xlu2 %1414 }
 0x32d   : > { %1796 = vperm.xlu2 %4495, %v5743_v17  }
 0x32e   : > { %v6003_v16 = vpop.permute.xlu1 %1021 }
 0x32f   : > { %9187 = vst [vmem:[#allocation49_spill] sm:$0xff] %v6003_v16  ;;  %v6034_v16 = vperm.slane %v5611_v19, 0 }
 0x330   : > { %v6005_v18 = vpop.permute.xlu0 %1824 }
 0x331   : > { %9188 = vst [vmem:[#allocation50_spill] sm:$0xff] %v6005_v18  ;;  %1804 = vperm.xlu1 %4494, %v5780_v14   ;;  %v9193_v14 = vmov 0   ;;  %v1042_v48 = vsub.f32 %v5862_v49, %v6034_v16 }
 0x332   : > { %3392 = vperm.xlu0 %4616, %v5768_v6   ;;  %v6026_v6 = vstv %s1981_s27  ;;  %v920_v17 = vsel %vm839_vm13, 1, %v9193_v14 }
 0x333   : > { %vm1984_vm14 = vcmp.eq.s32.totalorder %v9118_v3, %v6026_v6  ;;  %v9196_v3 = vstv %s5602_s19 }
 0x334   : > { %v6013_v37 = vpop.permute.xlu2 %1036  ;;  %vm790_vm7 = vcmp.ne.s32.totalorder %v9113_v53, %v9196_v3  ;;  %v4374_v3 = vunpack.i.h.bf16 %v5646_v52 }
 0x335   : > { %9189 = vst [vmem:[#allocation51_spill] sm:$0xff] %v6013_v37  ;;  %1808 = vperm.xlu2 %4495, %v5787_v8   ;;  %v1999_v37 = vstv %s6008_s0  ;;  %vm806_vm13 = vmand %vm773_vm8, %vm790_vm7  ;;  %vm6088_vm8 = vcmp.eq.s32.totalorder %v4379_v45, 1  ;;  %v6193_v45 = vperm.slane %v5611_v19, 2  ;;  %s4831_s0 = smov (%p729_p8), [#allocation9]  }
 0x336   : > { %vm2001_vm3 = vcmp.ne.s32.totalorder %v9117_v0, %v1999_v37  ;;  %s4045_s27 = sshll.u32 (%p729_p8), %s4831_s0, 4  ;;  %s4046_s27 = int_to_ptr.vmem [resolvable:$true] %s4045_s27 }
 0x337   : > { %v6016_v57 = vpop.permute.xlu1 %1402  ;;  %vm2017_vm5 = vmand %vm1984_vm14, %vm2001_vm3  ;;  %vm905_vm14 = vcmp.eq.s32.totalorder %v5661_v21, 1  ;;  %v1045_v21 = vsub.f32 %v5865_v38, %v6034_v16  ;;  %v1044_v38 = vsub.f32 %v5908_v23, %v6034_v16 }
 0x338   : > { %vm2033_vm9 = vmand %vm2017_vm5, %vm9197_vm10  ;;  %vm6121_vm5 = vcmp.eq.s32.totalorder %v4374_v3, 1 }
 0x339   : > { %v6020_v18 = vpop.permute.xlu0 %2178  ;;  %1816 = vperm.xlu1 %4494, %v5801_v26  }
 0x33a   : > { %9190 = vst [vmem:[#allocation52_spill] sm:$0xff] %v6020_v18  ;;  %3404 = vperm.xlu0 %4616, %v5794_v30   ;;  %v921_v18 = vperm.slane %v920_v17, 0  ;;  %v4368_v17 = vunpack.i.h.bf16 %v5650_v51 }
 0x33c   : > { %vm6065_vm12 = vcmp.eq.s32.totalorder %v921_v18, 1  ;;  %vm6077_vm3 = vcmp.eq.s32.totalorder %v4368_v17, 1  ;;  %v9243_v17 = vunpack.i.h.bf16 %v5674_v7 }
 0x33d   : > { %1820 = vperm.xlu2 %4495, %v5806_v39   ;;  %v6030_v8 = vpop.permute.xlu2 %1422  ;;  %v1041_v39 = vsub.f32 %v5809_v5, %v6034_v16  ;;  %vm6095_vm7 = vmand %vm905_vm14, %vm6065_vm12  ;;  %vm6117_vm14 = vcmp.ne.s32.totalorder %v9113_v53, %v1999_v37 }
 0x33e   : > { %9192 = vst [vmem:[#allocation53_spill] sm:$0xff] %v6030_v8  ;;  %v6048_v8 = vperm.slane %v5611_v19, 1 }
 0x340   : > { %v6040_v30 = vpop.permute.xlu1 %1031  ;;  %v1440_v5 = vsub.f32 %v5887_v44, %v6048_v8  ;;  %v4367_v44 = vunpack.i.l.bf16 %v5650_v51  ;;  %v1445_v37 = vsub.f32 %v6016_v57, %v6048_v8  ;;  %v1060_v57 = vadd.f32 0.1, %v1044_v38 }
 0x341   : > { %9194 = vst [vmem:[#allocation54_spill] sm:$0xff] %v6040_v30  ;;  %v6042_v26 = vpop.permute.xlu0 %2198  ;;  %1828 = vperm.xlu1 %4494, %v5844_v25   ;;  %v4373_v30 = vunpack.i.l.bf16 %v5646_v52  ;;  %v1057_v25 = vadd.f32 0.1, %v1041_v39  ;;  %v840_v52 = vsel %vm806_vm13, 1, %v9193_v14  ;;  %vm9217_vm13 = vcmp.ne.s32.totalorder %v9115_v1, %v5911_v43 }
 0x342   : > { %9195 = vst [vmem:[#allocation55_spill] sm:$0xff] %v6042_v26  ;;  %3416 = vperm.xlu0 %4616, %v5813_v40   ;;  %v1043_v26 = vsub.f32 %v5841_v61, %v6034_v16  ;;  %v1456_v36 = vadd.f32 0.1, %v1440_v5  ;;  %vm6135_vm6 = vmand %vm9217_vm13, %vm9216_vm15  ;;  %vm6139_vm11 = vcmp.eq.s32.totalorder %v4367_v44, 1  ;;  %vm9222_vm15 = vcmp.eq.s32.totalorder %v9114_v2, %v6026_v6 }
 0x343   : > { %vm6104_vm10 = vcmp.eq.s32.totalorder %v4373_v30, 1  ;;  %v1073_v5 = vmax.f32 %v1057_v25, 0.0  ;;  %vm9225_vm13 = vmand %vm6077_vm3, %vm6065_vm12  ;;  %v9054_v38 = vmov 0.0   ;;  %v1843_v51 = vsub.f32 %v5986_v42, %v6193_v45 }
 0x344   : > { %v1059_v0 = vadd.f32 0.1, %v1043_v26  ;;  %v1732_v26 = vsel %vm6135_vm6, 1, %v9193_v14 }
 0x345   : > { %1832 = vperm.xlu2 %4495, %v5858_v50   ;;  %v6072_v61 = vpop.permute.xlu2 %1430  ;;  %v2051_v50 = vsel %vm2033_vm9, 1, %v9193_v14 }
 0x346   : > { %9200 = vst [vmem:[#allocation56_spill] sm:$0xff] %v6072_v61  ;;  %v941_v61 = vstv %s6059_s3 }
 0x347   : > { %vm6126_vm9 = vcmp.eq.s32.totalorder %v941_v61, 1  ;;  %v4388_v61 = vunpack.i.l.bf16 %v5652_v28 }
 0x348   : > { %vm944_vm4 = vmand %vm6095_vm7, %vm6126_vm9 }
 0x349   : > { %v6099_v39 = vpop.permute.xlu1 %1410  ;;  %v6101_v49 = vpop.permute.xlu0 %2210  ;;  %4497 = vset.pattern.permute.xlu1 %v9193_v14  ;;  %vm6161_vm7 = vmand %vm9222_vm15, %vm6117_vm14 }
 0x34a   : > { %9207 = vst [vmem:[#allocation57_spill] sm:$0xff] %v6101_v49  ;;  %4617 = vset.pattern.permute.xlu0 %v9193_v14  ;;  %2070 = vperm.xlu1 %4497, %v2051_v50   ;;  %v1075_v49 = vmax.f32 %v1059_v0, 0.0  ;;  %v1058_v50 = vadd.f32 0.1, %v1042_v48  ;;  %v1472_v0 = vmax.f32 %v1456_v36, 0.0  ;;  %v1047_v48 = vsub.f32 %v5918_v62, %v6034_v16  ;;  %vm946_vm0 = vmand %vm9225_vm13, %vm6126_vm9 }
 0x34b   : > { %857 = vperm.xlu0 %4617, %v840_v52   ;;  %v6165_v62 = vsel %vm944_vm4, %v1073_v5, 0.0  ;;  %vm925_vm4 = vmand %vm6139_vm11, %vm6065_vm12 }
 0x34c   : > { %v6190_v18 = vsel %vm946_vm0, %v1075_v49, 0.0  ;;  %v1074_v23 = vmax.f32 %v1058_v50, 0.0  ;;  %v1488_v43 = vsel %vm5733_vm2, %v1472_v0, 0.0  ;;  %v1063_v44 = vadd.f32 0.1, %v1047_v48  ;;  %vm945_vm2 = vmand %vm925_vm4, %vm6126_vm9 }
 0x34d   : > { %4498 = vset.pattern.permute.xlu2 %v9193_v14  ;;  %vm1121_vm0 = vcmp.gt.f32.partialorder %v6165_v62, 1e-16  ;;  %v1061_v49 = vadd.f32 0.1, %v1045_v21  ;;  %v1733_v50 = vperm.slane %v1732_v26, 0  ;;  %v1838_v0 = vsub.f32 %v5975_v34, %v6193_v45  ;;  %vm930_vm14 = vmand %vm6088_vm8, %vm6065_vm12 }
 0x34e   : > { %4500 = vperm.xlu2 %4498, %v9193_v14   ;;  %v6184_v5 = vpop.permute.xlu2 %1669  ;;  %vm1123_vm6 = vcmp.gt.f32.partialorder %v6190_v18, 1e-16  ;;  %v1090_v21 = vsel %vm945_vm2, %v1074_v23, 0.0  ;;  %vm1520_vm3 = vcmp.gt.f32.partialorder %v1488_v43, 1e-16  ;;  %v6229_v26 = vsel %vm1121_vm0, 1.0, %v9054_v38  ;;  %vm927_vm11 = vmand %vm6104_vm10, %vm6065_vm12 }
 0x34f   : > { %9226 = vst [vmem:[#allocation58_spill] sm:$0xff] %v6184_v5  ;;  %v2050_v5 = vsel %vm6161_vm7, 1, %v9193_v14  ;;  %v1461_v48 = vadd.f32 0.1, %v1445_v37  ;;  %v1079_v23 = vmax.f32 %v1063_v44, 0.0  ;;  %v6241_v34 = vsel %vm1123_vm6, 1.0, %v9054_v38  ;;  %vm928_vm13 = vmand %vm6121_vm5, %vm6065_vm12 }
 0x350   : > { %vm6243_vm15 = vcmp.eq.s32.totalorder %v1733_v50, 1  ;;  %vm6247_vm7 = vcmp.eq.s32.totalorder %v1753_v33, 1  ;;  %vm6255_vm4 = vcmp.eq.s32.totalorder %v4388_v61, 1  ;;  %vm1122_vm0 = vcmp.gt.f32.partialorder %v1090_v21, 1e-16  ;;  %vm950_vm6 = vmand %vm930_vm14, %vm6126_vm9 }
 0x351   : > { %v6204_v56 = vpop.permute.xlu1 %1418  ;;  %v6206_v19 = vpop.permute.xlu0 %2222  ;;  %v1076_v50 = vmax.f32 %v1060_v57, 0.0  ;;  %v1854_v61 = vadd.f32 0.1, %v1838_v0  ;;  %v1477_v3 = vmax.f32 %v1461_v48, 0.0  ;;  %v1442_v57 = vsub.f32 %v5933_v35, %v6048_v8  ;;  %vm948_vm2 = vmand %vm928_vm13, %vm6126_vm9 }
 0x352   : > { %9227 = vst [vmem:[#allocation59_spill] sm:$0xff] %v6204_v56  ;;  %4505 = vperm.xlu1 %4497, %v9193_v14   ;;  %v9236_v56 = vunpack.i.l.bf16 %v5648_v55  ;;  %v9239_v48 = vmov 0.0   ;;  %v1050_v35 = vsub.f32 %v5982_v41, %v6034_v16  ;;  %v1448_v55 = vsub.f32 %v6000_v15, %v6048_v8  ;;  %vm947_vm5 = vmand %vm927_vm11, %vm6126_vm9 }
 0x353   : > { %9228 = vst [vmem:[#allocation60_spill] sm:$0xff] %v6206_v19  ;;  %2067 = vperm.xlu0 %4617, %v2050_v5   ;;  %v1077_v5 = vmax.f32 %v1061_v49, 0.0  ;;  %v4094_v49 = vsel %vm1520_vm3, 1.0, %v9054_v38  ;;  %v6275_v38 = vsel %vm950_vm6, %v1079_v23, 0.0  ;;  %v1439_v19 = vsub.f32 %v5957_v24, %v6048_v8 }
 0x354   : > { %vm6285_vm8 = vcmp.eq.s32.totalorder %v9236_v56, 1  ;;  %v1504_v23 = vadd.f32 %v1488_v43, %v1090_v21  ;;  %v6319_v15 = vsel %vm947_vm5, %v1076_v50, 0.0  ;;  %vm1127_vm14 = vcmp.gt.f32.partialorder %v6275_v38, 1e-16 }
 0x355   : > { %v6307_v24 = vsel %vm948_vm2, %v1077_v5, 0.0  ;;  %v1493_v43 = vsel %vm5876_vm1, %v1477_v3, 0.0  ;;  %vm6331_vm10 = vcmp.eq.s32.totalorder %v9243_v17, 1  ;;  %v1458_v5 = vadd.f32 0.1, %v1442_v57  ;;  %vm933_vm2 = vmand %vm6255_vm4, %vm6065_vm12 }
 0x356   : > { %4510 = vperm.xlu2 %4498, %v9193_v14   ;;  %v6262_v33 = vpop.permute.xlu2 %4460  ;;  %v6337_v58 = vadd.f32 0.1, %v1439_v19  ;;  %v1859_v3 = vadd.f32 0.1, %v1843_v51  ;;  %v1049_v50 = vsub.f32 %v5953_v59, %v6034_v16  ;;  %v6352_v17 = vstv %s6273_s30 }
 0x357   : > { %9235 = vst [vmem:[#allocation61_spill] sm:$0xff] %v6262_v33  ;;  %v4462_v52 = vunpack.i.l.bf16 %v6262_v33  ;;  %v4078_v33 = vsel %vm1122_vm0, 1.0, %v9239_v48  ;;  %vm1525_vm0 = vcmp.gt.f32.partialorder %v1493_v43, 1e-16  ;;  %vm9261_vm11 = vnez %v9135_v10 }
 0x358   : > { %v1568_v30 = vadd.f32 %v4094_v49, %v4078_v33  ;;  %v1046_v49 = vsub.f32 %v5949_v22, %v6034_v16  ;;  %v1066_v33 = vadd.f32 0.1, %v1050_v35  ;;  %v4083_v35 = vsel %vm1127_vm14, 1.0, %v9239_v48 }
 0x359   : > { %vm6301_vm3 = vcmp.eq.s32.totalorder %v4462_v52, 1  ;;  %v6305_v42 = vpop.permute.xlu1 %1426  ;;  %v1870_v52 = vmax.f32 %v1854_v61, 0.0  ;;  %v1464_v61 = vadd.f32 0.1, %v1448_v55  ;;  %v1474_v55 = vmax.f32 %v1458_v5, 0.0 }
 0x35a   : > { %v6316_v41 = vpop.permute.xlu0 %2576  ;;  %4515 = vperm.xlu1 %4497, %v9193_v14   ;;  %vm1737_vm13 = vmand %vm6301_vm3, %vm6243_vm15  ;;  %v1875_v5 = vmax.f32 %v1859_v3, 0.0  ;;  %vm2381_vm14 = vcmp.eq.s32.totalorder %v9114_v2, %v6352_v17  ;;  %v9255_v3 = vunpack.i.l.bf16 %v5674_v7  ;;  %v1082_v59 = vmax.f32 %v1066_v33, 0.0 }
 0x35b   : > { %9242 = vst [vmem:[#allocation62_spill] sm:$0xff] %v6316_v41  ;;  %4619 = vperm.xlu0 %4617, %v9193_v14   ;;  %vm1757_vm1 = vmand %vm1737_vm13, %vm6247_vm7  ;;  %v1065_v41 = vadd.f32 0.1, %v1049_v50  ;;  %v9252_v50 = vstv %s6232_s29 }
 0x35c   : > { %v1886_v56 = vsel %vm1757_vm1, %v1870_v52, 0.0  ;;  %vm6386_vm13 = vcmp.ne.s32.totalorder %v9113_v53, %v9252_v50  ;;  %vm6392_vm1 = vcmp.eq.s32.totalorder %v9255_v3, 1  ;;  %v9269_v3 = vunpack.i.h.bf16 %v5652_v28 }
 0x35d   : > { %v6344_v57 = vadd.f32 %v1886_v56, %v1504_v23  ;;  %vm1918_vm6 = vcmp.gt.f32.partialorder %v1886_v56, 1e-16  ;;  %v1444_v23 = vsub.f32 %v5960_v47, %v6048_v8  ;;  %v1062_v56 = vadd.f32 0.1, %v1046_v49 }
 0x35e   : > { %4520 = vperm.xlu2 %4498, %v9193_v14   ;;  %v6347_v22 = vpop.permute.xlu2 %4470  ;;  %v4110_v19 = vsel %vm1918_vm6, 1.0, %v9239_v48  ;;  %v4099_v47 = vsel %vm1525_vm0, 1.0, %v9239_v48  ;;  %v9251_v49 = vmov 3   ;;  %vm6421_vm6 = vmand %vm2381_vm14, %vm6386_vm13  ;;  %v1446_v28 = vsub.f32 %v5978_v12, %v6048_v8 }
 0x35f   : > { %9246 = vst [vmem:[#allocation63_spill] sm:$0xff] %v6344_v57  ;;  %v4473_v51 = vunpack.i.h.bf16 %v6347_v22  ;;  %v6360_v52 = vadd.f32 %v4110_v19, %v1568_v30  ;;  %v1480_v57 = vmax.f32 %v1464_v61, 0.0  ;;  %v1460_v7 = vadd.f32 0.1, %v1444_v23  ;;  %vm9263_vm14 = vmand %vm6285_vm8, %vm6065_vm12 }
 0x360   : > { %v1573_v33 = vadd.f32 %v4099_v47, %v4083_v35  ;;  %vm949_vm13 = vmand %vm9263_vm14, %vm6126_vm9 }
 0x361   : > { %9247 = vst [vmem:[#allocation64_spill] sm:$0xff] %v6360_v52  ;;  %vm6366_vm3 = vcmp.eq.s32.totalorder %v4473_v51, 1  ;;  %v6370_v1 = vpop.permute.xlu1 %1434  ;;  %v1471_v51 = vmax.f32 %v6337_v58, 0.0  ;;  %v1509_v52 = vadd.f32 %v1493_v43, %v6275_v38  ;;  %v1048_v58 = vsub.f32 %v5965_v11, %v6034_v16 }
 0x362   : > { %vm1742_vm5 = vmand %vm6366_vm3, %vm6243_vm15  ;;  %v6378_v30 = vpop.permute.xlu0 %2596  ;;  %4524 = vset.pattern.permute.xlu1 %v9251_v49  ;;  %vm9258_vm3 = vnez %v9173_v27  ;;  %v1078_v11 = vmax.f32 %v1062_v56, 0.0  ;;  %v1081_v27 = vmax.f32 %v1065_v41, 0.0 }
 0x363   : > { %9250 = vst [vmem:[#allocation65_spill] sm:$0xff] %v6378_v30  ;;  %v1846_v30 = vsub.f32 %v5995_v63, %v6193_v45  ;;  %vm1762_vm0 = vmand %vm1742_vm5, %vm6247_vm7  ;;  %4624 = vperm.xlu0 %4617, %v9193_v14   ;;  %2170 = vperm.xlu1 %4524, %v5657_v20   ;;  %v1441_v63 = vsub.f32 %v5972_v54, %v6048_v8  ;;  %v1496_v43 = vsel %vm9258_vm3, %v1480_v57, 0.0  ;;  %v6427_v54 = vsel %vm9261_vm11, %v1474_v55, 0.0 }
 0x364   : > { %v1891_v38 = vsel %vm1762_vm0, %v1875_v5, 0.0  ;;  %vm953_vm0 = vmand %vm933_vm2, %vm6126_vm9  ;;  %v1064_v56 = vadd.f32 0.1, %v1048_v58  ;;  %vm1528_vm4 = vcmp.gt.f32.partialorder %v1496_v43, 1e-16  ;;  %v2448_v5 = vsel %vm6421_vm6, 1, %v9193_v14 }
 0x365   : > { %v6414_v50 = vadd.f32 %v1891_v38, %v1509_v52  ;;  %vm1923_vm5 = vcmp.gt.f32.partialorder %v1891_v38, 1e-16  ;;  %vm932_vm11 = vmand %vm6331_vm10, %vm6065_vm12  ;;  %v1098_v10 = vsel %vm953_vm0, %v1082_v59, 0.0  ;;  %v1862_v41 = vadd.f32 0.1, %v1846_v30 }
 0x366   : > { %v4115_v57 = vsel %vm1923_vm5, 1.0, %v9239_v48  ;;  %4525 = vset.pattern.permute.xlu2 %v9251_v49  ;;  %v6438_v35 = vpop.permute.xlu2 %4480  ;;  %v1476_v52 = vmax.f32 %v1460_v7, 0.0  ;;  %vm9262_vm2 = vcmp.gt.f32.partialorder %v6307_v24, 1e-16  ;;  %vm9264_vm3 = vnez %v9127_v13  ;;  %v9314_v7 = vld [vmem:[#allocation39_spill] sm:$0xff] }
 0x367   : > { %v6444_v55 = vadd.f32 %v4115_v57, %v1573_v33  ;;  %v4482_v36 = vunpack.i.l.bf16 %v6438_v35  ;;  %2174 = vperm.xlu2 %4525, %v5666_v31   ;;  %v6454_v47 = vsel %vm9262_vm2, 1.0, %v9239_v48  ;;  %vm9265_vm5 = vnez %v9124_v29  ;;  %v9303_v29 = vld [vmem:[#allocation32_spill] sm:$0xff] }
 0x368   : > { %vm9266_vm0 = vmand %vm9264_vm3, %vm9265_vm5  ;;  %v1457_v49 = vadd.f32 0.1, %v1441_v63  ;;  %vm6474_vm2 = vcmp.eq.s32.totalorder %v9269_v3, 1  ;;  %vm1522_vm14 = vcmp.gt.f32.partialorder %v6427_v54, 1e-16  ;;  %v6499_v58 = vsel %vm949_vm13, %v1078_v11, 0.0 }
 0x369   : > { %v1487_v30 = vsel %vm9266_vm0, %v1471_v51, 0.0  ;;  %vm6468_vm6 = vcmp.eq.s32.totalorder %v4482_v36, 1  ;;  %vm952_vm3 = vmand %vm932_vm11, %vm6126_vm9  ;;  %vm1130_vm0 = vcmp.gt.f32.partialorder %v1098_v10, 1e-16  ;;  %v9273_v51 = vunpack.i.h.bf16 %v5694_v9  ;;  %v9277_v11 = vld [vmem:[#allocation47_spill] sm:$0xff]  ;;  %v9280_v3 = vld [vmem:[#allocation24_spill] sm:$0xff] }
 0x36a   : > { %v6489_v13 = vpop.permute.xlu0 %2608  ;;  %v6491_v0 = vpop.permute.xlu1 %1672  ;;  %v6501_v21 = vsel %vm952_vm3, %v1081_v27, 0.0  ;;  %v1878_v63 = vmax.f32 %v1862_v41, 0.0  ;;  %v4102_v38 = vsel %vm1528_vm4, 1.0, %v9239_v48  ;;  %vm1745_vm10 = vmand %vm6468_vm6, %vm6243_vm15  ;;  %vm1519_vm11 = vcmp.gt.f32.partialorder %v1487_v30, 1e-16 }
 0x36b   : > { %9272 = vst [vmem:[#allocation66_spill] sm:$0xff] %v6489_v13  ;;  %vm6495_vm8 = vcmp.eq.s32.totalorder %v9273_v51, 1  ;;  %2465 = vperm.xlu0 %4617, %v2448_v5   ;;  %2182 = vperm.xlu1 %4524, %v5696_v32   ;;  %vm9276_vm13 = vnez %v9169_v60  ;;  %v1080_v33 = vmax.f32 %v1064_v56, 0.0  ;;  %v1512_v23 = vadd.f32 %v1496_v43, %v1098_v10  ;;  %vm1765_vm4 = vmand %vm1745_vm10, %vm6247_vm7  ;;  %v9279_v5 = vld [vmem:[#allocation48_spill] sm:$0xff] }
 0x36c   : > { %v1492_v12 = vsel %vm9276_vm13, %v1476_v52, 0.0  ;;  %v1051_v27 = vsub.f32 %v9277_v11, %v6034_v16  ;;  %v1473_v57 = vmax.f32 %v1457_v49, 0.0  ;;  %v4086_v41 = vsel %vm1130_vm0, 1.0, %v9239_v48  ;;  %vm931_vm6 = vmand %vm6392_vm1, %vm6065_vm12 }
 0x36d   : > { %v1894_v36 = vsel %vm1765_vm4, %v1878_v63, 0.0  ;;  %v1462_v60 = vadd.f32 0.1, %v1446_v28  ;;  %v1576_v52 = vadd.f32 %v4102_v38, %v4086_v41  ;;  %v1053_v49 = vsub.f32 %v9279_v5, %v6034_v16  ;;  %v9283_v41 = vld [vmem:[#allocation27_spill] sm:$0xff]  ;;  %vm934_vm1 = vmand %vm6474_vm2, %vm6065_vm12 }
 0x36e   : > { %v6525_v56 = vadd.f32 %v1894_v36, %v1512_v23  ;;  %vm1926_vm3 = vcmp.gt.f32.partialorder %v1894_v36, 1e-16  ;;  %v6527_v43 = vpop.permute.xlu2 %4490  ;;  %v1443_v10 = vsub.f32 %v5992_v46, %v6048_v8  ;;  %vm9281_vm0 = vcmp.gt.f32.partialorder %v6319_v15, 1e-16 }
 0x36f   : > { %v4118_v61 = vsel %vm1926_vm3, 1.0, %v9239_v48  ;;  %2186 = vperm.xlu2 %4525, %v9280_v3   ;;  %v4080_v28 = vsel %vm9281_vm0, 1.0, %v9239_v48  ;;  %v4096_v51 = vsel %vm1522_vm14, 1.0, %v9239_v48  ;;  %vm1126_vm10 = vcmp.gt.f32.partialorder %v6499_v58, 1e-16  ;;  %vm951_vm14 = vmand %vm931_vm6, %vm6126_vm9 }
 0x370   : > { %9278 = vst [vmem:[#allocation47_spill] sm:$0xff] %v6525_v56  ;;  %v6545_v63 = vadd.f32 %v4118_v61, %v1576_v52  ;;  %v6549_v38 = vadd.f32 %v6427_v54, %v6319_v15  ;;  %vm1129_vm13 = vcmp.gt.f32.partialorder %v6501_v21, 1e-16  ;;  %v4093_v46 = vsel %vm1519_vm11, 1.0, %v9239_v48 }
 0x371   : > { %v1067_v23 = vadd.f32 0.1, %v1051_v27  ;;  %vm1524_vm4 = vcmp.gt.f32.partialorder %v1492_v12, 1e-16  ;;  %v6561_v11 = vsel %vm951_vm14, %v1080_v33, 0.0  ;;  %vm9284_vm3 = vnez %v9283_v41  ;;  %v9286_v27 = vld [vmem:[#allocation25_spill] sm:$0xff] }
 0x372   : > { %9282 = vst [vmem:[#allocation48_spill] sm:$0xff] %v6545_v63  ;;  %v1489_v15 = vsel %vm9284_vm3, %v1473_v57, 0.0  ;;  %v1478_v54 = vmax.f32 %v1462_v60, 0.0  ;;  %v6565_v36 = vpop.permute.xlu0 %2620  ;;  %v6567_v52 = vpop.permute.xlu1 %4465  ;;  %v6569_v5 = vadd.f32 %v4096_v51, %v4080_v28  ;;  %v4082_v19 = vsel %vm1126_vm10, 1.0, %v9239_v48  ;;  %vm936_vm10 = vmand %vm6495_vm8, %vm6065_vm12 }
 0x373   : > { %9285 = vst [vmem:[#allocation27_spill] sm:$0xff] %v6565_v36  ;;  %v1069_v61 = vadd.f32 0.1, %v1053_v49  ;;  %v1459_v13 = vadd.f32 0.1, %v1443_v10  ;;  %4629 = vperm.xlu0 %4617, %v9193_v14   ;;  %2190 = vperm.xlu1 %4524, %v9286_v27   ;;  %v6577_v33 = vsel %vm1129_vm13, 1.0, %v9239_v48  ;;  %v1503_v57 = vadd.f32 %v1487_v30, %v6165_v62  ;;  %vm956_vm3 = vmand %vm936_vm10, %vm6126_vm9 }
 0x374   : > { %v6581_v60 = vadd.f32 %v4093_v46, %v6229_v26  ;;  %v1451_v49 = vsub.f32 %v6305_v42, %v6048_v8  ;;  %v9287_v10 = vunpack.i.l.bf16 %v5694_v9  ;;  %v4098_v62 = vsel %vm1524_vm4, 1.0, %v9239_v48  ;;  %v9290_v42 = vld [vmem:[#allocation28_spill] sm:$0xff]  ;;  %v9292_v9 = vld [vmem:[#allocation49_spill] sm:$0xff]  ;;  %vm954_vm4 = vmand %vm934_vm1, %vm6126_vm9 }
 0x375   : > { %vm1128_vm6 = vcmp.gt.f32.partialorder %v6561_v11, 1e-16  ;;  %v1083_v26 = vmax.f32 %v1067_v23, 0.0  ;;  %vm1521_vm0 = vcmp.gt.f32.partialorder %v1489_v15, 1e-16  ;;  %vm9291_vm13 = vnez %v9290_v42  ;;  %v9294_v23 = vld [vmem:[#allocation26_spill] sm:$0xff] }
 0x376   : > { %vm6591_vm11 = vcmp.eq.s32.totalorder %v9287_v10, 1  ;;  %v6604_v30 = vsel %vm9291_vm13, %v1478_v54, 0.0  ;;  %v1052_v51 = vsub.f32 %v9292_v9, %v6034_v16  ;;  %v6609_v46 = vstv %s6530_s7 }
 0x377   : > { %9293 = vst [vmem:[#allocation28_spill] sm:$0xff] %v6609_v46  ;;  %v9059_v41 = vstv %s6511_s6  ;;  %v1085_v10 = vmax.f32 %v1069_v61, 0.0  ;;  %v1475_v36 = vmax.f32 %v1459_v13, 0.0  ;;  %vm1717_vm14 = vcmp.eq.s32.totalorder %v6491_v0, 1  ;;  %2194 = vperm.xlu2 %4525, %v9294_v23   ;;  %v1777_v63 = vpop.permute.xlu2 %1776 }
 0x378   : > { %v6615_v56 = vadd.f32 %v1492_v12, %v6499_v58  ;;  %v4084_v54 = vsel %vm1128_vm6, 1.0, %v9239_v48  ;;  %v1467_v61 = vadd.f32 0.1, %v1451_v49  ;;  %v1837_v13 = vsub.f32 %v1777_v63, %v6193_v45  ;;  %vm6653_vm8 = vmand %vm1717_vm14, %vm6243_vm15 }
 0x379   : > { %v6626_v42 = vsel %vm954_vm4, %v1083_v26, 0.0  ;;  %v4095_v9 = vsel %vm1521_vm0, 1.0, %v9239_v48  ;;  %vm2779_vm2 = vcmp.eq.s32.totalorder %v9114_v2, %v6609_v46  ;;  %vm6642_vm1 = vcmp.ne.s32.totalorder %v9113_v53, %v9059_v41  ;;  %v9299_v41 = vld [vmem:[#allocation29_spill] sm:$0xff]  ;;  %vm1756_vm14 = vmand %vm6653_vm8, %vm6247_vm7 }
 0x37a   : > { %v6646_v58 = vadd.f32 %v4098_v62, %v4082_v19  ;;  %vm1526_vm6 = vcmp.gt.f32.partialorder %v6604_v30, 1e-16  ;;  %v1068_v12 = vadd.f32 0.1, %v1052_v51  ;;  %v1853_v63 = vadd.f32 0.1, %v1837_v13  ;;  %v6657_v49 = vpop.permute.xlu1 %4475  ;;  %vm6683_vm10 = vmand %vm2779_vm2, %vm6642_vm1 }
 0x37b   : > { %v6659_v26 = vsel %vm956_vm3, %v1085_v10, 0.0  ;;  %vm9300_vm0 = vnez %v9299_v41  ;;  %v9301_v62 = vld [vmem:[#allocation50_spill] sm:$0xff]  ;;  %v4467_v23 = vunpack.i.l.bf16 %v6567_v52  ;;  %4634 = vperm.xlu0 %4617, %v9193_v14   ;;  %v6669_v0 = vpop.permute.xlu0 %2974  ;;  %2202 = vperm.xlu1 %4524, %v9303_v29   ;;  %v6673_v13 = vadd.f32 %v1489_v15, %v6190_v18  ;;  %v9339_v29 = vld [vmem:[#allocation61_spill] sm:$0xff] }
 0x37c   : > { %v6663_v19 = vsel %vm9300_vm0, %v1475_v36, 0.0  ;;  %v1849_v51 = vsub.f32 %v9301_v62, %v6193_v45  ;;  %9302 = vst [vmem:[#allocation49_spill] sm:$0xff] %v6669_v0  ;;  %v6676_v10 = vadd.f32 %v4095_v9, %v6241_v34  ;;  %v1483_v41 = vmax.f32 %v1467_v61, 0.0  ;;  %v9309_v34 = vld [vmem:[#allocation51_spill] sm:$0xff] }
 0x37d   : > { %v1869_v36 = vmax.f32 %v1853_v63, 0.0  ;;  %v9306_v0 = vunpack.i.h.bf16 %v5663_v4  ;;  %v4100_v18 = vsel %vm1526_vm6, 1.0, %v9239_v48  ;;  %v1055_v15 = vsub.f32 %v9309_v34, %v6034_v16  ;;  %v4699_v61 = vld [vmem:[%s5608_s21] sm:$0xff]  ;;  %vm935_vm6 = vmand %vm6591_vm11, %vm6065_vm12 }
 0x37e   : > { %v6699_v9 = vperm.slane %v4699_v61, 3  ;;  %v1447_v59 = vsub.f32 %v6099_v39, %v6048_v8  ;;  %vm1133_vm4 = vcmp.gt.f32.partialorder %v6659_v26, 1e-16  ;;  %vm1523_vm3 = vcmp.gt.f32.partialorder %v6663_v19, 1e-16  ;;  %v9313_v39 = vld [vmem:[#allocation33_spill] sm:$0xff] }
 0x37f   : > { %vm6689_vm13 = vcmp.eq.s32.totalorder %v9306_v0, 1  ;;  %v1084_v63 = vmax.f32 %v1068_v12, 0.0  ;;  %v1885_v0 = vsel %vm1756_vm14, %v1869_v36, 0.0  ;;  %v1865_v46 = vadd.f32 0.1, %v1849_v51  ;;  %2206 = vperm.xlu2 %4525, %v9313_v39   ;;  %v1789_v27 = vpop.permute.xlu2 %1788 }
 0x380   : > { %vm6709_vm2 = vcmp.eq.s32.totalorder %v4467_v23, 1  ;;  %v6713_v61 = vadd.f32 %v1885_v0, %v1503_v57  ;;  %vm1917_vm1 = vcmp.gt.f32.partialorder %v1885_v0, 1e-16  ;;  %vm9315_vm8 = vnez %v9314_v7  ;;  %v9316_v0 = vld [vmem:[#allocation53_spill] sm:$0xff] }
 0x381   : > { %v1499_v12 = vsel %vm9315_vm8, %v1483_v41, 0.0  ;;  %v4109_v23 = vsel %vm1917_vm1, 1.0, %v9239_v48  ;;  %v1840_v51 = vsub.f32 %v1789_v27, %v6193_v45  ;;  %v2846_v57 = vsel %vm6683_vm10, 1, %v9193_v14  ;;  %vm1739_vm0 = vmand %vm6709_vm2, %vm6243_vm15 }
 0x382   : > { %9312 = vst [vmem:[#allocation29_spill] sm:$0xff] %v6713_v61  ;;  %v6727_v36 = vadd.f32 0.1, %v1055_v15  ;;  %v1450_v39 = vsub.f32 %v9316_v0, %v6048_v8  ;;  %v1463_v61 = vadd.f32 0.1, %v1447_v59  ;;  %v6732_v3 = vadd.f32 %v4109_v23, %v6581_v60  ;;  %v6746_v15 = vpop.permute.xlu1 %4485  ;;  %vm955_vm10 = vmand %vm935_vm6, %vm6126_vm9  ;;  %v9320_v23 = vld [vmem:[#allocation15_spill] sm:$0xff] }
 0x383   : > { %v6736_v41 = vadd.f32 %v6604_v30, %v6561_v11  ;;  %v6738_v7 = vadd.f32 %v4100_v18, %v4084_v54  ;;  %v4472_v27 = vunpack.i.l.bf16 %v6347_v22  ;;  %v1856_v62 = vadd.f32 0.1, %v1840_v51  ;;  %2863 = vperm.xlu0 %4617, %v2846_v57   ;;  %v6762_v30 = vpop.permute.xlu0 %2994  ;;  %v9319_v54 = vld [vmem:[#allocation35_spill] sm:$0xff]  ;;  %vm1759_vm11 = vmand %vm1739_vm0, %vm6247_vm7  ;;  %v9325_v57 = vld [vmem:[#allocation17_spill] sm:$0xff] }
 0x384   : > { %9317 = vst [vmem:[#allocation50_spill] sm:$0xff] %v6732_v3  ;;  %v4089_v60 = vsel %vm1133_vm4, 1.0, %v9239_v48  ;;  %v4097_v11 = vsel %vm1523_vm3, 1.0, %v9239_v48  ;;  %vm1531_vm14 = vcmp.gt.f32.partialorder %v1499_v12, 1e-16  ;;  %v4488_v22 = vunpack.i.h.bf16 %v6746_v15  ;;  %2214 = vperm.xlu1 %4524, %v9319_v54  }
 0x385   : > { %9318 = vst [vmem:[#allocation51_spill] sm:$0xff] %v6762_v30  ;;  %v6765_v18 = vsel %vm955_vm10, %v1084_v63, 0.0  ;;  %v1881_v59 = vmax.f32 %v1865_v46, 0.0  ;;  %vm2048_vm4 = vcmp.ne.s32.totalorder %v9320_v23, %v6026_v6  ;;  %v1872_v28 = vmax.f32 %v1856_v62, 0.0  ;;  %vm938_vm10 = vmand %vm6689_vm13, %vm6065_vm12 }
 0x386   : > { %v1087_v51 = vmax.f32 %v6727_v36, 0.0  ;;  %v6773_v0 = vadd.f32 0.1, %v1450_v39  ;;  %v1479_v3 = vmax.f32 %v1463_v61, 0.0  ;;  %vm1729_vm3 = vcmp.eq.s32.totalorder %v4488_v22, 1  ;;  %v9327_v22 = vld [vmem:[#allocation20_spill] sm:$0xff] }
 0x387   : > { %v1515_v46 = vadd.f32 %v1499_v12, %v6659_v26  ;;  %v4105_v63 = vsel %vm1531_vm14, 1.0, %v9239_v48  ;;  %vm6789_vm1 = vcmp.eq.s32.totalorder %v4472_v27, 1  ;;  %v1888_v39 = vsel %vm1759_vm11, %v1872_v28, 0.0  ;;  %vm1748_vm6 = vmand %vm1729_vm3, %vm6243_vm15  ;;  %v9324_v26 = vld [vmem:[#allocation36_spill] sm:$0xff]  ;;  %v1797_v12 = vpop.permute.xlu2 %1796  ;;  %v9344_v61 = vld [vmem:[#allocation43_spill] sm:$0xff] }
 0x388   : > { %v6796_v34 = vadd.f32 %v1888_v39, %v6549_v38  ;;  %vm1920_vm2 = vcmp.gt.f32.partialorder %v1888_v39, 1e-16  ;;  %vm1768_vm8 = vmand %vm1748_vm6, %vm6247_vm7  ;;  %2218 = vperm.xlu2 %4525, %v9324_v26   ;;  %vm2382_vm0 = vcmp.eq.s32.totalorder %v9325_v57, %v6352_v17  ;;  %v1842_v27 = vsub.f32 %v1797_v12, %v6193_v45  ;;  %v9330_v39 = vld [vmem:[#allocation18_spill] sm:$0xff] }
 0x389   : > { %v4112_v38 = vsel %vm1920_vm2, 1.0, %v9239_v48  ;;  %v1897_v36 = vsel %vm1768_vm8, %v1881_v59, 0.0  ;;  %v9326_v62 = vstv %s6232_s29  ;;  %vm9331_vm11 = vcmp.lt.s32.totalorder %v9330_v39, 12  ;;  %vm1741_vm8 = vmand %vm6789_vm1, %vm6243_vm15 }
 0x38a   : > { %9323 = vst [vmem:[#allocation39_spill] sm:$0xff] %v6796_v34  ;;  %vm6815_vm14 = vcmp.ne.s32.totalorder %v9327_v22, %v9326_v62  ;;  %vm6824_vm3 = vmand %vm2048_vm4, %vm9331_vm11  ;;  %v1579_v26 = vadd.f32 %v4105_v63, %v4089_v60  ;;  %v6829_v59 = vadd.f32 %v4112_v38, %v6569_v5  ;;  %v6831_v12 = vadd.f32 %v1897_v36, %v1515_v46  ;;  %v9334_v62 = vld [vmem:[#allocation31_spill] sm:$0xff]  ;;  %v9337_v38 = vld [vmem:[#allocation41_spill] sm:$0xff] }
 0x38b   : > { %vm1929_vm6 = vcmp.gt.f32.partialorder %v1897_v36, 1e-16  ;;  %vm9335_vm2 = vnez %v9334_v62  ;;  %v4478_v6 = vunpack.i.h.bf16 %v6657_v49  ;;  %v1858_v54 = vadd.f32 0.1, %v1842_v27  ;;  %4639 = vperm.xlu0 %4617, %v9193_v14   ;;  %v6855_v36 = vpop.permute.xlu1 %1772  ;;  %vm2415_vm4 = vmand %vm2382_vm0, %vm6815_vm14 }
 0x38c   : > { %v1495_v34 = vsel %vm9335_vm2, %v1479_v3, 0.0  ;;  %v4121_v39 = vsel %vm1929_vm6, 1.0, %v9239_v48  ;;  %v6843_v5 = vadd.f32 %v6663_v19, %v6307_v24  ;;  %v6846_v60 = vadd.f32 %v4097_v11, %v6454_v47  ;;  %v6852_v3 = vpop.permute.xlu0 %3006  ;;  %2226 = vperm.xlu1 %4524, %v9337_v38   ;;  %vm958_vm6 = vmand %vm938_vm10, %vm6126_vm9  ;;  %v9338_v24 = vld [vmem:[#allocation52_spill] sm:$0xff] }
 0x38d   : > { %v6849_v63 = vadd.f32 %v4121_v39, %v1579_v26  ;;  %9336 = vst [vmem:[#allocation53_spill] sm:$0xff] %v6852_v3  ;;  %vm1132_vm11 = vcmp.gt.f32.partialorder %v6765_v18, 1e-16  ;;  %v2236_v47 = vsub.f32 %v9338_v24, %v6699_v9  ;;  %v6875_v19 = vsel %vm6824_vm3, 1, %v9193_v14  ;;  %vm1761_vm13 = vmand %vm1741_vm8, %vm6247_vm7 }
 0x38e   : > { %v1874_v11 = vmax.f32 %v1858_v54, 0.0  ;;  %v6877_v26 = vsel %vm958_vm6, %v1087_v51, 0.0  ;;  %v1482_v27 = vmax.f32 %v6773_v0, 0.0  ;;  %vm1527_vm0 = vcmp.gt.f32.partialorder %v1495_v34, 1e-16 }
 0x38f   : > { %v4463_v28 = vunpack.i.h.bf16 %v9339_v29  ;;  %v1453_v30 = vsub.f32 %v6370_v1, %v6048_v8  ;;  %vm6890_vm10 = vcmp.eq.s32.totalorder %v4478_v6, 1  ;;  %vm9342_vm14 = vcmp.lt.s32.totalorder %v9327_v22, 12  ;;  %v1809_v39 = vpop.permute.xlu2 %1808 }
 0x390   : > { %v1890_v51 = vsel %vm1761_vm13, %v1874_v11, 0.0  ;;  %vm2431_vm3 = vmand %vm2415_vm4, %vm9342_vm14  ;;  %2230 = vperm.xlu2 %4525, %v9344_v61   ;;  %v6901_v62 = vstv %s6804_s2  ;;  %v6907_v1 = vsel %vm1132_vm11, 1.0, %v9239_v48  ;;  %vm1135_vm1 = vcmp.gt.f32.partialorder %v6877_v26, 1e-16  ;;  %v9346_v11 = vld [vmem:[#allocation38_spill] sm:$0xff] }
 0x391   : > { %v6897_v0 = vadd.f32 %v1890_v51, %v6615_v56  ;;  %vm1922_vm2 = vcmp.gt.f32.partialorder %v1890_v51, 1e-16  ;;  %9345 = vst [vmem:[#allocation52_spill] sm:$0xff] %v6901_v62  ;;  %v1845_v56 = vsub.f32 %v1809_v39, %v6193_v45  ;;  %vm9347_vm8 = vnez %v9346_v11  ;;  %vm1744_vm4 = vmand %vm6890_vm10, %vm6243_vm15 }
 0x392   : > { %v4114_v6 = vsel %vm1922_vm2, 1.0, %v9239_v48  ;;  %v1498_v29 = vsel %vm9347_vm8, %v1482_v27, 0.0  ;;  %v4101_v51 = vsel %vm1527_vm0, 1.0, %v9239_v48  ;;  %v2449_v24 = vsel %vm2431_vm3, 1, %v9193_v14  ;;  %vm1764_vm13 = vmand %vm1744_vm4, %vm6247_vm7 }
 0x393   : > { %9343 = vst [vmem:[#allocation31_spill] sm:$0xff] %v6897_v0  ;;  %v6921_v46 = vadd.f32 %v4114_v6, %v6646_v58  ;;  %v1469_v3 = vadd.f32 0.1, %v1453_v30  ;;  %v1861_v61 = vadd.f32 0.1, %v1845_v56  ;;  %vm3177_vm11 = vcmp.eq.s32.totalorder %v9114_v2, %v6901_v62  ;;  %4644 = vperm.xlu0 %4617, %v9193_v14   ;;  %v1785_v56 = vpop.permute.xlu1 %1784 }
 0x394   : > { %v9349_v39 = vstv %s6770_s8  ;;  %v6933_v11 = vadd.f32 0.1, %v2236_v47  ;;  %vm6936_vm0 = vcmp.eq.s32.totalorder %v4463_v28, 1  ;;  %v4487_v30 = vunpack.i.l.bf16 %v6746_v15  ;;  %v6942_v6 = vpop.permute.xlu0 %3018  ;;  %4527 = vset.pattern.permute.xlu1 %v9193_v14 }
 0x395   : > { %9348 = vst [vmem:[#allocation61_spill] sm:$0xff] %v6921_v46  ;;  %vm6929_vm6 = vcmp.ne.s32.totalorder %v9113_v53, %v9349_v39  ;;  %v6948_v47 = vsel %vm1135_vm1, 1.0, %v9239_v48  ;;  %v1877_v15 = vmax.f32 %v1861_v61, 0.0  ;;  %v1839_v28 = vsub.f32 %v1785_v56, %v6193_v45  ;;  %2468 = vperm.xlu1 %4527, %v2449_v24   ;;  %v9355_v39 = vld [vmem:[#allocation54_spill] sm:$0xff]  ;;  %vm1738_vm10 = vmand %vm6936_vm0, %vm6243_vm15 }
 0x396   : > { %9354 = vst [vmem:[#allocation38_spill] sm:$0xff] %v6942_v6  ;;  %vm1530_vm14 = vcmp.gt.f32.partialorder %v1498_v29, 1e-16  ;;  %v1054_v0 = vsub.f32 %v9355_v39, %v6034_v16  ;;  %v1511_v6 = vadd.f32 %v1495_v34, %v6501_v21  ;;  %v1575_v46 = vadd.f32 %v4101_v51, %v6577_v33  ;;  %vm3210_vm3 = vmand %vm3177_vm11, %vm6929_vm6 }
 0x397   : > { %v1485_v54 = vmax.f32 %v1469_v3, 0.0  ;;  %v4468_v61 = vunpack.i.h.bf16 %v6567_v52  ;;  %v1893_v24 = vsel %vm1764_vm13, %v1877_v15, 0.0  ;;  %v1855_v56 = vadd.f32 0.1, %v1839_v28  ;;  %v1821_v34 = vpop.permute.xlu2 %1820  ;;  %v9361_v28 = vld [vmem:[#allocation55_spill] sm:$0xff]  ;;  %vm1758_vm4 = vmand %vm1738_vm10, %vm6247_vm7 }
 0x398   : > { %vm6972_vm2 = vcmp.eq.s32.totalorder %v4487_v30, 1  ;;  %v6976_v33 = vadd.f32 %v1893_v24, %v1511_v6  ;;  %vm1925_vm1 = vcmp.gt.f32.partialorder %v1893_v24, 1e-16  ;;  %4528 = vset.pattern.permute.xlu2 %v9193_v14  ;;  %v1848_v39 = vsub.f32 %v1821_v34, %v6193_v45  ;;  %v9363_v34 = vld [vmem:[#allocation46_spill] sm:$0xff] }
 0x399   : > { %v4117_v51 = vsel %vm1925_vm1, 1.0, %v9239_v48  ;;  %v1871_v27 = vmax.f32 %v1855_v56, 0.0  ;;  %4530 = vperm.xlu2 %4528, %v9193_v14   ;;  %v3244_v52 = vsel %vm3210_vm3, 1, %v9193_v14  ;;  %v9358_v3 = vunpack.i.l.bf16 %v5663_v4  ;;  %vm1747_vm11 = vmand %vm6972_vm2, %vm6243_vm15 }
 0x39a   : > { %v1514_v6 = vadd.f32 %v1498_v29, %v6765_v18  ;;  %v6990_v15 = vadd.f32 0.1, %v1054_v0  ;;  %v2241_v24 = vsub.f32 %v9361_v28, %v6699_v9  ;;  %v6994_v56 = vadd.f32 %v4117_v51, %v1575_v46 }
 0x39b   : > { %vm6985_vm8 = vcmp.eq.s32.totalorder %v9358_v3, 1  ;;  %v4104_v4 = vsel %vm1530_vm14, 1.0, %v9239_v48  ;;  %v4493_v18 = vunpack.i.h.bf16 %v6527_v43  ;;  %v1887_v46 = vsel %vm1758_vm4, %v1871_v27, 0.0  ;;  %3261 = vperm.xlu0 %4617, %v3244_v52   ;;  %v1793_v3 = vpop.permute.xlu1 %1792  ;;  %vm1767_vm14 = vmand %vm1747_vm11, %vm6247_vm7 }
 0x39c   : > { %9362 = vst [vmem:[#allocation54_spill] sm:$0xff] %v6994_v56  ;;  %v1864_v0 = vadd.f32 0.1, %v1848_v39  ;;  %vm9364_vm6 = vnez %v9363_v34  ;;  %vm7012_vm13 = vcmp.eq.s32.totalorder %v4468_v61, 1  ;;  %v7017_v29 = vadd.f32 %v1887_v46, %v6673_v13  ;;  %v7021_v27 = vpop.permute.xlu0 %3372  ;;  %v9368_v13 = vld [vmem:[#allocation56_spill] sm:$0xff]  ;;  %v9369_v39 = vld [vmem:[#allocation59_spill] sm:$0xff] }
 0x39d   : > { %v1501_v58 = vsel %vm9364_vm6, %v1485_v54, 0.0  ;;  %vm1919_vm0 = vcmp.gt.f32.partialorder %v1887_v46, 1e-16  ;;  %v1841_v56 = vsub.f32 %v1793_v3, %v6193_v45  ;;  %9367 = vst [vmem:[#allocation55_spill] sm:$0xff] %v7021_v27  ;;  %4535 = vperm.xlu1 %4527, %v9193_v14   ;;  %v1578_v54 = vadd.f32 %v4104_v4, %v6907_v1  ;;  %vm1740_vm1 = vmand %vm7012_vm13, %vm6243_vm15  ;;  %v9435_v27 = vld [vmem:[#allocation18_spill] sm:$0xff] }
 0x39e   : > { %v4111_v28 = vsel %vm1919_vm0, 1.0, %v9239_v48  ;;  %v1880_v62 = vmax.f32 %v1864_v0, 0.0  ;;  %v1452_v61 = vsub.f32 %v9368_v13, %v6048_v8  ;;  %v1449_v52 = vsub.f32 %v9369_v39, %v6048_v8  ;;  %vm1760_vm2 = vmand %vm1740_vm1, %vm6247_vm7 }
 0x39f   : > { %v7033_v46 = vadd.f32 %v4111_v28, %v6676_v10  ;;  %vm1533_vm3 = vcmp.gt.f32.partialorder %v1501_v58, 1e-16  ;;  %vm7042_vm10 = vcmp.eq.s32.totalorder %v4493_v18, 1  ;;  %v1857_v4 = vadd.f32 0.1, %v1841_v56  ;;  %v1833_v21 = vpop.permute.xlu2 %1832  ;;  %vm937_vm1 = vmand %vm6985_vm8, %vm6065_vm12 }
 0x3a0   : > { %v1896_v10 = vsel %vm1767_vm14, %v1880_v62, 0.0  ;;  %v4477_v0 = vunpack.i.l.bf16 %v6657_v49  ;;  %v1851_v28 = vsub.f32 %v1833_v21, %v6193_v45  ;;  %v7059_v13 = vadd.f32 0.1, %v2241_v24  ;;  %vm1750_vm11 = vmand %vm7042_vm10, %vm6243_vm15 }
 0x3a1   : > { %v7051_v34 = vadd.f32 %v1896_v10, %v1514_v6  ;;  %vm1928_vm4 = vcmp.gt.f32.partialorder %v1896_v10, 1e-16  ;;  %v1873_v3 = vmax.f32 %v1857_v4, 0.0  ;;  %4540 = vperm.xlu2 %4528, %v9193_v14   ;;  %v1468_v39 = vadd.f32 0.1, %v1452_v61 }
 0x3a2   : > { %v4120_v18 = vsel %vm1928_vm4, 1.0, %v9239_v48  ;;  %v1465_v62 = vadd.f32 0.1, %v1449_v52  ;;  %v1086_v49 = vmax.f32 %v6990_v15, 0.0  ;;  %v4483_v6 = vunpack.i.h.bf16 %v6438_v35 }
 0x3a3   : > { %v7061_v56 = vadd.f32 %v4120_v18, %v1578_v54  ;;  %v1889_v24 = vsel %vm1760_vm2, %v1873_v3, 0.0  ;;  %v1867_v54 = vadd.f32 0.1, %v1851_v28  ;;  %vm1131_vm6 = vcmp.gt.f32.partialorder %v6626_v42, 1e-16  ;;  %4649 = vperm.xlu0 %4617, %v9193_v14   ;;  %v1805_v10 = vpop.permute.xlu1 %1804 }
 0x3a4   : > { %v9372_v51 = vperm.slane %v6875_v19, 0  ;;  %v4107_v15 = vsel %vm1533_vm3, 1.0, %v9239_v48  ;;  %vm7085_vm13 = vcmp.eq.s32.totalorder %v4477_v0, 1  ;;  %v7090_v52 = vadd.f32 %v1889_v24, %v6843_v5  ;;  %v7105_v18 = vpop.permute.xlu0 %3392  ;;  %vm1770_vm3 = vmand %vm1750_vm11, %vm6247_vm7 }
 0x3a5   : > { %vm1921_vm14 = vcmp.gt.f32.partialorder %v1889_v24, 1e-16  ;;  %v9377_v19 = vstv %s6784_s9  ;;  %v1883_v21 = vmax.f32 %v1867_v54, 0.0  ;;  %v1844_v5 = vsub.f32 %v1805_v10, %v6193_v45  ;;  %9380 = vst [vmem:[#allocation46_spill] sm:$0xff] %v7105_v18  ;;  %4545 = vperm.xlu1 %4527, %v9193_v14   ;;  %vm1743_vm2 = vmand %vm7085_vm13, %vm6243_vm15 }
 0x3a6   : > { %vm7079_vm0 = vcmp.eq.s32.totalorder %v9372_v51, 1  ;;  %vm7099_vm4 = vcmp.eq.s32.totalorder %v9377_v19, 1  ;;  %v4113_v0 = vsel %vm1921_vm14, 1.0, %v9239_v48  ;;  %v1484_v3 = vmax.f32 %v1468_v39, 0.0  ;;  %vm957_vm14 = vmand %vm937_vm1, %vm6126_vm9  ;;  %v9384_v19 = vld [vmem:[#allocation44_spill] sm:$0xff] }
 0x3a7   : > { %v1481_v28 = vmax.f32 %v1465_v62, 0.0  ;;  %v1517_v24 = vadd.f32 %v1501_v58, %v6877_v26  ;;  %v7110_v51 = vadd.f32 %v4113_v0, %v6846_v60  ;;  %v1581_v54 = vadd.f32 %v4107_v15, %v6948_v47  ;;  %vm1763_vm1 = vmand %vm1743_vm2, %vm6247_vm7 }
 0x3a8   : > { %v1899_v39 = vsel %vm1770_vm3, %v1883_v21, 0.0  ;;  %v1860_v26 = vadd.f32 0.1, %v1844_v5  ;;  %v7134_v58 = vstv %s7054_s11  ;;  %v9066_v47 = vstv %s7025_s10  ;;  %v4501_v10 = vpop.permute.xlu2 %4500  ;;  %v9386_v5 = vld [vmem:[#allocation45_spill] sm:$0xff] }
 0x3a9   : > { %v7131_v60 = vadd.f32 %v1899_v39, %v1517_v24  ;;  %vm1931_vm10 = vcmp.gt.f32.partialorder %v1899_v39, 1e-16  ;;  %9381 = vst [vmem:[#allocation56_spill] sm:$0xff] %v7134_v58  ;;  %v7137_v1 = vsel %vm957_vm14, %v1086_v49, 0.0  ;;  %vm7139_vm11 = vcmp.eq.s32.totalorder %v4483_v6, 1  ;;  %4550 = vperm.xlu2 %4528, %v9193_v14  }
 0x3aa   : > { %v4123_v15 = vsel %vm1931_vm10, 1.0, %v9239_v48  ;;  %v1876_v30 = vmax.f32 %v1860_v26, 0.0  ;;  %vm9385_vm8 = vnez %v9384_v19  ;;  %v4503_v49 = vunpack.i.h.bf16 %v4501_v10 }
 0x3ab   : > { %v1497_v0 = vsel %vm9385_vm8, %v1481_v28, 0.0  ;;  %v7147_v21 = vadd.f32 %v4123_v15, %v1581_v54  ;;  %v4502_v6 = vunpack.i.l.bf16 %v4501_v10  ;;  %vm9387_vm3 = vnez %v9386_v5  ;;  %4654 = vperm.xlu0 %4617, %v9193_v14   ;;  %v1817_v26 = vpop.permute.xlu1 %1816 }
 0x3ac   : > { %v7158_v24 = vsel %vm9387_vm3, %v1484_v3, 0.0  ;;  %v1892_v39 = vsel %vm1763_vm1, %v1876_v30, 0.0  ;;  %vm3575_vm14 = vcmp.eq.s32.totalorder %v9114_v2, %v7134_v58  ;;  %vm7165_vm10 = vcmp.ne.s32.totalorder %v9113_v53, %v9066_v47  ;;  %v7192_v10 = vpop.permute.xlu0 %3404  ;;  %v9401_v47 = vld [vmem:[#allocation63_spill] sm:$0xff] }
 0x3ad   : > { %v7174_v35 = vadd.f32 %v1892_v39, %v6736_v41  ;;  %vm1924_vm2 = vcmp.gt.f32.partialorder %v1892_v39, 1e-16  ;;  %vm7176_vm8 = vcmp.eq.s32.totalorder %v4503_v49, 1  ;;  %v9390_v3 = vmov 0  ;;  %9394 = vst [vmem:[#allocation59_spill] sm:$0xff] %v7192_v10 }
 0x3ae   : > { %v9391_v3 = vsel %vm7176_vm8, 4294967295, %v9390_v3  ;;  %vm7180_vm1 = vcmp.eq.s32.totalorder %v4502_v6, 1  ;;  %vm1529_vm3 = vcmp.gt.f32.partialorder %v1497_v0, 1e-16  ;;  %v4492_v15 = vunpack.i.l.bf16 %v6527_v43  ;;  %v9398_v6 = vld [vmem:[#allocation42_spill] sm:$0xff] }
 0x3af   : > { %v4116_v30 = vsel %vm1924_vm2, 1.0, %v9239_v48  ;;  %v1847_v41 = vsub.f32 %v1817_v26, %v6193_v45  ;;  %v9395_v19 = vmov 4   ;;  %vm7204_vm2 = vmand %vm3575_vm14, %vm7165_vm10  ;;  %v1438_v5 = vsub.f32 %v9398_v6, %v6048_v8 }
 0x3b0   : > { %4554 = vset.pattern.permute.xlu1 %v9395_v19  ;;  %v7196_v49 = vadd.f32 %v4116_v30, %v6738_v7  ;;  %v4087_v39 = vsel %vm1131_vm6, 1.0, %v9239_v48  ;;  %v2268_v7 = vmax.f32 %v6933_v11, 0.0  ;;  %vm2135_vm13 = vmand %vm7180_vm1, %vm7079_vm0  ;;  %vm1134_vm14 = vcmp.gt.f32.partialorder %v7137_v1, 1e-16 }
 0x3b1   : > { %2568 = vperm.xlu1 %4554, %v5657_v20   ;;  %v1863_v28 = vadd.f32 0.1, %v1847_v41  ;;  %v2273_v26 = vmax.f32 %v7059_v13, 0.0  ;;  %vm1532_vm10 = vcmp.gt.f32.partialorder %v7158_v24, 1e-16  ;;  %v4103_v8 = vsel %vm1529_vm3, 1.0, %v9239_v48  ;;  %vm2155_vm6 = vmand %vm2135_vm13, %vm7099_vm4  ;;  %4555 = vset.pattern.permute.xlu2 %v9395_v19  ;;  %v4511_v41 = vpop.permute.xlu2 %4510 }
 0x3b2   : > { %vm7225_vm8 = vcmp.eq.s32.totalorder %v4492_v15, 1  ;;  %v2284_v30 = vsel %vm2155_vm6, %v2268_v7, 0.0  ;;  %v3642_v13 = vsel %vm7204_vm2, 1, %v9193_v14  ;;  %v1513_v6 = vadd.f32 %v1497_v0, %v6626_v42  ;;  %vm9402_vm13 = vmand %vm7139_vm11, %vm6243_vm15  ;;  %2572 = vperm.xlu2 %4555, %v5666_v31  }
 0x3b3   : > { %v1879_v54 = vmax.f32 %v1863_v28, 0.0  ;;  %v7235_v2 = vadd.f32 %v2284_v30, %v9401_v47  ;;  %vm2316_vm1 = vcmp.gt.f32.partialorder %v2284_v30, 1e-16  ;;  %vm1766_vm3 = vmand %vm9402_vm13, %vm6247_vm7  ;;  %v4513_v15 = vunpack.i.h.bf16 %v4511_v41  ;;  %v9403_v47 = vld [vmem:[#allocation64_spill] sm:$0xff]  ;;  %3659 = vperm.xlu0 %4617, %v3642_v13   ;;  %v1829_v28 = vpop.permute.xlu1 %1828 }
 0x3b4   : > { %v1577_v19 = vadd.f32 %v4103_v8, %v4087_v39  ;;  %v4126_v43 = vsel %vm2316_vm1, 1.0, %v9239_v48  ;;  %v4512_v42 = vunpack.i.l.bf16 %v4511_v41  ;;  %vm1749_vm2 = vmand %vm7225_vm8, %vm6243_vm15  ;;  %v9404_v39 = vld [vmem:[#allocation60_spill] sm:$0xff]  ;;  %v1850_v41 = vsub.f32 %v1829_v28, %v6193_v45 }
 0x3b5   : > { %v1895_v7 = vsel %vm1766_vm3, %v1879_v54, 0.0  ;;  %v7251_v0 = vadd.f32 %v4126_v43, %v9403_v47  ;;  %vm2121_vm6 = vcmp.eq.s32.totalorder %v4513_v15, 1  ;;  %v2247_v8 = vsub.f32 %v9404_v39, %v6699_v9 }
 0x3b6   : > { %v7253_v62 = vadd.f32 %v1895_v7, %v1513_v6  ;;  %vm1927_vm11 = vcmp.gt.f32.partialorder %v1895_v7, 1e-16  ;;  %vm2140_vm1 = vmand %vm2121_vm6, %vm7079_vm0  ;;  %vm7260_vm13 = vcmp.eq.s32.totalorder %v4512_v42, 1  ;;  %v9405_v54 = vmov 0  ;;  %v7265_v6 = vpop.permute.xlu0 %3416 }
 0x3b7   : > { %v4119_v30 = vsel %vm1927_vm11, 1.0, %v9239_v48  ;;  %v9406_v54 = vsel %vm7260_vm13, 4294967295, %v9405_v54  ;;  %9407 = vst [vmem:[#allocation44_spill] sm:$0xff] %v7265_v6  ;;  %v1454_v43 = vadd.f32 0.1, %v1438_v5  ;;  %v1836_v13 = vsub.f32 %v6855_v36, %v6193_v45  ;;  %vm2160_vm3 = vmand %vm2140_vm1, %vm7099_vm4  ;;  %v9434_v6 = vld [vmem:[#allocation35_spill] sm:$0xff] }
 0x3b8   : > { %v7269_v15 = vadd.f32 %v4119_v30, %v1577_v19  ;;  %v4090_v7 = vsel %vm1134_vm14, 1.0, %v9239_v48  ;;  %v1516_v42 = vadd.f32 %v7158_v24, %v7137_v1  ;;  %v2289_v45 = vsel %vm2160_vm3, %v2273_v26, 0.0  ;;  %v9408_v19 = vld [vmem:[#allocation58_spill] sm:$0xff]  ;;  %v9409_v26 = vld [vmem:[#allocation24_spill] sm:$0xff] }
 0x3b9   : > { %2580 = vperm.xlu1 %4554, %v5696_v32   ;;  %v1866_v36 = vadd.f32 0.1, %v1850_v41  ;;  %v4106_v5 = vsel %vm1532_vm10, 1.0, %v9239_v48  ;;  %vm1716_vm6 = vcmp.eq.s32.totalorder %v9408_v19, 1  ;;  %v7288_v47 = vadd.f32 %v2289_v45, %v6414_v50  ;;  %v4521_v30 = vpop.permute.xlu2 %4520  ;;  %vm1769_vm10 = vmand %vm1749_vm2, %vm6247_vm7 }
 0x3ba   : > { %vm2321_vm14 = vcmp.gt.f32.partialorder %v2289_v45, 1e-16  ;;  %v2263_v28 = vadd.f32 0.1, %v2247_v8  ;;  %v1852_v53 = vadd.f32 0.1, %v1836_v13  ;;  %v4523_v50 = vunpack.i.h.bf16 %v4521_v30  ;;  %2584 = vperm.xlu2 %4555, %v9409_v26   ;;  %vm7308_vm1 = vmand %vm1716_vm6, %vm6243_vm15 }
 0x3bb   : > { %v4131_v1 = vsel %vm2321_vm14, 1.0, %v9239_v48  ;;  %v1882_v39 = vmax.f32 %v1866_v36, 0.0  ;;  %v4522_v24 = vunpack.i.l.bf16 %v4521_v30  ;;  %v9410_v8 = vld [vmem:[#allocation40_spill] sm:$0xff]  ;;  %v1580_v45 = vadd.f32 %v4106_v5, %v4090_v7  ;;  %v9415_v30 = vld [vmem:[#allocation25_spill] sm:$0xff] }
 0x3bc   : > { %v7292_v10 = vadd.f32 %v4131_v1, %v6444_v55  ;;  %v1040_v41 = vsub.f32 %v9410_v8, %v6034_v16  ;;  %vm2127_vm2 = vcmp.eq.s32.totalorder %v4523_v50, 1  ;;  %v9071_v1 = vmov 7   ;;  %v9416_v50 = vld [vmem:[#allocation23_spill] sm:$0xff] }
 0x3bd   : > { %v1898_v13 = vsel %vm1769_vm10, %v1882_v39, 0.0  ;;  %vm7314_vm3 = vcmp.eq.s32.totalorder %v4522_v24, 1  ;;  %4671 = vset.pattern.permute.xlu0 %v9071_v1  ;;  %v1470_v16 = vmax.f32 %v1454_v43, 0.0  ;;  %v2279_v7 = vmax.f32 %v2263_v28, 0.0  ;;  %vm2146_vm15 = vmand %vm2127_vm2, %vm7079_vm0 }
 0x3be   : > { %v7312_v11 = vadd.f32 %v1898_v13, %v1516_v42  ;;  %vm1930_vm8 = vcmp.gt.f32.partialorder %v1898_v13, 1e-16  ;;  %3766 = vperm.xlu0 %4671, %v5666_v31   ;;  %v2071_v42 = vpop.permute.xlu1 %2070  ;;  %v1868_v5 = vmax.f32 %v1852_v53, 0.0  ;;  %vm2166_vm6 = vmand %vm2146_vm15, %vm7099_vm4  ;;  %v858_v39 = vpop.permute.xlu0 %857  ;;  %v1056_v43 = vadd.f32 0.1, %v1040_v41  ;;  %v9422_v13 = vld [vmem:[#allocation26_spill] sm:$0xff] }
 0x3bf   : > { %v4122_v37 = vsel %vm1930_vm8, 1.0, %v9239_v48  ;;  %vm2115_vm14 = vcmp.eq.s32.totalorder %v2071_v42, 1  ;;  %v2295_v28 = vsel %vm2166_vm6, %v2279_v7, 0.0  ;;  %vm1755_vm8 = vmand %vm7308_vm1, %vm6247_vm7  ;;  %vm904_vm15 = vcmp.eq.s32.totalorder %v858_v39, 1 }
 0x3c0   : > { %v7323_v19 = vadd.f32 %v4122_v37, %v1580_v45  ;;  %v7337_v53 = vadd.f32 %v2295_v28, %v6831_v12  ;;  %vm2327_vm2 = vcmp.gt.f32.partialorder %v2295_v28, 1e-16  ;;  %vm9417_vm11 = vnez %v9416_v50  ;;  %vm7347_vm6 = vmand %vm2115_vm14, %vm7079_vm0 }
 0x3c1   : > { %2588 = vperm.xlu1 %4554, %v9415_v30   ;;  %vm9419_vm13 = vmand %vm9417_vm11, %vm9265_vm5  ;;  %v4137_v41 = vsel %vm2327_vm2, 1.0, %v9239_v48  ;;  %v1884_v45 = vsel %vm1755_vm8, %v1868_v5, 0.0  ;;  %v2175_v55 = vpop.permute.xlu2 %2174  ;;  %v1072_v7 = vmax.f32 %v1056_v43, 0.0  ;;  %v9423_v43 = vld [vmem:[#allocation32_spill] sm:$0xff] }
 0x3c2   : > { %v1486_v8 = vsel %vm9419_vm13, %v1470_v16, 0.0  ;;  %v7352_v12 = vadd.f32 %v4137_v41, %v6849_v63  ;;  %2592 = vperm.xlu2 %4555, %v9422_v13   ;;  %vm923_vm7 = vmand %vm904_vm15, %vm6065_vm12  ;;  %v2235_v16 = vsub.f32 %v2175_v55, %v6699_v9  ;;  %vm1916_vm11 = vcmp.gt.f32.partialorder %v1884_v45, 1e-16  ;;  %v7642_v55 = vld [vmem:[%s5608_s21] sm:$0xff] }
 0x3c3   : > { %vm1518_vm5 = vcmp.gt.f32.partialorder %v1486_v8, 1e-16  ;;  %vm943_vm13 = vmand %vm923_vm7, %vm6126_vm9 }
 0x3c4   : > { %v1088_v37 = vsel %vm943_vm13, %v1072_v7, 0.0  ;;  %v2251_v42 = vadd.f32 0.1, %v2235_v16  ;;  %v4092_v50 = vsel %vm1518_vm5, 1.0, %v9239_v48  ;;  %vm2154_vm12 = vmand %vm7347_vm6, %vm7099_vm4  ;;  %v4108_v16 = vsel %vm1916_vm11, 1.0, %v9239_v48 }
 0x3c5   : > { %vm1120_vm1 = vcmp.gt.f32.partialorder %v1088_v37, 1e-16  ;;  %v1502_v5 = vadd.f32 %v1486_v8, %v1088_v37  ;;  %vm2446_vm5 = vcmp.ne.s32.totalorder %v9320_v23, %v6352_v17  ;;  %vm9436_vm13 = vcmp.lt.s32.totalorder %v9435_v27, 12  ;;  %v9445_v8 = vld [vmem:[#allocation39_spill] sm:$0xff]  ;;  %v9449_v27 = vld [vmem:[#allocation36_spill] sm:$0xff] }
 0x3c6   : > { %3786 = vperm.xlu0 %4671, %v9422_v13   ;;  %v4506_v63 = vpop.permute.xlu1 %4505  ;;  %v2068_v40 = vpop.permute.xlu0 %2067  ;;  %v4076_v25 = vsel %vm1120_vm1, 1.0, %v9239_v48  ;;  %v2267_v24 = vmax.f32 %v2251_v42, 0.0  ;;  %v9430_v42 = vld [vmem:[#allocation57_spill] sm:$0xff]  ;;  %vm7413_vm11 = vmand %vm2446_vm5, %vm9436_vm13 }
 0x3c7   : > { %v4508_v39 = vunpack.i.h.bf16 %v4506_v63  ;;  %v4507_v28 = vunpack.i.l.bf16 %v4506_v63  ;;  %vm2114_vm9 = vcmp.eq.s32.totalorder %v2068_v40, 1  ;;  %v1566_v41 = vadd.f32 %v4092_v50, %v4076_v25  ;;  %v9432_v40 = vld [vmem:[#allocation33_spill] sm:$0xff] }
 0x3c8   : > { %vm7378_vm2 = vmand %vm2114_vm9, %vm7079_vm0  ;;  %v7382_v44 = vadd.f32 %v1884_v45, %v1502_v5  ;;  %v2283_v37 = vsel %vm2154_vm12, %v2267_v24, 0.0  ;;  %v2244_v63 = vsub.f32 %v9430_v42, %v6699_v9  ;;  %v9433_v24 = vld [vmem:[#allocation50_spill] sm:$0xff] }
 0x3c9   : > { %2600 = vperm.xlu1 %4554, %v9423_v43   ;;  %vm7368_vm14 = vcmp.eq.s32.totalorder %v4508_v39, 1  ;;  %vm7372_vm8 = vcmp.eq.s32.totalorder %v4507_v28, 1  ;;  %v9431_v39 = vld [vmem:[#allocation29_spill] sm:$0xff]  ;;  %vm2315_vm6 = vcmp.gt.f32.partialorder %v2283_v37, 1e-16  ;;  %v2187_v5 = vpop.permute.xlu2 %2186  ;;  %v7396_v50 = vadd.f32 %v4108_v16, %v1566_v41 }
 0x3ca   : > { %v7393_v28 = vadd.f32 %v2283_v37, %v9431_v39  ;;  %2604 = vperm.xlu2 %4555, %v9432_v40   ;;  %v4125_v45 = vsel %vm2315_vm6, 1.0, %v9239_v48  ;;  %vm2137_vm7 = vmand %vm7372_vm8, %vm7079_vm0  ;;  %v2238_v25 = vsub.f32 %v2187_v5, %v6699_v9  ;;  %v2260_v16 = vadd.f32 0.1, %v2244_v63 }
 0x3cb   : > { %v7407_v37 = vadd.f32 %v4125_v45, %v9433_v24  ;;  %v9439_v45 = vld [vmem:[#allocation28_spill] sm:$0xff]  ;;  %vm2157_vm9 = vmand %vm2137_vm7, %vm7099_vm4 }
 0x3cc   : > { %v2254_v42 = vadd.f32 0.1, %v2238_v25  ;;  %vm2780_vm1 = vcmp.eq.s32.totalorder %v9325_v57, %v9439_v45  ;;  %v9440_v25 = vstv %s6511_s6  ;;  %v9455_v45 = vld [vmem:[#allocation34_spill] sm:$0xff]  ;;  %v9461_v57 = vld [vmem:[#allocation48_spill] sm:$0xff] }
 0x3cd   : > { %vm2797_vm12 = vcmp.ne.s32.totalorder %v9327_v22, %v9440_v25 }
 0x3ce   : > { %3794 = vperm.xlu0 %4671, %v9423_v43   ;;  %v4516_v41 = vpop.permute.xlu1 %4515  ;;  %v4620_v18 = vpop.permute.xlu0 %4619  ;;  %v2270_v17 = vmax.f32 %v2254_v42, 0.0  ;;  %vm7449_vm15 = vmand %vm2780_vm1, %vm2797_vm12 }
 0x3cf   : > { %v4518_v39 = vunpack.i.h.bf16 %v4516_v41  ;;  %v4517_v1 = vunpack.i.l.bf16 %v4516_v41  ;;  %v4622_v58 = vunpack.i.h.bf16 %v4620_v18  ;;  %v4621_v42 = vunpack.i.l.bf16 %v4620_v18 }
 0x3d0   : > { %v2286_v41 = vsel %vm2157_vm9, %v2270_v17, 0.0  ;;  %v2276_v18 = vmax.f32 %v2260_v16, 0.0 }
 0x3d1   : > { %2612 = vperm.xlu1 %4554, %v9434_v6   ;;  %vm7429_vm6 = vcmp.eq.s32.totalorder %v4518_v39, 1  ;;  %vm7433_vm5 = vcmp.eq.s32.totalorder %v4517_v1, 1  ;;  %v7442_v25 = vadd.f32 %v2286_v41, %v9445_v8  ;;  %vm2318_vm8 = vcmp.gt.f32.partialorder %v2286_v41, 1e-16  ;;  %v2195_v1 = vpop.permute.xlu2 %2194 }
 0x3d2   : > { %vm7444_vm7 = vcmp.eq.s32.totalorder %v4622_v58, 1  ;;  %2616 = vperm.xlu2 %4555, %v9449_v27   ;;  %v4128_v17 = vsel %vm2318_vm8, 1.0, %v9239_v48  ;;  %vm2143_vm9 = vmand %vm7433_vm5, %vm7079_vm0  ;;  %v2240_v58 = vsub.f32 %v2195_v1, %v6699_v9  ;;  %vm7464_vm1 = vcmp.eq.s32.totalorder %v4621_v42, 1  ;;  %v9460_v1 = vld [vmem:[#allocation47_spill] sm:$0xff] }
 0x3d3   : > { %9446 = vst [vmem:[#allocation45_spill] sm:$0xff] %v7442_v25  ;;  %v7460_v41 = vadd.f32 %v4128_v17, %v6829_v59  ;;  %vm2163_vm13 = vmand %vm2143_vm9, %vm7099_vm4  ;;  %v2528_v59 = vsel %vm7413_vm11, 1, %v9193_v14  ;;  %vm9456_vm5 = vnez %v9406_v54  ;;  %v9472_v42 = vld [vmem:[#allocation43_spill] sm:$0xff]  ;;  %v9501_v8 = vmov 0 }
 0x3d4   : > { %v2292_v16 = vsel %vm2163_vm13, %v2276_v18, 0.0  ;;  %vm2142_vm12 = vmand %vm7444_vm7, %vm7079_vm0  ;;  %v2256_v24 = vadd.f32 0.1, %v2240_v58 }
 0x3d5   : > { %9452 = vst [vmem:[#allocation42_spill] sm:$0xff] %v7460_v41  ;;  %vm9457_vm8 = vmand %vm9456_vm5, %vm7079_vm0  ;;  %v7488_v18 = vadd.f32 %v2292_v16, %v9460_v1  ;;  %vm2324_vm9 = vcmp.gt.f32.partialorder %v2292_v16, 1e-16  ;;  %vm9463_vm5 = vcmp.lt.s32.totalorder %v9327_v22, 12 }
 0x3d6   : > { %3802 = vperm.xlu0 %4671, %v9455_v45   ;;  %vm7483_vm13 = vmand %vm9457_vm8, %vm7099_vm4  ;;  %v2171_v45 = vpop.permute.xlu1 %2170  ;;  %v4625_v5 = vpop.permute.xlu0 %4624  ;;  %v4134_v17 = vsel %vm2324_vm9, 1.0, %v9239_v48  ;;  %v2272_v54 = vmax.f32 %v2256_v24, 0.0 }
 0x3d7   : > { %v2234_v58 = vsub.f32 %v2171_v45, %v6699_v9  ;;  %v4627_v41 = vunpack.i.h.bf16 %v4625_v5  ;;  %v7498_v25 = vadd.f32 %v4134_v17, %v9461_v57  ;;  %v4626_v1 = vunpack.i.l.bf16 %v4625_v5  ;;  %vm7504_vm8 = vmand %vm7449_vm15, %vm9463_vm5  ;;  %v9468_v17 = vld [vmem:[#allocation31_spill] sm:$0xff] }
 0x3d8   : > { %vm2153_vm9 = vmand %vm7378_vm2, %vm7099_vm4  ;;  %v2288_v24 = vsel %vm7483_vm13, %v2272_v54, 0.0  ;;  %v2529_v5 = vperm.slane %v2528_v59, 0 }
 0x3d9   : > { %2624 = vperm.xlu1 %4554, %v9337_v38   ;;  %9462 = vst [vmem:[#allocation63_spill] sm:$0xff] %v7498_v25  ;;  %v2250_v45 = vadd.f32 0.1, %v2234_v58  ;;  %vm7514_vm11 = vcmp.eq.s32.totalorder %v4627_v41, 1  ;;  %v7519_v23 = vadd.f32 %v2288_v24, %v9468_v17  ;;  %vm2320_vm15 = vcmp.gt.f32.partialorder %v2288_v24, 1e-16  ;;  %v2207_v41 = vpop.permute.xlu2 %2206 }
 0x3da   : > { %vm2148_vm5 = vmand %vm7514_vm11, %vm7079_vm0  ;;  %vm7525_vm10 = vcmp.eq.s32.totalorder %v4626_v1, 1  ;;  %2628 = vperm.xlu2 %4555, %v9472_v42   ;;  %v4130_v54 = vsel %vm2320_vm15, 1.0, %v9239_v48  ;;  %v2243_v59 = vsub.f32 %v2207_v41, %v6699_v9  ;;  %v9473_v17 = vld [vmem:[#allocation61_spill] sm:$0xff]  ;;  %v2847_v1 = vsel %vm7504_vm8, 1, %v9193_v14 }
 0x3db   : > { %9469 = vst [vmem:[#allocation64_spill] sm:$0xff] %v7519_v23  ;;  %v2266_v58 = vmax.f32 %v2250_v45, 0.0  ;;  %v7533_v23 = vadd.f32 %v4130_v54, %v9473_v17  ;;  %vm7548_vm15 = vcmp.eq.s32.totalorder %v2529_v5, 1  ;;  %vm2162_vm8 = vmand %vm2142_vm12, %vm7099_vm4 }
 0x3dc   : > { %v2259_v45 = vadd.f32 0.1, %v2243_v59  ;;  %vm9495_vm11 = vmand %vm7464_vm1, %vm7079_vm0 }
 0x3dd   : > { %v2282_v24 = vsel %vm2153_vm9, %v2266_v58, 0.0 }
 0x3de   : > { %3810 = vperm.xlu0 %4671, %v9449_v27   ;;  %v7560_v7 = vadd.f32 %v2282_v24, %v7382_v44  ;;  %vm2314_vm2 = vcmp.gt.f32.partialorder %v2282_v24, 1e-16  ;;  %v2183_v16 = vpop.permute.xlu1 %2182  ;;  %v2466_v54 = vpop.permute.xlu0 %2465  ;;  %v2275_v58 = vmax.f32 %v2259_v45, 0.0 }
 0x3df   : > { %v4124_v5 = vsel %vm2314_vm2, 1.0, %v9239_v48  ;;  %v2237_v59 = vsub.f32 %v2183_v16, %v6699_v9  ;;  %vm2512_vm9 = vcmp.eq.s32.totalorder %v2466_v54, 1  ;;  %vm9481_vm2 = vnez %v9391_v3 }
 0x3e0   : > { %9476 = vst [vmem:[#allocation60_spill] sm:$0xff] %v7560_v7  ;;  %v7566_v39 = vadd.f32 %v4124_v5, %v7396_v50  ;;  %vm7570_vm7 = vmand %vm2512_vm9, %vm7548_vm15  ;;  %v2291_v17 = vsel %vm2162_vm8, %v2275_v58, 0.0 }
 0x3e1   : > { %4557 = vset.pattern.permute.xlu1 %v9193_v14  ;;  %v2253_v24 = vadd.f32 0.1, %v2237_v59  ;;  %v7575_v7 = vadd.f32 %v2291_v17, %v6976_v33  ;;  %vm2323_vm12 = vcmp.gt.f32.partialorder %v2291_v17, 1e-16  ;;  %vm9482_vm8 = vmand %vm9481_vm2, %vm7079_vm0  ;;  %v9483_v33 = vld [vmem:[#allocation54_spill] sm:$0xff] }
 0x3e2   : > { %2866 = vperm.xlu1 %4557, %v2847_v1   ;;  %9477 = vst [vmem:[#allocation58_spill] sm:$0xff] %v7566_v39  ;;  %4558 = vset.pattern.permute.xlu2 %v9193_v14  ;;  %v2219_v45 = vpop.permute.xlu2 %2218  ;;  %v4133_v1 = vsel %vm2323_vm12, 1.0, %v9239_v48  ;;  %vm2156_vm9 = vmand %vm9482_vm8, %vm7099_vm4 }
 0x3e3   : > { %9480 = vst [vmem:[#allocation24_spill] sm:$0xff] %v7575_v7  ;;  %v2269_v16 = vmax.f32 %v2253_v24, 0.0  ;;  %v2246_v50 = vsub.f32 %v2219_v45, %v6699_v9  ;;  %4560 = vperm.xlu2 %4558, %v9193_v14   ;;  %v7589_v54 = vadd.f32 %v4133_v1, %v9483_v33  ;;  %vm9484_vm2 = vmand %vm7314_vm3, %vm7079_vm0 }
 0x3e4   : > { %vm2165_vm8 = vmand %vm9484_vm2, %vm7099_vm4 }
 0x3e5   : > { %v2285_v5 = vsel %vm2156_vm9, %v2269_v16, 0.0  ;;  %v2262_v58 = vadd.f32 0.1, %v2246_v50 }
 0x3e6   : > { %3818 = vperm.xlu0 %4671, %v9337_v38   ;;  %v7593_v59 = vadd.f32 %v2285_v5, %v7017_v29  ;;  %vm2317_vm12 = vcmp.gt.f32.partialorder %v2285_v5, 1e-16  ;;  %v2191_v17 = vpop.permute.xlu1 %2190  ;;  %v4630_v24 = vpop.permute.xlu0 %4629 }
 0x3e7   : > { %v4127_v45 = vsel %vm2317_vm12, 1.0, %v9239_v48  ;;  %v2278_v3 = vmax.f32 %v2262_v58, 0.0  ;;  %v2239_v7 = vsub.f32 %v2191_v17, %v6699_v9  ;;  %v4632_v39 = vunpack.i.h.bf16 %v4630_v24 }
 0x3e8   : > { %v7606_v29 = vadd.f32 %v4127_v45, %v7033_v46  ;;  %v4631_v1 = vunpack.i.l.bf16 %v4630_v24  ;;  %v9487_v46 = vmov 0  ;;  %v7645_v17 = vperm.slane %v7642_v55, 4 }
 0x3e9   : > { %v2294_v16 = vsel %vm2165_vm8, %v2278_v3, 0.0  ;;  %v2255_v50 = vadd.f32 0.1, %v2239_v7  ;;  %vm7608_vm9 = vcmp.eq.s32.totalorder %v4632_v39, 1  ;;  %vm9490_vm8 = vmand %vm7368_vm14, %vm7079_vm0 }
 0x3ea   : > { %4565 = vperm.xlu1 %4557, %v9193_v14   ;;  %v7613_v5 = vadd.f32 %v2294_v16, %v7051_v34  ;;  %vm2326_vm12 = vcmp.gt.f32.partialorder %v2294_v16, 1e-16  ;;  %vm7619_vm2 = vcmp.eq.s32.totalorder %v4631_v1, 1  ;;  %v2231_v36 = vpop.permute.xlu2 %2230  ;;  %vm2158_vm13 = vmand %vm9490_vm8, %vm7099_vm4 }
 0x3eb   : > { %v9488_v46 = vsel %vm7619_vm2, 4294967295, %v9487_v46  ;;  %v4136_v34 = vsel %vm2326_vm12, 1.0, %v9239_v48  ;;  %v2271_v7 = vmax.f32 %v2255_v50, 0.0  ;;  %v2249_v39 = vsub.f32 %v2231_v36, %v6699_v9  ;;  %4570 = vperm.xlu2 %4558, %v9193_v14   ;;  %vm7654_vm14 = vmand %vm2148_vm5, %vm7099_vm4 }
 0x3ec   : > { %9489 = vst [vmem:[#allocation40_spill] sm:$0xff] %v9488_v46  ;;  %v7635_v58 = vadd.f32 %v4136_v34, %v7061_v56  ;;  %vm7678_vm5 = vmand %vm9495_vm11, %vm7099_vm4 }
 0x3ed   : > { %v2287_v24 = vsel %vm2158_vm13, %v2271_v7, 0.0  ;;  %v2265_v45 = vadd.f32 0.1, %v2249_v39 }
 0x3ee   : > { %v7659_v3 = vadd.f32 %v2287_v24, %v7090_v52  ;;  %vm2319_vm12 = vcmp.gt.f32.partialorder %v2287_v24, 1e-16  ;;  %v2203_v1 = vpop.permute.xlu1 %2202  ;;  %v4635_v16 = vpop.permute.xlu0 %4634  ;;  %v9494_v52 = vld [vmem:[#allocation62_spill] sm:$0xff]  ;;  %v9509_v24 = vmov 5  }
 0x3ef   : > { %v4129_v50 = vsel %vm2319_vm12, 1.0, %v9239_v48  ;;  %v2281_v36 = vmax.f32 %v2265_v45, 0.0  ;;  %v2242_v34 = vsub.f32 %v2203_v1, %v6699_v9  ;;  %v4637_v7 = vunpack.i.h.bf16 %v4635_v16 }
 0x3f0   : > { %v7667_v57 = vadd.f32 %v4129_v50, %v7110_v51  ;;  %v4636_v39 = vunpack.i.l.bf16 %v4635_v16  ;;  %v2634_v46 = vsub.f32 %v9494_v52, %v7645_v17  ;;  %v9498_v1 = vmov 0 }
 0x3f1   : > { %v2297_v45 = vsel %vm7654_vm14, %v2281_v36, 0.0  ;;  %v2258_v51 = vadd.f32 0.1, %v2242_v34  ;;  %vm7684_vm13 = vcmp.eq.s32.totalorder %v4637_v7, 1  ;;  %v2549_v34 = vstv %s2548_s12 }
 0x3f2   : > { %4575 = vperm.xlu1 %4557, %v9193_v14   ;;  %9493 = vst [vmem:[#allocation25_spill] sm:$0xff] %v7667_v57  ;;  %v9499_v1 = vsel %vm7684_vm13, 4294967295, %v9498_v1  ;;  %v7689_v16 = vadd.f32 %v2297_v45, %v7131_v60  ;;  %vm2329_vm8 = vcmp.gt.f32.partialorder %v2297_v45, 1e-16  ;;  %vm7695_vm12 = vcmp.eq.s32.totalorder %v4636_v39, 1  ;;  %v9504_v45 = vld [vmem:[#allocation65_spill] sm:$0xff] }
 0x3f3   : > { %v9502_v8 = vsel %vm7695_vm12, 4294967295, %v9501_v8  ;;  %v4139_v56 = vsel %vm2329_vm8, 1.0, %v9239_v48  ;;  %v2274_v50 = vmax.f32 %v2258_v51, 0.0  ;;  %4580 = vperm.xlu2 %4558, %v9193_v14   ;;  %v4531_v36 = vpop.permute.xlu2 %4530  ;;  %v2650_v52 = vadd.f32 0.1, %v2634_v46 }
 0x3f4   : > { %9500 = vst [vmem:[#allocation23_spill] sm:$0xff] %v7689_v16  ;;  %v7702_v60 = vadd.f32 %v4139_v56, %v7147_v21  ;;  %v4533_v7 = vunpack.i.h.bf16 %v4531_v36  ;;  %v4532_v39 = vunpack.i.l.bf16 %v4531_v36  ;;  %v2639_v16 = vsub.f32 %v9504_v45, %v7645_v17 }
 0x3f5   : > { %9503 = vst [vmem:[#allocation21_spill] sm:$0xff] %v9502_v8  ;;  %v2290_v51 = vsel %vm7678_vm5, %v2274_v50, 0.0  ;;  %vm7719_vm14 = vcmp.eq.s32.totalorder %v2549_v34, 1  ;;  %v2666_v36 = vmax.f32 %v2650_v52, 0.0  ;;  %vm9510_vm5 = vmand %vm7429_vm6, %vm7079_vm0 }
 0x3f6   : > { %v7713_v57 = vadd.f32 %v2290_v51, %v7174_v35  ;;  %vm2322_vm11 = vcmp.gt.f32.partialorder %v2290_v51, 1e-16  ;;  %vm7715_vm8 = vcmp.eq.s32.totalorder %v4533_v7, 1  ;;  %vm2514_vm3 = vcmp.eq.s32.totalorder %v4532_v39, 1  ;;  %v2215_v56 = vpop.permute.xlu1 %2214  ;;  %vm2164_vm12 = vmand %vm9510_vm5, %vm7099_vm4 }
 0x3f7   : > { %v4132_v46 = vsel %vm2322_vm11, 1.0, %v9239_v48  ;;  %v2245_v35 = vsub.f32 %v2215_v56, %v6699_v9  ;;  %v2655_v34 = vadd.f32 0.1, %v2639_v16  ;;  %vm2533_vm1 = vmand %vm2514_vm3, %vm7548_vm15 }
 0x3f8   : > { %v7731_v50 = vadd.f32 %v4132_v46, %v7196_v49  ;;  %vm2553_vm11 = vmand %vm2533_vm1, %vm7719_vm14 }
 0x3f9   : > { %v2261_v7 = vadd.f32 0.1, %v2245_v35  ;;  %v2682_v39 = vsel %vm2553_vm11, %v2666_v36, 0.0  ;;  %v2671_v56 = vmax.f32 %v2655_v34, 0.0 }
 0x3fa   : > { %4584 = vset.pattern.permute.xlu1 %v9509_v24  ;;  %v7747_v49 = vadd.f32 %v2682_v39, %v7235_v2  ;;  %vm2714_vm3 = vcmp.gt.f32.partialorder %v2682_v39, 1e-16  ;;  %v9511_v2 = vld [vmem:[#allocation27_spill] sm:$0xff] }
 0x3fb   : > { %2966 = vperm.xlu1 %4584, %v5657_v20   ;;  %v2277_v45 = vmax.f32 %v2261_v7, 0.0  ;;  %4585 = vset.pattern.permute.xlu2 %v9509_v24  ;;  %v4541_v51 = vpop.permute.xlu2 %4540  ;;  %v4142_v46 = vsel %vm2714_vm3, 1.0, %v9239_v48  ;;  %v2645_v7 = vsub.f32 %v9511_v2, %v7645_v17 }
 0x3fc   : > { %v4543_v16 = vunpack.i.h.bf16 %v4541_v51  ;;  %v4542_v52 = vunpack.i.l.bf16 %v4541_v51  ;;  %2970 = vperm.xlu2 %4585, %v5666_v31   ;;  %v7752_v24 = vadd.f32 %v4142_v46, %v7251_v0 }
 0x3fd   : > { %v2293_v35 = vsel %vm2164_vm12, %v2277_v45, 0.0 }
 0x3fe   : > { %v7755_v63 = vadd.f32 %v2293_v35, %v7253_v62  ;;  %vm2325_vm6 = vcmp.gt.f32.partialorder %v2293_v35, 1e-16  ;;  %vm2519_vm1 = vcmp.eq.s32.totalorder %v4543_v16, 1  ;;  %v2227_v36 = vpop.permute.xlu1 %2226  ;;  %vm7762_vm11 = vcmp.eq.s32.totalorder %v4542_v52, 1 }
 0x3ff   : > { %v4135_v39 = vsel %vm2325_vm6, 1.0, %v9239_v48  ;;  %vm2538_vm5 = vmand %vm2519_vm1, %vm7548_vm15  ;;  %v2248_v0 = vsub.f32 %v2227_v36, %v6699_v9 }
 0x400   : > { %v7768_v62 = vadd.f32 %v4135_v39, %v7269_v15  ;;  %vm2558_vm12 = vmand %vm2538_vm5, %vm7719_vm14  ;;  %v2661_v15 = vadd.f32 0.1, %v2645_v7 }
 0x401   : > { %v2687_v45 = vsel %vm2558_vm12, %v2671_v56, 0.0  ;;  %v2264_v51 = vadd.f32 0.1, %v2248_v0  ;;  %vm9514_vm6 = vmand %vm7525_vm10, %vm7079_vm0 }
 0x402   : > { %vm2167_vm1 = vmand %vm9514_vm6, %vm7099_vm4  ;;  %v7785_v9 = vadd.f32 %v2687_v45, %v7288_v47  ;;  %vm2719_vm5 = vcmp.gt.f32.partialorder %v2687_v45, 1e-16  ;;  %v2677_v36 = vmax.f32 %v2661_v15, 0.0 }
 0x403   : > { %2978 = vperm.xlu1 %4584, %v5696_v32   ;;  %v4147_v16 = vsel %vm2719_vm5, 1.0, %v9239_v48  ;;  %v2280_v52 = vmax.f32 %v2264_v51, 0.0  ;;  %v4551_v46 = vpop.permute.xlu2 %4550 }
 0x404   : > { %v7789_v56 = vadd.f32 %v4147_v16, %v7292_v10  ;;  %v4553_v35 = vunpack.i.h.bf16 %v4551_v46  ;;  %v4552_v4 = vunpack.i.l.bf16 %v4551_v46  ;;  %2982 = vperm.xlu2 %4585, %v9409_v26  }
 0x405   : > { %v2296_v25 = vsel %vm2167_vm1, %v2280_v52, 0.0 }
 0x406   : > { %v7793_v61 = vadd.f32 %v2296_v25, %v7312_v11  ;;  %vm2328_vm0 = vcmp.gt.f32.partialorder %v2296_v25, 1e-16  ;;  %vm2525_vm4 = vcmp.eq.s32.totalorder %v4553_v35, 1  ;;  %vm7795_vm10 = vcmp.eq.s32.totalorder %v4552_v4, 1 }
 0x407   : > { %v4138_v2 = vsel %vm2328_vm0, 1.0, %v9239_v48  ;;  %vm2544_vm12 = vmand %vm2525_vm4, %vm7548_vm15  ;;  %v2469_v10 = vpop.permute.xlu1 %2468  ;;  %v9522_v35 = vmov 0 }
 0x408   : > { %v7803_v7 = vadd.f32 %v4138_v2, %v7323_v19  ;;  %vm2564_vm6 = vmand %vm2544_vm12, %vm7719_vm14  ;;  %vm2513_vm0 = vcmp.eq.s32.totalorder %v2469_v10, 1 }
 0x409   : > { %v2693_v11 = vsel %vm2564_vm6, %v2677_v36, 0.0  ;;  %vm2532_vm4 = vmand %vm2513_vm0, %vm7548_vm15 }
 0x40a   : > { %v7813_v39 = vadd.f32 %v2693_v11, %v7337_v53  ;;  %vm2725_vm5 = vcmp.gt.f32.partialorder %v2693_v11, 1e-16  ;;  %vm2552_vm12 = vmand %vm2532_vm4, %vm7719_vm14 }
 0x40b   : > { %2986 = vperm.xlu1 %4584, %v9415_v30   ;;  %v4153_v0 = vsel %vm2725_vm5, 1.0, %v9239_v48 }
 0x40c   : > { %v7817_v19 = vadd.f32 %v4153_v0, %v7352_v12  ;;  %2990 = vperm.xlu2 %4585, %v9422_v13   ;;  %v2573_v45 = vpop.permute.xlu2 %2572  ;;  %v9521_v0 = vld [vmem:[#allocation66_spill] sm:$0xff] }
 0x40d   : > { %v2633_v51 = vsub.f32 %v2573_v45, %v7645_v17 }
 0x40f   : > { %v2649_v15 = vadd.f32 0.1, %v2633_v51  ;;  %v4536_v16 = vpop.permute.xlu1 %4535 }
 0x410   : > { %v4538_v52 = vunpack.i.h.bf16 %v4536_v16  ;;  %v4537_v53 = vunpack.i.l.bf16 %v4536_v16 }
 0x411   : > { %v2665_v46 = vmax.f32 %v2649_v15, 0.0 }
 0x412   : > { %vm7826_vm6 = vcmp.eq.s32.totalorder %v4538_v52, 1  ;;  %vm7830_vm5 = vcmp.eq.s32.totalorder %v4537_v53, 1 }
 0x413   : > { %2998 = vperm.xlu1 %4584, %v9423_v43   ;;  %v2681_v4 = vsel %vm2552_vm12, %v2665_v46, 0.0  ;;  %vm2535_vm4 = vmand %vm7830_vm5, %vm7548_vm15 }
 0x414   : > { %v7839_v25 = vadd.f32 %v2681_v4, %v7393_v28  ;;  %vm2713_vm1 = vcmp.gt.f32.partialorder %v2681_v4, 1e-16  ;;  %3002 = vperm.xlu2 %4585, %v9432_v40   ;;  %v2585_v36 = vpop.permute.xlu2 %2584  ;;  %v2642_v28 = vsub.f32 %v9521_v0, %v7645_v17  ;;  %v9527_v0 = vstv %s6770_s8 }
 0x415   : > { %v4141_v2 = vsel %vm2713_vm1, 1.0, %v9239_v48  ;;  %v2636_v10 = vsub.f32 %v2585_v36, %v7645_v17  ;;  %vm2555_vm1 = vmand %vm2535_vm4, %vm7719_vm14  ;;  %vm3195_vm3 = vcmp.ne.s32.totalorder %v9327_v22, %v9527_v0 }
 0x416   : > { %v7849_v11 = vadd.f32 %v4141_v2, %v7407_v37  ;;  %v2658_v53 = vadd.f32 0.1, %v2642_v28  ;;  %v9524_v37 = vld [vmem:[#allocation45_spill] sm:$0xff]  ;;  %v9525_v2 = vld [vmem:[#allocation52_spill] sm:$0xff] }
 0x417   : > { %v2652_v45 = vadd.f32 0.1, %v2636_v10  ;;  %v4546_v51 = vpop.permute.xlu1 %4545  ;;  %v9526_v10 = vld [vmem:[#allocation17_spill] sm:$0xff] }
 0x418   : > { %v4548_v15 = vunpack.i.h.bf16 %v4546_v51  ;;  %v4547_v52 = vunpack.i.l.bf16 %v4546_v51  ;;  %vm3178_vm0 = vcmp.eq.s32.totalorder %v9526_v10, %v9525_v2  ;;  %v9528_v51 = vld [vmem:[#allocation42_spill] sm:$0xff] }
 0x419   : > { %v2668_v16 = vmax.f32 %v2652_v45, 0.0  ;;  %vm3211_vm2 = vmand %vm3178_vm0, %vm3195_vm3 }
 0x41a   : > { %vm7856_vm12 = vcmp.eq.s32.totalorder %v4548_v15, 1  ;;  %vm2522_vm4 = vcmp.eq.s32.totalorder %v4547_v52, 1  ;;  %vm9529_vm3 = vmand %vm7762_vm11, %vm7548_vm15 }
 0x41b   : > { %3010 = vperm.xlu1 %4584, %v9434_v6   ;;  %v2684_v46 = vsel %vm2555_vm1, %v2668_v16, 0.0  ;;  %v9523_v35 = vsel %vm7856_vm12, 4294967295, %v9522_v35  ;;  %vm2541_vm13 = vmand %vm2522_vm4, %vm7548_vm15 }
 0x41c   : > { %v7861_v4 = vadd.f32 %v2684_v46, %v9524_v37  ;;  %vm2716_vm5 = vcmp.gt.f32.partialorder %v2684_v46, 1e-16  ;;  %3014 = vperm.xlu2 %4585, %v9449_v27   ;;  %v2593_v36 = vpop.permute.xlu2 %2592  ;;  %v2674_v46 = vmax.f32 %v2658_v53, 0.0  ;;  %vm2557_vm0 = vmand %vm9529_vm3, %vm7719_vm14 }
 0x41d   : > { %v4144_v28 = vsel %vm2716_vm5, 1.0, %v9239_v48  ;;  %v2638_v45 = vsub.f32 %v2593_v36, %v7645_v17  ;;  %vm2561_vm5 = vmand %vm2541_vm13, %vm7719_vm14  ;;  %vm9530_vm13 = vcmp.lt.s32.totalorder %v9327_v22, 12 }
 0x41e   : > { %v7872_v15 = vadd.f32 %v4144_v28, %v9528_v51  ;;  %v2690_v53 = vsel %vm2561_vm5, %v2674_v46, 0.0  ;;  %vm3227_vm1 = vmand %vm3211_vm2, %vm9530_vm13  ;;  %v9531_v51 = vld [vmem:[#allocation64_spill] sm:$0xff]  ;;  %v9532_v46 = vld [vmem:[#allocation63_spill] sm:$0xff] }
 0x41f   : > { %v2654_v16 = vadd.f32 0.1, %v2638_v45  ;;  %v7892_v0 = vadd.f32 %v2690_v53, %v7488_v18  ;;  %vm2722_vm4 = vcmp.gt.f32.partialorder %v2690_v53, 1e-16  ;;  %vm2551_vm12 = vmand %vm7570_vm7, %vm7719_vm14  ;;  %v3245_v2 = vsel %vm3227_vm1, 1, %v9193_v14 }
 0x420   : > { %v4150_v34 = vsel %vm2722_vm4, 1.0, %v9239_v48  ;;  %vm9534_vm7 = vmand %vm7608_vm9, %vm7548_vm15 }
 0x421   : > { %v2670_v52 = vmax.f32 %v2654_v16, 0.0  ;;  %vm2560_vm2 = vmand %vm9534_vm7, %vm7719_vm14 }
 0x423   : > { %3022 = vperm.xlu1 %4584, %v9337_v38   ;;  %v2569_v37 = vpop.permute.xlu1 %2568  ;;  %v2686_v28 = vsel %vm2557_vm0, %v2670_v52, 0.0  ;;  %vm9542_vm0 = vmand %vm7795_vm10, %vm7548_vm15 }
 0x424   : > { %v2632_v36 = vsub.f32 %v2569_v37, %v7645_v17  ;;  %v7902_v16 = vadd.f32 %v2686_v28, %v9531_v51  ;;  %vm2718_vm11 = vcmp.gt.f32.partialorder %v2686_v28, 1e-16  ;;  %3026 = vperm.xlu2 %4585, %v9472_v42   ;;  %v2605_v18 = vpop.permute.xlu2 %2604  ;;  %v7906_v37 = vadd.f32 %v4150_v34, %v9532_v46  ;;  %v9535_v28 = vld [vmem:[#allocation60_spill] sm:$0xff]  ;;  %vm2563_vm4 = vmand %vm9542_vm0, %vm7719_vm14 }
 0x425   : > { %v4146_v52 = vsel %vm2718_vm11, 1.0, %v9239_v48  ;;  %v2641_v53 = vsub.f32 %v2605_v18, %v7645_v17  ;;  %vm9545_vm10 = vmand %vm7826_vm6, %vm7548_vm15 }
 0x426   : > { %v2648_v45 = vadd.f32 0.1, %v2632_v36  ;;  %v7911_v44 = vadd.f32 %v4146_v52, %v7533_v23  ;;  %v9537_v52 = vld [vmem:[#allocation58_spill] sm:$0xff] }
 0x427   : > { %v2657_v51 = vadd.f32 0.1, %v2641_v53 }
 0x428   : > { %v2664_v36 = vmax.f32 %v2648_v45, 0.0  ;;  %9533 = vst [vmem:[#allocation26_spill] sm:$0xff] %v7911_v44  ;;  %v9538_v44 = vld [vmem:[#allocation24_spill] sm:$0xff] }
 0x429   : > { %v2673_v18 = vmax.f32 %v2657_v51, 0.0 }
 0x42a   : > { %v2680_v38 = vsel %vm2551_vm12, %v2664_v36, 0.0  ;;  %vm9539_vm12 = vmand %vm7715_vm8, %vm7548_vm15 }
 0x42b   : > { %v7922_v34 = vadd.f32 %v2680_v38, %v9535_v28  ;;  %vm2712_vm5 = vcmp.gt.f32.partialorder %v2680_v38, 1e-16  ;;  %4587 = vset.pattern.permute.xlu1 %v9193_v14  ;;  %v2581_v23 = vpop.permute.xlu1 %2580  ;;  %v2689_v33 = vsel %vm2560_vm2, %v2673_v18, 0.0  ;;  %vm2554_vm1 = vmand %vm9539_vm12, %vm7719_vm14 }
 0x42c   : > { %v4140_v45 = vsel %vm2712_vm5, 1.0, %v9239_v48  ;;  %v2635_v46 = vsub.f32 %v2581_v23, %v7645_v17  ;;  %3264 = vperm.xlu1 %4587, %v3245_v2   ;;  %v7931_v42 = vadd.f32 %v2689_v33, %v9538_v44  ;;  %vm2721_vm9 = vcmp.gt.f32.partialorder %v2689_v33, 1e-16  ;;  %4588 = vset.pattern.permute.xlu2 %v9193_v14  ;;  %v2617_v38 = vpop.permute.xlu2 %2616  ;;  %v9540_v33 = vld [vmem:[#allocation28_spill] sm:$0xff]  ;;  %vm2556_vm2 = vmand %vm9545_vm10, %vm7719_vm14 }
 0x42d   : > { %9536 = vst [vmem:[#allocation32_spill] sm:$0xff] %v7922_v34  ;;  %v7928_v36 = vadd.f32 %v4140_v45, %v9537_v52  ;;  %v4149_v28 = vsel %vm2721_vm9, 1.0, %v9239_v48  ;;  %v2644_v51 = vsub.f32 %v2617_v38, %v7645_v17  ;;  %4590 = vperm.xlu2 %4588, %v9193_v14   ;;  %vm9546_vm5 = vnez %v9499_v1 }
 0x42e   : > { %v2651_v53 = vadd.f32 0.1, %v2635_v46  ;;  %v7945_v2 = vadd.f32 %v4149_v28, %v7589_v54  ;;  %vm9547_vm9 = vmand %vm9546_vm5, %vm7548_vm15  ;;  %vm9563_vm5 = vnez %v9523_v35 }
 0x42f   : > { %v2660_v23 = vadd.f32 0.1, %v2644_v51  ;;  %v9543_v51 = vld [vmem:[#allocation18_spill] sm:$0xff]  ;;  %vm2566_vm12 = vmand %vm9547_vm9, %vm7719_vm14 }
 0x430   : > { %v2667_v34 = vmax.f32 %v2651_v53, 0.0  ;;  %v9541_v53 = vld [vmem:[#allocation15_spill] sm:$0xff]  ;;  %vm9544_vm11 = vcmp.lt.s32.totalorder %v9543_v51, 12  ;;  %vm9564_vm9 = vmand %vm9563_vm5, %vm7548_vm15 }
 0x431   : > { %v2676_v52 = vmax.f32 %v2660_v23, 0.0  ;;  %vm2844_vm8 = vcmp.ne.s32.totalorder %v9541_v53, %v9540_v33 }
 0x432   : > { %v2683_v44 = vsel %vm2554_vm1, %v2667_v34, 0.0  ;;  %vm2845_vm7 = vmand %vm2844_vm8, %vm9544_vm11 }
 0x433   : > { %v7948_v45 = vadd.f32 %v2683_v44, %v7593_v59  ;;  %vm2715_vm3 = vcmp.gt.f32.partialorder %v2683_v44, 1e-16  ;;  %v2589_v18 = vpop.permute.xlu1 %2588  ;;  %v2692_v59 = vsel %vm2563_vm4, %v2676_v52, 0.0  ;;  %v2926_v52 = vsel %vm2845_vm7, 1, %v9193_v14 }
 0x434   : > { %v4143_v46 = vsel %vm2715_vm3, 1.0, %v9239_v48  ;;  %v2637_v21 = vsub.f32 %v2589_v18, %v7645_v17  ;;  %4595 = vperm.xlu1 %4587, %v9193_v14   ;;  %v7966_v38 = vadd.f32 %v2692_v59, %v7613_v5  ;;  %vm2724_vm13 = vcmp.gt.f32.partialorder %v2692_v59, 1e-16  ;;  %v2629_v28 = vpop.permute.xlu2 %2628 }
 0x435   : > { %v7963_v54 = vadd.f32 %v4143_v46, %v7606_v29  ;;  %v4152_v44 = vsel %vm2724_vm13, 1.0, %v9239_v48  ;;  %v2647_v23 = vsub.f32 %v2629_v28, %v7645_v17  ;;  %4600 = vperm.xlu2 %4588, %v9193_v14   ;;  %v7985_v5 = vperm.slane %v7642_v55, 5  ;;  %v9551_v28 = vld [vmem:[#allocation49_spill] sm:$0xff] }
 0x436   : > { %v2653_v34 = vadd.f32 0.1, %v2637_v21  ;;  %v7982_v29 = vadd.f32 %v4152_v44, %v7635_v58 }
 0x437   : > { %v2663_v46 = vadd.f32 0.1, %v2647_v23  ;;  %v3032_v44 = vsub.f32 %v9551_v28, %v7985_v5  ;;  %v2927_v23 = vperm.slane %v2926_v52, 0  ;;  %v2947_v52 = vstv %s2946_s13 }
 0x438   : > { %v2669_v47 = vmax.f32 %v2653_v34, 0.0  ;;  %v9549_v34 = vld [vmem:[#allocation25_spill] sm:$0xff]  ;;  %vm8033_vm7 = vcmp.eq.s32.totalorder %v2947_v52, 1 }
 0x439   : > { %v2679_v33 = vmax.f32 %v2663_v46, 0.0  ;;  %v9555_v46 = vld [vmem:[#allocation23_spill] sm:$0xff]  ;;  %vm8026_vm4 = vcmp.eq.s32.totalorder %v2927_v23, 1 }
 0x43a   : > { %v2685_v18 = vsel %vm2556_vm2, %v2669_v47, 0.0 }
 0x43b   : > { %v7996_v12 = vadd.f32 %v2685_v18, %v7659_v3  ;;  %vm2717_vm6 = vcmp.gt.f32.partialorder %v2685_v18, 1e-16  ;;  %v2601_v58 = vpop.permute.xlu1 %2600  ;;  %v2695_v47 = vsel %vm2566_vm12, %v2679_v33, 0.0  ;;  %v9552_v18 = vld [vmem:[#allocation40_spill] sm:$0xff]  ;;  %vm2562_vm12 = vmand %vm9564_vm9, %vm7719_vm14 }
 0x43c   : > { %v4145_v21 = vsel %vm2717_vm6, 1.0, %v9239_v48  ;;  %v2640_v59 = vsub.f32 %v2601_v58, %v7645_v17  ;;  %4605 = vperm.xlu1 %4587, %v9193_v14   ;;  %vm9553_vm1 = vnez %v9552_v18  ;;  %v8016_v58 = vadd.f32 %v2695_v47, %v9555_v46 }
 0x43d   : > { %9548 = vst [vmem:[#allocation57_spill] sm:$0xff] %v7996_v12  ;;  %v8004_v1 = vadd.f32 %v4145_v21, %v9549_v34  ;;  %vm9554_vm3 = vmand %vm9553_vm1, %vm7548_vm15  ;;  %vm2727_vm0 = vcmp.gt.f32.partialorder %v2695_v47, 1e-16  ;;  %4610 = vperm.xlu2 %4588, %v9193_v14   ;;  %v8020_v33 = vpop.permute.xlu2 %4560  ;;  %v3048_v18 = vadd.f32 0.1, %v3032_v44 }
 0x43e   : > { %v2656_v3 = vadd.f32 0.1, %v2640_v59  ;;  %vm2559_vm8 = vmand %vm9554_vm3, %vm7719_vm14  ;;  %v4155_v21 = vsel %vm2727_vm0, 1.0, %v9239_v48  ;;  %v4562_v28 = vunpack.i.l.bf16 %v8020_v33 }
 0x43f   : > { %9550 = vst [vmem:[#allocation29_spill] sm:$0xff] %v8004_v1  ;;  %v8023_v59 = vadd.f32 %v4155_v21, %v7702_v60  ;;  %v9561_v60 = vld [vmem:[#allocation51_spill] sm:$0xff] }
 0x440   : > { %v2672_v34 = vmax.f32 %v2656_v3, 0.0  ;;  %vm2912_vm11 = vcmp.eq.s32.totalorder %v4562_v28, 1  ;;  %v3037_v21 = vsub.f32 %v9561_v60, %v7985_v5 }
 0x441   : > { %9556 = vst [vmem:[#allocation33_spill] sm:$0xff] %v8023_v59  ;;  %vm2931_vm10 = vmand %vm2912_vm11, %vm8026_vm4 }
 0x442   : > { %v2688_v1 = vsel %vm2559_vm8, %v2672_v34, 0.0  ;;  %v9562_v34 = vmov 6   ;;  %vm2951_vm2 = vmand %vm2931_vm10, %vm8033_vm7  ;;  %v3053_v52 = vadd.f32 0.1, %v3037_v21 }
 0x443   : > { %v8031_v47 = vadd.f32 %v2688_v1, %v7713_v57  ;;  %vm2720_vm13 = vcmp.gt.f32.partialorder %v2688_v1, 1e-16  ;;  %v2613_v3 = vpop.permute.xlu1 %2612  ;;  %v3064_v57 = vmax.f32 %v3048_v18, 0.0 }
 0x444   : > { %v4148_v44 = vsel %vm2720_vm13, 1.0, %v9239_v48  ;;  %v2643_v23 = vsub.f32 %v2613_v3, %v7645_v17  ;;  %4614 = vset.pattern.permute.xlu1 %v9562_v34 }
 0x445   : > { %v8043_v59 = vadd.f32 %v4148_v44, %v7731_v50  ;;  %3364 = vperm.xlu1 %4614, %v5657_v20   ;;  %v3080_v28 = vsel %vm2951_vm2, %v3064_v57, 0.0  ;;  %4615 = vset.pattern.permute.xlu2 %v9562_v34  ;;  %v8051_v3 = vpop.permute.xlu2 %4570  ;;  %v3069_v57 = vmax.f32 %v3053_v52, 0.0 }
 0x446   : > { %v2659_v1 = vadd.f32 0.1, %v2643_v23  ;;  %v8061_v50 = vadd.f32 %v3080_v28, %v7747_v49  ;;  %vm3112_vm6 = vcmp.gt.f32.partialorder %v3080_v28, 1e-16  ;;  %v4573_v18 = vunpack.i.h.bf16 %v8051_v3  ;;  %3368 = vperm.xlu2 %4615, %v5666_v31   ;;  %v9565_v49 = vld [vmem:[#allocation38_spill] sm:$0xff] }
 0x447   : > { %v4158_v21 = vsel %vm3112_vm6, 1.0, %v9239_v48 }
 0x448   : > { %v2675_v60 = vmax.f32 %v2659_v1, 0.0  ;;  %v8067_v23 = vadd.f32 %v4158_v21, %v7752_v24  ;;  %vm2917_vm3 = vcmp.eq.s32.totalorder %v4573_v18, 1  ;;  %v3043_v1 = vsub.f32 %v9565_v49, %v7985_v5 }
 0x449   : > { %vm2936_vm8 = vmand %vm2917_vm3, %vm8026_vm4 }
 0x44a   : > { %v2691_v44 = vsel %vm2562_vm12, %v2675_v60, 0.0  ;;  %vm2956_vm0 = vmand %vm2936_vm8, %vm8033_vm7  ;;  %v9566_v60 = vld [vmem:[#allocation21_spill] sm:$0xff] }
 0x44b   : > { %v8070_v35 = vadd.f32 %v2691_v44, %v7755_v63  ;;  %vm2723_vm1 = vcmp.gt.f32.partialorder %v2691_v44, 1e-16  ;;  %v2625_v34 = vpop.permute.xlu1 %2624  ;;  %v3085_v63 = vsel %vm2956_vm0, %v3069_v57, 0.0  ;;  %vm9567_vm13 = vnez %v9566_v60 }
 0x44c   : > { %v4151_v28 = vsel %vm2723_vm1, 1.0, %v9239_v48  ;;  %v2646_v31 = vsub.f32 %v2625_v34, %v7645_v17  ;;  %vm9568_vm11 = vmand %vm9567_vm13, %vm7548_vm15  ;;  %v8092_v17 = vadd.f32 %v3085_v63, %v7785_v9  ;;  %vm3117_vm2 = vcmp.gt.f32.partialorder %v3085_v63, 1e-16 }
 0x44d   : > { %v8079_v24 = vadd.f32 %v4151_v28, %v7768_v62  ;;  %3376 = vperm.xlu1 %4614, %v5696_v32   ;;  %vm2565_vm10 = vmand %vm9568_vm11, %vm7719_vm14  ;;  %v3059_v62 = vadd.f32 0.1, %v3043_v1  ;;  %v4163_v18 = vsel %vm3117_vm2, 1.0, %v9239_v48  ;;  %v8095_v44 = vpop.permute.xlu2 %4580 }
 0x44e   : > { %v2662_v52 = vadd.f32 0.1, %v2646_v31  ;;  %v8098_v34 = vadd.f32 %v4163_v18, %v7789_v56  ;;  %v4583_v8 = vunpack.i.h.bf16 %v8095_v44  ;;  %3380 = vperm.xlu2 %4615, %v9409_v26  }
 0x44f   : > { %v3075_v9 = vmax.f32 %v3059_v62, 0.0 }
 0x450   : > { %v2678_v21 = vmax.f32 %v2662_v52, 0.0  ;;  %vm2923_vm14 = vcmp.eq.s32.totalorder %v4583_v8, 1 }
 0x451   : > { %vm2942_vm5 = vmand %vm2923_vm14, %vm8026_vm4 }
 0x452   : > { %v2694_v41 = vsel %vm2565_vm10, %v2678_v21, 0.0  ;;  %vm2962_vm9 = vmand %vm2942_vm5, %vm8033_vm7 }
 0x453   : > { %v8103_v57 = vadd.f32 %v2694_v41, %v7793_v61  ;;  %vm2726_vm15 = vcmp.gt.f32.partialorder %v2694_v41, 1e-16  ;;  %v3091_v28 = vsel %vm2962_vm9, %v3075_v9, 0.0 }
 0x454   : > { %v4154_v49 = vsel %vm2726_vm15, 1.0, %v9239_v48  ;;  %v2867_v1 = vpop.permute.xlu1 %2866  ;;  %v8115_v61 = vadd.f32 %v3091_v28, %v7813_v39  ;;  %vm3123_vm12 = vcmp.gt.f32.partialorder %v3091_v28, 1e-16 }
 0x455   : > { %v8109_v56 = vadd.f32 %v4154_v49, %v7803_v7  ;;  %3384 = vperm.xlu1 %4614, %v9415_v30   ;;  %v4169_v31 = vsel %vm3123_vm12, 1.0, %v9239_v48  ;;  %vm2911_vm6 = vcmp.eq.s32.totalorder %v2867_v1, 1 }
 0x456   : > { %v8119_v63 = vadd.f32 %v4169_v31, %v7817_v19  ;;  %3388 = vperm.xlu2 %4615, %v9422_v13   ;;  %v2971_v7 = vpop.permute.xlu2 %2970  ;;  %vm2930_vm1 = vmand %vm2911_vm6, %vm8026_vm4  ;;  %v2864_v19 = vpop.permute.xlu0 %2863  ;;  %v9569_v13 = vld [vmem:[#allocation53_spill] sm:$0xff] }
 0x457   : > { %v3031_v52 = vsub.f32 %v2971_v7, %v7985_v5  ;;  %vm2950_vm3 = vmand %vm2930_vm1, %vm8033_vm7  ;;  %v3040_v8 = vsub.f32 %v9569_v13, %v7985_v5  ;;  %vm2910_vm12 = vcmp.eq.s32.totalorder %v2864_v19, 1  ;;  %v9578_v19 = vld [vmem:[#allocation41_spill] sm:$0xff] }
 0x459   : > { %v3047_v60 = vadd.f32 0.1, %v3031_v52  ;;  %v3056_v7 = vadd.f32 0.1, %v3040_v8  ;;  %v4572_v52 = vunpack.i.l.bf16 %v8051_v3 }
 0x45b   : > { %v3063_v18 = vmax.f32 %v3047_v60, 0.0  ;;  %vm8161_vm2 = vcmp.eq.s32.totalorder %v4572_v52, 1 }
 0x45c   : > { %v8125_v62 = vpop.permute.xlu1 %4565  ;;  %vm2935_vm1 = vmand %vm8161_vm2, %vm8026_vm4 }
 0x45d   : > { %v4567_v39 = vunpack.i.l.bf16 %v8125_v62  ;;  %3396 = vperm.xlu1 %4614, %v9423_v43   ;;  %v3079_v21 = vsel %vm2950_vm3, %v3063_v18, 0.0 }
 0x45e   : > { %v8134_v41 = vadd.f32 %v3079_v21, %v7839_v25  ;;  %vm3111_vm8 = vcmp.gt.f32.partialorder %v3079_v21, 1e-16  ;;  %3400 = vperm.xlu2 %4615, %v9432_v40   ;;  %v2983_v43 = vpop.permute.xlu2 %2982  ;;  %v3072_v21 = vmax.f32 %v3056_v7, 0.0  ;;  %v8169_v9 = vpop.permute.xlu0 %4639 }
 0x45f   : > { %vm8136_vm0 = vcmp.eq.s32.totalorder %v4567_v39, 1  ;;  %v4157_v49 = vsel %vm3111_vm8, 1.0, %v9239_v48  ;;  %v3034_v1 = vsub.f32 %v2983_v43, %v7985_v5 }
 0x460   : > { %v8144_v28 = vadd.f32 %v4157_v49, %v7849_v11  ;;  %vm2933_vm13 = vmand %vm8136_vm0, %vm8026_vm4 }
 0x461   : > { %v3050_v25 = vadd.f32 0.1, %v3034_v1  ;;  %vm2953_vm11 = vmand %vm2933_vm13, %vm8033_vm7  ;;  %v9576_v1 = vld [vmem:[#allocation56_spill] sm:$0xff] }
 0x462   : > { %vm3576_vm5 = vcmp.eq.s32.totalorder %v9526_v10, %v9576_v1  ;;  %vm8198_vm0 = vmand %vm2910_vm12, %vm8026_vm4 }
 0x463   : > { %v3066_v39 = vmax.f32 %v3050_v25, 0.0 }
 0x464   : > { %v8150_v31 = vpop.permute.xlu1 %4575 }
 0x465   : > { %v4577_v60 = vunpack.i.l.bf16 %v8150_v31  ;;  %3408 = vperm.xlu1 %4614, %v9434_v6   ;;  %v3082_v18 = vsel %vm2953_vm11, %v3066_v39, 0.0  ;;  %vm2955_vm11 = vmand %vm2935_vm1, %vm8033_vm7 }
 0x466   : > { %v8166_v3 = vadd.f32 %v3082_v18, %v7861_v4  ;;  %vm3114_vm15 = vcmp.gt.f32.partialorder %v3082_v18, 1e-16  ;;  %3412 = vperm.xlu2 %4615, %v9449_v27   ;;  %v2991_v8 = vpop.permute.xlu2 %2990  ;;  %v9577_v4 = vstv %s7025_s10  ;;  %v4642_v27 = vunpack.i.h.bf16 %v8169_v9 }
 0x467   : > { %vm8157_vm10 = vcmp.eq.s32.totalorder %v4577_v60, 1  ;;  %v4160_v43 = vsel %vm3114_vm15, 1.0, %v9239_v48  ;;  %v3036_v49 = vsub.f32 %v2991_v8, %v7985_v5  ;;  %vm3593_vm9 = vcmp.ne.s32.totalorder %v9327_v22, %v9577_v4  ;;  %vm2949_vm15 = vmand %vm8198_vm0, %vm8033_vm7  ;;  %v9584_v4 = vld [vmem:[#allocation43_spill] sm:$0xff] }
 0x468   : > { %vm2939_vm14 = vmand %vm8157_vm10, %vm8026_vm4  ;;  %v8184_v25 = vadd.f32 %v4160_v43, %v7872_v15  ;;  %vm8204_vm13 = vcmp.eq.s32.totalorder %v4642_v27, 1  ;;  %vm9583_vm10 = vcmp.lt.s32.totalorder %v9327_v22, 12  ;;  %v4563_v43 = vunpack.i.h.bf16 %v8020_v33 }
 0x469   : > { %vm2959_vm6 = vmand %vm2939_vm14, %vm8033_vm7  ;;  %v3052_v52 = vadd.f32 0.1, %v3036_v49 }
 0x46a   : > { %v3088_v7 = vsel %vm2959_vm6, %v3072_v21, 0.0  ;;  %vm3609_vm8 = vmand %vm3576_vm5, %vm3593_vm9  ;;  %vm8236_vm12 = vcmp.eq.s32.totalorder %v4563_v43, 1 }
 0x46b   : > { %v8193_v10 = vadd.f32 %v3088_v7, %v7892_v0  ;;  %vm3120_vm3 = vcmp.gt.f32.partialorder %v3088_v7, 1e-16  ;;  %v3068_v11 = vmax.f32 %v3052_v52, 0.0  ;;  %vm3625_vm2 = vmand %vm3609_vm8, %vm9583_vm10  ;;  %v9585_v52 = vld [vmem:[#allocation26_spill] sm:$0xff] }
 0x46c   : > { %v4166_v39 = vsel %vm3120_vm3, 1.0, %v9239_v48  ;;  %vm2938_vm5 = vmand %vm8204_vm13, %vm8026_vm4 }
 0x46d   : > { %3420 = vperm.xlu1 %4614, %v9578_v19   ;;  %v2967_v60 = vpop.permute.xlu1 %2966  ;;  %v8211_v0 = vadd.f32 %v4166_v39, %v7906_v37  ;;  %v3084_v13 = vsel %vm2955_vm11, %v3068_v11, 0.0  ;;  %vm2958_vm9 = vmand %vm2938_vm5, %vm8033_vm7  ;;  %v4582_v39 = vunpack.i.l.bf16 %v8095_v44  ;;  %v9588_v11 = vld [vmem:[#allocation32_spill] sm:$0xff] }
 0x46e   : > { %v3030_v18 = vsub.f32 %v2967_v60, %v7985_v5  ;;  %v8221_v49 = vadd.f32 %v3084_v13, %v7902_v16  ;;  %vm3116_vm14 = vcmp.gt.f32.partialorder %v3084_v13, 1e-16  ;;  %3424 = vperm.xlu2 %4615, %v9584_v4   ;;  %v3003_v37 = vpop.permute.xlu2 %3002  ;;  %v3643_v16 = vsel %vm3625_vm2, 1, %v9193_v14  ;;  %vm2932_vm1 = vmand %vm8236_vm12, %vm8026_vm4 }
 0x46f   : > { %v4162_v22 = vsel %vm3116_vm14, 1.0, %v9239_v48  ;;  %v3039_v7 = vsub.f32 %v3003_v37, %v7985_v5  ;;  %vm8254_vm3 = vcmp.eq.s32.totalorder %v4582_v39, 1  ;;  %vm2952_vm0 = vmand %vm2932_vm1, %vm8033_vm7 }
 0x470   : > { %v3046_v8 = vadd.f32 0.1, %v3030_v18  ;;  %v8231_v19 = vadd.f32 %v4162_v22, %v9585_v52  ;;  %vm2941_vm13 = vmand %vm8254_vm3, %vm8026_vm4 }
 0x471   : > { %v3055_v60 = vadd.f32 0.1, %v3039_v7  ;;  %v4568_v7 = vunpack.i.h.bf16 %v8125_v62  ;;  %vm2961_vm14 = vmand %vm2941_vm13, %vm8033_vm7 }
 0x472   : > { %v3062_v27 = vmax.f32 %v3046_v8, 0.0 }
 0x473   : > { %v3071_v8 = vmax.f32 %v3055_v60, 0.0  ;;  %vm8283_vm11 = vcmp.eq.s32.totalorder %v4568_v7, 1 }
 0x474   : > { %v3078_v33 = vsel %vm2949_vm15, %v3062_v27, 0.0  ;;  %v4641_v27 = vunpack.i.l.bf16 %v8169_v9  ;;  %vm2934_vm5 = vmand %vm8283_vm11, %vm8026_vm4  ;;  %v9605_v9 = vld [vmem:[#allocation55_spill] sm:$0xff] }
 0x475   : > { %v8242_v18 = vadd.f32 %v3078_v33, %v9588_v11  ;;  %vm3110_vm6 = vcmp.gt.f32.partialorder %v3078_v33, 1e-16  ;;  %4658 = vset.pattern.permute.xlu1 %v9193_v14  ;;  %v2979_v21 = vpop.permute.xlu1 %2978  ;;  %v3087_v44 = vsel %vm2958_vm9, %v3071_v8, 0.0  ;;  %vm9596_vm9 = vcmp.lt.s32.totalorder %v9543_v51, 12 }
 0x476   : > { %v4156_v13 = vsel %vm3110_vm6, 1.0, %v9239_v48  ;;  %v3033_v37 = vsub.f32 %v2979_v21, %v7985_v5  ;;  %3662 = vperm.xlu1 %4658, %v3643_v16   ;;  %v8260_v52 = vadd.f32 %v3087_v44, %v7931_v42  ;;  %vm3119_vm8 = vcmp.gt.f32.partialorder %v3087_v44, 1e-16  ;;  %4659 = vset.pattern.permute.xlu2 %v9193_v14  ;;  %v8263_v16 = vpop.permute.xlu0 %4644 }
 0x477   : > { %v8248_v43 = vadd.f32 %v4156_v13, %v7928_v36  ;;  %v3015_v36 = vpop.permute.xlu2 %3014  ;;  %v4165_v33 = vsel %vm3119_vm8, 1.0, %v9239_v48  ;;  %4661 = vperm.xlu2 %4659, %v9193_v14   ;;  %v4647_v39 = vunpack.i.h.bf16 %v8263_v16  ;;  %vm8326_vm3 = vcmp.eq.s32.totalorder %v4641_v27, 1  ;;  %vm2954_vm8 = vmand %vm2934_vm5, %vm8033_vm7 }
 0x478   : > { %v3049_v22 = vadd.f32 0.1, %v3033_v37  ;;  %v3042_v11 = vsub.f32 %v3015_v36, %v7985_v5  ;;  %v8277_v42 = vadd.f32 %v4165_v33, %v7945_v2  ;;  %v9593_v37 = vld [vmem:[#allocation52_spill] sm:$0xff]  ;;  %vm2937_vm11 = vmand %vm8326_vm3, %vm8026_vm4 }
 0x479   : > { %vm3242_vm2 = vcmp.ne.s32.totalorder %v9541_v53, %v9593_v37  ;;  %vm8296_vm15 = vcmp.eq.s32.totalorder %v4647_v39, 1 }
 0x47a   : > { %v3065_v60 = vmax.f32 %v3049_v22, 0.0  ;;  %v3058_v21 = vadd.f32 0.1, %v3042_v11  ;;  %vm8311_vm12 = vmand %vm3242_vm2, %vm9596_vm9 }
 0x47b   : > { %vm2944_vm1 = vmand %vm8296_vm15, %vm8026_vm4 }
 0x47c   : > { %v3081_v62 = vsel %vm2952_vm0, %v3065_v60, 0.0  ;;  %v3074_v44 = vmax.f32 %v3058_v21, 0.0  ;;  %v9599_v21 = vmov 7   ;;  %vm2964_vm0 = vmand %vm2944_vm1, %vm8033_vm7 }
 0x47d   : > { %v8288_v15 = vadd.f32 %v3081_v62, %v7948_v45  ;;  %vm3113_vm10 = vcmp.gt.f32.partialorder %v3081_v62, 1e-16  ;;  %v2987_v8 = vpop.permute.xlu1 %2986 }
 0x47e   : > { %v4159_v2 = vsel %vm3113_vm10, 1.0, %v9239_v48  ;;  %v3035_v22 = vsub.f32 %v2987_v8, %v7985_v5  ;;  %4666 = vperm.xlu1 %4658, %v9193_v14   ;;  %v3090_v36 = vsel %vm2961_vm14, %v3074_v44, 0.0  ;;  %v8337_v8 = vperm.slane %v7642_v55, 6  ;;  %v9602_v44 = vld [vmem:[#allocation57_spill] sm:$0xff]  ;;  %vm2957_vm10 = vmand %vm2937_vm11, %vm8033_vm7 }
 0x47f   : > { %v8303_v45 = vadd.f32 %v4159_v2, %v7963_v54  ;;  %v8316_v60 = vadd.f32 %v3090_v36, %v7966_v38  ;;  %vm3122_vm6 = vcmp.gt.f32.partialorder %v3090_v36, 1e-16  ;;  %v3027_v11 = vpop.permute.xlu2 %3026  ;;  %4670 = vset.pattern.permute.xlu2 %v9599_v21  ;;  %v9603_v36 = vld [vmem:[#allocation29_spill] sm:$0xff] }
 0x480   : > { %v3051_v33 = vadd.f32 0.1, %v3035_v22  ;;  %v4168_v54 = vsel %vm3122_vm6, 1.0, %v9239_v48  ;;  %v3045_v62 = vsub.f32 %v3027_v11, %v7985_v5  ;;  %3762 = vperm.xlu2 %4670, %v5657_v20   ;;  %v9604_v11 = vld [vmem:[#allocation22_spill] sm:$0xff] }
 0x481   : > { %v8333_v38 = vadd.f32 %v4168_v54, %v7982_v29  ;;  %v3324_v29 = vsel %vm8311_vm12, 1, %v9193_v14  ;;  %v3430_v54 = vsub.f32 %v9605_v9, %v8337_v8 }
 0x482   : > { %v3067_v39 = vmax.f32 %v3051_v33, 0.0  ;;  %v3061_v2 = vadd.f32 0.1, %v3045_v62 }
 0x484   : > { %v3083_v37 = vsel %vm2954_vm8, %v3067_v39, 0.0  ;;  %v3077_v55 = vmax.f32 %v3061_v2, 0.0  ;;  %v4578_v39 = vunpack.i.h.bf16 %v8150_v31 }
 0x485   : > { %v8342_v22 = vadd.f32 %v3083_v37, %v9602_v44  ;;  %vm3115_vm13 = vcmp.gt.f32.partialorder %v3083_v37, 1e-16  ;;  %v2999_v27 = vpop.permute.xlu1 %2998  ;;  %v3325_v37 = vperm.slane %v3324_v29, 0  ;;  %v3446_v29 = vadd.f32 0.1, %v3430_v54 }
 0x486   : > { %v4161_v20 = vsel %vm3115_vm13, 1.0, %v9239_v48  ;;  %v3038_v7 = vsub.f32 %v2999_v27, %v7985_v5  ;;  %4672 = vset.pattern.permute.xlu1 %v9599_v21  ;;  %v3093_v62 = vsel %vm2964_vm0, %v3077_v55, 0.0  ;;  %vm8376_vm15 = vcmp.eq.s32.totalorder %v4578_v39, 1 }
 0x487   : > { %v8357_v33 = vadd.f32 %v4161_v20, %v9603_v36  ;;  %3770 = vperm.xlu1 %4672, %v9604_v11   ;;  %v8366_v21 = vadd.f32 %v3093_v62, %v8016_v58  ;;  %vm3125_vm2 = vcmp.gt.f32.partialorder %v3093_v62, 1e-16  ;;  %v8369_v27 = vpop.permute.xlu2 %4590  ;;  %v3345_v20 = vstv %s3344_s14  ;;  %v9606_v36 = vld [vmem:[#allocation33_spill] sm:$0xff]  ;;  %vm2940_vm6 = vmand %vm8376_vm15, %vm8026_vm4 }
 0x488   : > { %v3054_v13 = vadd.f32 0.1, %v3038_v7  ;;  %v4171_v2 = vsel %vm3125_vm2, 1.0, %v9239_v48  ;;  %v4592_v31 = vunpack.i.l.bf16 %v8369_v27  ;;  %3774 = vperm.xlu2 %4670, %v5696_v32   ;;  %vm8380_vm14 = vcmp.eq.s32.totalorder %v3325_v37, 1  ;;  %v9613_v32 = vld [vmem:[#allocation46_spill] sm:$0xff]  ;;  %vm2960_vm8 = vmand %vm2940_vm6, %vm8033_vm7 }
 0x489   : > { %v8372_v11 = vadd.f32 %v4171_v2, %v9606_v36  ;;  %vm8387_vm12 = vcmp.eq.s32.totalorder %v3345_v20, 1  ;;  %v3435_v54 = vsub.f32 %v9613_v32, %v8337_v8  ;;  %v3462_v2 = vmax.f32 %v3446_v29, 0.0 }
 0x48a   : > { %v3070_v44 = vmax.f32 %v3054_v13, 0.0  ;;  %vm3310_vm9 = vcmp.eq.s32.totalorder %v4592_v31, 1 }
 0x48b   : > { %vm3329_vm1 = vmand %vm3310_vm9, %vm8380_vm14  ;;  %v3451_v36 = vadd.f32 0.1, %v3435_v54 }
 0x48c   : > { %v3086_v58 = vsel %vm2957_vm10, %v3070_v44, 0.0  ;;  %v4646_v44 = vunpack.i.l.bf16 %v8263_v16  ;;  %vm3349_vm3 = vmand %vm3329_vm1, %vm8387_vm12 }
 0x48d   : > { %v8385_v9 = vadd.f32 %v3086_v58, %v8031_v47  ;;  %vm3118_vm5 = vcmp.gt.f32.partialorder %v3086_v58, 1e-16  ;;  %v3011_v62 = vpop.permute.xlu1 %3010  ;;  %v3478_v31 = vsel %vm3349_vm3, %v3462_v2, 0.0 }
 0x48e   : > { %v4164_v39 = vsel %vm3118_vm5, 1.0, %v9239_v48  ;;  %v3041_v37 = vsub.f32 %v3011_v62, %v7985_v5  ;;  %vm3510_vm0 = vcmp.gt.f32.partialorder %v3478_v31, 1e-16  ;;  %vm8417_vm13 = vcmp.eq.s32.totalorder %v4646_v44, 1 }
 0x48f   : > { %v8400_v47 = vadd.f32 %v4164_v39, %v8043_v59  ;;  %3778 = vperm.xlu1 %4672, %v9409_v26   ;;  %v8408_v55 = vpop.permute.xlu2 %4600  ;;  %v8413_v26 = vadd.f32 %v3478_v31, %v8061_v50  ;;  %v4174_v29 = vsel %vm3510_vm0, 1.0, %v9239_v48  ;;  %v3467_v39 = vmax.f32 %v3451_v36, 0.0  ;;  %vm2943_vm5 = vmand %vm8417_vm13, %vm8026_vm4 }
 0x490   : > { %v3057_v20 = vadd.f32 0.1, %v3041_v37  ;;  %v4603_v59 = vunpack.i.h.bf16 %v8408_v55  ;;  %3782 = vperm.xlu2 %4670, %v9415_v30   ;;  %v8423_v32 = vadd.f32 %v4174_v29, %v8067_v23  ;;  %v9616_v37 = vld [vmem:[#allocation44_spill] sm:$0xff]  ;;  %vm2963_vm6 = vmand %vm2943_vm5, %vm8033_vm7 }
 0x491   : > { %v3441_v30 = vsub.f32 %v9616_v37, %v8337_v8 }
 0x492   : > { %v3073_v58 = vmax.f32 %v3057_v20, 0.0  ;;  %vm3315_vm10 = vcmp.eq.s32.totalorder %v4603_v59, 1 }
 0x493   : > { %vm3334_vm2 = vmand %vm3315_vm10, %vm8380_vm14 }
 0x494   : > { %v3089_v62 = vsel %vm2960_vm8, %v3073_v58, 0.0  ;;  %vm3354_vm15 = vmand %vm3334_vm2, %vm8387_vm12 }
 0x495   : > { %v8426_v54 = vadd.f32 %v3089_v62, %v8070_v35  ;;  %vm3121_vm11 = vcmp.gt.f32.partialorder %v3089_v62, 1e-16  ;;  %v3023_v50 = vpop.permute.xlu1 %3022  ;;  %v9617_v35 = vld [vmem:[#allocation30_spill] sm:$0xff]  ;;  %v3483_v20 = vsel %vm3354_vm15, %v3467_v39, 0.0 }
 0x496   : > { %v4167_v2 = vsel %vm3121_vm11, 1.0, %v9239_v48  ;;  %v3044_v44 = vsub.f32 %v3023_v50, %v7985_v5  ;;  %v8445_v31 = vadd.f32 %v3483_v20, %v8092_v17  ;;  %vm3515_vm9 = vcmp.gt.f32.partialorder %v3483_v20, 1e-16 }
 0x497   : > { %v8435_v23 = vadd.f32 %v4167_v2, %v8079_v24  ;;  %3790 = vperm.xlu1 %4672, %v9617_v35   ;;  %v3457_v5 = vadd.f32 0.1, %v3441_v30  ;;  %v4179_v24 = vsel %vm3515_vm9, 1.0, %v9239_v48  ;;  %v8448_v59 = vpop.permute.xlu2 %4610 }
 0x498   : > { %v3060_v36 = vadd.f32 0.1, %v3044_v44  ;;  %v8453_v12 = vadd.f32 %v4179_v24, %v8098_v34  ;;  %v4613_v16 = vunpack.i.h.bf16 %v8448_v59  ;;  %4673 = vset.pattern.permute.xlu2 %v9193_v14  ;;  %v9620_v24 = vld [vmem:[#allocation59_spill] sm:$0xff] }
 0x499   : > { %4675 = vperm.xlu2 %4673, %v9193_v14   ;;  %v3473_v62 = vmax.f32 %v3457_v5, 0.0 }
 0x49a   : > { %v3076_v58 = vmax.f32 %v3060_v36, 0.0  ;;  %vm3321_vm1 = vcmp.eq.s32.totalorder %v4613_v16, 1  ;;  %v3262_v16 = vpop.permute.xlu0 %3261 }
 0x49b   : > { %vm3340_vm7 = vmand %vm3321_vm1, %vm8380_vm14 }
 0x49c   : > { %v3092_v29 = vsel %vm2963_vm6, %v3076_v58, 0.0  ;;  %vm3360_vm3 = vmand %vm3340_vm7, %vm8387_vm12  ;;  %v3438_v58 = vsub.f32 %v9620_v24, %v8337_v8 }
 0x49d   : > { %v8459_v17 = vadd.f32 %v3092_v29, %v8103_v57  ;;  %vm3124_vm4 = vcmp.gt.f32.partialorder %v3092_v29, 1e-16  ;;  %v3489_v39 = vsel %vm3360_vm3, %v3473_v62, 0.0 }
 0x49e   : > { %v4170_v50 = vsel %vm3124_vm4, 1.0, %v9239_v48  ;;  %v3265_v46 = vpop.permute.xlu1 %3264  ;;  %v8471_v57 = vadd.f32 %v3489_v39, %v8115_v61  ;;  %vm3521_vm8 = vcmp.gt.f32.partialorder %v3489_v39, 1e-16 }
 0x49f   : > { %v8465_v34 = vadd.f32 %v4170_v50, %v8109_v56  ;;  %3798 = vperm.xlu1 %4672, %v9432_v40   ;;  %v4185_v37 = vsel %vm3521_vm8, 1.0, %v9239_v48  ;;  %vm3309_vm0 = vcmp.eq.s32.totalorder %v3265_v46, 1  ;;  %v4602_v46 = vunpack.i.l.bf16 %v8408_v55 }
 0x4a0   : > { %v8475_v30 = vadd.f32 %v4185_v37, %v8119_v63  ;;  %v3369_v2 = vpop.permute.xlu2 %3368  ;;  %vm3328_vm13 = vmand %vm3309_vm0, %vm8380_vm14  ;;  %v9621_v37 = vld [vmem:[#allocation37_spill] sm:$0xff]  ;;  %vm3308_vm8 = vcmp.eq.s32.totalorder %v3262_v16, 1 }
 0x4a1   : > { %v3429_v56 = vsub.f32 %v3369_v2, %v8337_v8  ;;  %4680 = vperm.xlu2 %4673, %v9193_v14   ;;  %vm3348_vm11 = vmand %vm3328_vm13, %vm8387_vm12  ;;  %v3454_v2 = vadd.f32 0.1, %v3438_v58  ;;  %vm8513_vm6 = vcmp.eq.s32.totalorder %v4602_v46, 1 }
 0x4a2   : > { %vm3333_vm3 = vmand %vm8513_vm6, %vm8380_vm14 }
 0x4a3   : > { %v3445_v40 = vadd.f32 0.1, %v3429_v56  ;;  %vm3353_vm13 = vmand %vm3333_vm3, %vm8387_vm12 }
 0x4a5   : > { %v3461_v35 = vmax.f32 %v3445_v40, 0.0 }
 0x4a6   : > { %v8481_v44 = vpop.permute.xlu1 %4595 }
 0x4a7   : > { %v4597_v61 = vunpack.i.l.bf16 %v8481_v44  ;;  %3806 = vperm.xlu1 %4672, %v9434_v6   ;;  %v3477_v63 = vsel %vm3348_vm11, %v3461_v35, 0.0  ;;  %v3470_v35 = vmax.f32 %v3454_v2, 0.0  ;;  %vm8550_vm11 = vmand %vm3308_vm8, %vm8380_vm14 }
 0x4a8   : > { %v8488_v20 = vadd.f32 %v3477_v63, %v8134_v41  ;;  %vm3509_vm10 = vcmp.gt.f32.partialorder %v3477_v63, 1e-16  ;;  %v3381_v5 = vpop.permute.xlu2 %3380 }
 0x4a9   : > { %vm8490_vm2 = vcmp.eq.s32.totalorder %v4597_v61, 1  ;;  %v4173_v6 = vsel %vm3509_vm10, 1.0, %v9239_v48  ;;  %v3432_v29 = vsub.f32 %v3381_v5, %v8337_v8  ;;  %4685 = vperm.xlu2 %4673, %v9193_v14  }
 0x4aa   : > { %v8500_v62 = vadd.f32 %v4173_v6, %v8144_v28  ;;  %vm3331_vm15 = vmand %vm8490_vm2, %vm8380_vm14 }
 0x4ab   : > { %v3448_v41 = vadd.f32 0.1, %v3432_v29  ;;  %vm3351_vm5 = vmand %vm3331_vm15, %vm8387_vm12 }
 0x4ac   : > { %vm3347_vm15 = vmand %vm8550_vm11, %vm8387_vm12 }
 0x4ad   : > { %v3464_v56 = vmax.f32 %v3448_v41, 0.0 }
 0x4ae   : > { %v8506_v50 = vpop.permute.xlu1 %4605 }
 0x4af   : > { %v4607_v39 = vunpack.i.l.bf16 %v8506_v50  ;;  %3814 = vperm.xlu1 %4672, %v9621_v37   ;;  %v3480_v28 = vsel %vm3351_vm5, %v3464_v56, 0.0  ;;  %v4593_v56 = vunpack.i.h.bf16 %v8369_v27 }
 0x4b0   : > { %v8518_v61 = vadd.f32 %v3480_v28, %v8166_v3  ;;  %vm3512_vm4 = vcmp.gt.f32.partialorder %v3480_v28, 1e-16  ;;  %v3389_v55 = vpop.permute.xlu2 %3388  ;;  %v8530_v3 = vpop.permute.xlu0 %4649 }
 0x4b1   : > { %vm3318_vm9 = vcmp.eq.s32.totalorder %v4607_v39, 1  ;;  %v4176_v63 = vsel %vm3512_vm4, 1.0, %v9239_v48  ;;  %v3434_v36 = vsub.f32 %v3389_v55, %v8337_v8  ;;  %4690 = vperm.xlu2 %4673, %v9193_v14   ;;  %v4652_v6 = vunpack.i.h.bf16 %v8530_v3 }
 0x4b2   : > { %vm3337_vm1 = vmand %vm3318_vm9, %vm8380_vm14  ;;  %v8526_v5 = vadd.f32 %v4176_v63, %v8184_v25  ;;  %vm8576_vm9 = vcmp.eq.s32.totalorder %v4593_v56, 1 }
 0x4b3   : > { %vm3357_vm7 = vmand %vm3337_vm1, %vm8387_vm12  ;;  %v3450_v58 = vadd.f32 0.1, %v3434_v36  ;;  %vm8554_vm10 = vcmp.eq.s32.totalorder %v4652_v6, 1 }
 0x4b4   : > { %v3486_v24 = vsel %vm3357_vm7, %v3470_v35, 0.0  ;;  %vm3336_vm5 = vmand %vm8554_vm10, %vm8380_vm14 }
 0x4b5   : > { %v8538_v29 = vadd.f32 %v3486_v24, %v8193_v10  ;;  %vm3518_vm0 = vcmp.gt.f32.partialorder %v3486_v24, 1e-16  ;;  %v3466_v46 = vmax.f32 %v3450_v58, 0.0  ;;  %v4612_v24 = vunpack.i.l.bf16 %v8448_v59  ;;  %vm3356_vm4 = vmand %vm3336_vm5, %vm8387_vm12 }
 0x4b6   : > { %v4182_v41 = vsel %vm3518_vm0, 1.0, %v9239_v48  ;;  %vm3330_vm1 = vmand %vm8576_vm9, %vm8380_vm14  ;;  %v4598_v10 = vunpack.i.h.bf16 %v8481_v44 }
 0x4b7   : > { %3822 = vperm.xlu1 %4672, %v9584_v4   ;;  %v3365_v25 = vpop.permute.xlu1 %3364  ;;  %v8546_v37 = vadd.f32 %v4182_v41, %v8211_v0  ;;  %v3482_v16 = vsel %vm3353_vm13, %v3466_v46, 0.0  ;;  %vm8595_vm7 = vcmp.eq.s32.totalorder %v4612_v24, 1  ;;  %vm3350_vm8 = vmand %vm3330_vm1, %vm8387_vm12 }
 0x4b8   : > { %v3428_v39 = vsub.f32 %v3365_v25, %v8337_v8  ;;  %v8560_v28 = vadd.f32 %v3482_v16, %v8221_v49  ;;  %vm3514_vm2 = vcmp.gt.f32.partialorder %v3482_v16, 1e-16  ;;  %v3401_v0 = vpop.permute.xlu2 %3400  ;;  %vm3339_vm0 = vmand %vm8595_vm7, %vm8380_vm14  ;;  %vm8617_vm13 = vcmp.eq.s32.totalorder %v4598_v10, 1 }
 0x4b9   : > { %v4178_v40 = vsel %vm3514_vm2, 1.0, %v9239_v48  ;;  %v3437_v35 = vsub.f32 %v3401_v0, %v8337_v8  ;;  %4695 = vperm.xlu2 %4673, %v9193_v14   ;;  %vm3359_vm10 = vmand %vm3339_vm0, %vm8387_vm12  ;;  %vm3640_vm7 = vcmp.ne.s32.totalorder %v9541_v53, %v9576_v1 }
 0x4ba   : > { %v3444_v4 = vadd.f32 0.1, %v3428_v39  ;;  %v8570_v63 = vadd.f32 %v4178_v40, %v8231_v19  ;;  %v8610_v40 = vpop.permute.xlu0 %4654  ;;  %vm3332_vm2 = vmand %vm8617_vm13, %vm8380_vm14  ;;  %vm9638_vm13 = vcmp.lt.s32.totalorder %v9543_v51, 12 }
 0x4bb   : > { %v3453_v27 = vadd.f32 0.1, %v3437_v35  ;;  %vm3352_vm9 = vmand %vm3332_vm2, %vm8387_vm12 }
 0x4bc   : > { %v3460_v55 = vmax.f32 %v3444_v4, 0.0 }
 0x4bd   : > { %v3469_v25 = vmax.f32 %v3453_v27, 0.0 }
 0x4be   : > { %v3476_v49 = vsel %vm3347_vm15, %v3460_v55, 0.0  ;;  %v4657_v55 = vunpack.i.h.bf16 %v8610_v40 }
 0x4bf   : > { %v8582_v58 = vadd.f32 %v3476_v49, %v8242_v18  ;;  %vm3508_vm6 = vcmp.gt.f32.partialorder %v3476_v49, 1e-16  ;;  %v3377_v6 = vpop.permute.xlu1 %3376  ;;  %v3485_v18 = vsel %vm3356_vm4, %v3469_v25, 0.0  ;;  %v4651_v25 = vunpack.i.l.bf16 %v8530_v3 }
 0x4c0   : > { %v4172_v19 = vsel %vm3508_vm6, 1.0, %v9239_v48  ;;  %v3431_v41 = vsub.f32 %v3377_v6, %v8337_v8  ;;  %v8601_v16 = vadd.f32 %v3485_v18, %v8260_v52  ;;  %vm3517_vm3 = vcmp.gt.f32.partialorder %v3485_v18, 1e-16  ;;  %v3413_v4 = vpop.permute.xlu2 %3412 }
 0x4c1   : > { %v8589_v46 = vadd.f32 %v4172_v19, %v8248_v43  ;;  %v4181_v43 = vsel %vm3517_vm3, 1.0, %v9239_v48  ;;  %v3440_v56 = vsub.f32 %v3413_v4, %v8337_v8  ;;  %vm8636_vm15 = vcmp.eq.s32.totalorder %v4657_v55, 1 }
 0x4c2   : > { %v3447_v59 = vadd.f32 0.1, %v3431_v41  ;;  %v8608_v0 = vadd.f32 %v4181_v43, %v8277_v42  ;;  %vm3342_vm6 = vmand %vm8636_vm15, %vm8380_vm14  ;;  %vm8654_vm4 = vcmp.eq.s32.totalorder %v4651_v25, 1 }
 0x4c3   : > { %v3456_v44 = vadd.f32 0.1, %v3440_v56  ;;  %vm3362_vm3 = vmand %vm3342_vm6, %vm8387_vm12 }
 0x4c4   : > { %v3463_v2 = vmax.f32 %v3447_v59, 0.0 }
 0x4c5   : > { %v3472_v36 = vmax.f32 %v3456_v44, 0.0 }
 0x4c6   : > { %v3479_v52 = vsel %vm3350_vm8, %v3463_v2, 0.0  ;;  %vm3335_vm8 = vmand %vm8654_vm4, %vm8380_vm14 }
 0x4c7   : > { %v8622_v49 = vadd.f32 %v3479_v52, %v8288_v15  ;;  %vm3511_vm11 = vcmp.gt.f32.partialorder %v3479_v52, 1e-16  ;;  %v3385_v42 = vpop.permute.xlu1 %3384  ;;  %v3488_v15 = vsel %vm3359_vm10, %v3472_v36, 0.0  ;;  %vm3355_vm10 = vmand %vm3335_vm8, %vm8387_vm12  ;;  %v3660_v36 = vpop.permute.xlu0 %3659 }
 0x4c8   : > { %v4175_v27 = vsel %vm3511_vm11, 1.0, %v9239_v48  ;;  %v3433_v24 = vsub.f32 %v3385_v42, %v8337_v8  ;;  %v8641_v18 = vadd.f32 %v3488_v15, %v8316_v60  ;;  %vm3520_vm5 = vcmp.gt.f32.partialorder %v3488_v15, 1e-16  ;;  %v3425_v59 = vpop.permute.xlu2 %3424  ;;  %vm3641_vm11 = vmand %vm3640_vm7, %vm9638_vm13 }
 0x4c9   : > { %v8629_v6 = vadd.f32 %v4175_v27, %v8303_v45  ;;  %v4184_v45 = vsel %vm3520_vm5, 1.0, %v9239_v48  ;;  %v3443_v10 = vsub.f32 %v3425_v59, %v8337_v8  ;;  %v4608_v42 = vunpack.i.h.bf16 %v8506_v50 }
 0x4ca   : > { %v3449_v19 = vadd.f32 0.1, %v3433_v24  ;;  %v8648_v4 = vadd.f32 %v4184_v45, %v8333_v38  ;;  %v4656_v59 = vunpack.i.l.bf16 %v8610_v40 }
 0x4cb   : > { %v3459_v3 = vadd.f32 0.1, %v3443_v10  ;;  %vm8689_vm2 = vcmp.eq.s32.totalorder %v4608_v42, 1 }
 0x4cc   : > { %v3465_v39 = vmax.f32 %v3449_v19, 0.0  ;;  %v3722_v19 = vsel %vm3641_vm11, 1, %v9193_v14  ;;  %vm3338_vm5 = vmand %vm8689_vm2, %vm8380_vm14  ;;  %vm8712_vm6 = vcmp.eq.s32.totalorder %v4656_v59, 1 }
 0x4cd   : > { %v3475_v38 = vmax.f32 %v3459_v3, 0.0  ;;  %v3723_v45 = vperm.slane %v3722_v19, 0 }
 0x4ce   : > { %v3481_v60 = vsel %vm3352_vm9, %v3465_v39, 0.0  ;;  %v4701_v39 = vld [vmem:[%s5608_s21] sm:$0xff]  ;;  %vm3358_vm9 = vmand %vm3338_vm5, %vm8387_vm12 }
 0x4cf   : > { %v8659_v2 = vadd.f32 %v3481_v60, %v8342_v22  ;;  %vm3513_vm1 = vcmp.gt.f32.partialorder %v3481_v60, 1e-16  ;;  %v3397_v56 = vpop.permute.xlu1 %3396  ;;  %v3491_v22 = vsel %vm3362_vm3, %v3475_v38, 0.0  ;;  %v8708_v10 = vperm.slane %v4701_v39, 7  ;;  %vm3341_vm3 = vmand %vm8712_vm6, %vm8380_vm14 }
 0x4d0   : > { %v4177_v52 = vsel %vm3513_vm1, 1.0, %v9239_v48  ;;  %v3436_v44 = vsub.f32 %v3397_v56, %v8337_v8  ;;  %v8676_v27 = vadd.f32 %v3491_v22, %v8366_v21  ;;  %vm3523_vm0 = vcmp.gt.f32.partialorder %v3491_v22, 1e-16  ;;  %vm3361_vm13 = vmand %vm3341_vm3, %vm8387_vm12 }
 0x4d1   : > { %v8668_v55 = vadd.f32 %v4177_v52, %v8357_v33  ;;  %v4187_v53 = vsel %vm3523_vm0, 1.0, %v9239_v48  ;;  %v8681_v33 = vpop.permute.xlu2 %4661  ;;  %vm8717_vm4 = vcmp.eq.s32.totalorder %v3723_v45, 1  ;;  %vm3706_vm1 = vcmp.eq.s32.totalorder %v3660_v36, 1  ;;  %v3767_v52 = vpop.permute.xlu0 %3766 }
 0x4d2   : > { %v3452_v35 = vadd.f32 0.1, %v3436_v44  ;;  %v8686_v24 = vadd.f32 %v4187_v53, %v8372_v11  ;;  %vm3725_vm0 = vmand %vm3706_vm1, %vm8717_vm4 }
 0x4d4   : > { %v3468_v1 = vmax.f32 %v3452_v35, 0.0 }
 0x4d6   : > { %v3484_v21 = vsel %vm3355_vm10, %v3468_v1, 0.0 }
 0x4d7   : > { %v8694_v51 = vadd.f32 %v3484_v21, %v8385_v9  ;;  %vm3516_vm15 = vcmp.gt.f32.partialorder %v3484_v21, 1e-16  ;;  %v3409_v15 = vpop.permute.xlu1 %3408 }
 0x4d8   : > { %v4180_v25 = vsel %vm3516_vm15, 1.0, %v9239_v48  ;;  %v3439_v41 = vsub.f32 %v3409_v15, %v8337_v8 }
 0x4d9   : > { %v8700_v11 = vadd.f32 %v4180_v25, %v8400_v47  ;;  %v3743_v47 = vstv %s3742_s15 }
 0x4da   : > { %v3455_v9 = vadd.f32 0.1, %v3439_v41  ;;  %v3763_v60 = vpop.permute.xlu2 %3762  ;;  %vm8733_vm8 = vcmp.eq.s32.totalorder %v3743_v47, 1  ;;  %v3787_v47 = vpop.permute.xlu0 %3786 }
 0x4db   : > { %v3826_v43 = vsub.f32 %v3763_v60, %v8708_v10  ;;  %vm3745_vm14 = vmand %vm3725_vm0, %vm8733_vm8 }
 0x4dc   : > { %v3471_v14 = vmax.f32 %v3455_v9, 0.0 }
 0x4dd   : > { %v3842_v35 = vadd.f32 0.1, %v3826_v43 }
 0x4de   : > { %v3487_v40 = vsel %vm3358_vm9, %v3471_v14, 0.0 }
 0x4df   : > { %v8722_v38 = vadd.f32 %v3487_v40, %v8426_v54  ;;  %vm3519_vm7 = vcmp.gt.f32.partialorder %v3487_v40, 1e-16  ;;  %v3421_v44 = vpop.permute.xlu1 %3420  ;;  %v3827_v54 = vsub.f32 %v3767_v52, %v8708_v10  ;;  %v3858_v36 = vmax.f32 %v3842_v35, 0.0 }
 0x4e0   : > { %v4183_v22 = vsel %vm3519_vm7, 1.0, %v9239_v48  ;;  %v3442_v42 = vsub.f32 %v3421_v44, %v8337_v8 }
 0x4e1   : > { %v8731_v53 = vadd.f32 %v4183_v22, %v8435_v23  ;;  %v3843_v23 = vadd.f32 0.1, %v3827_v54  ;;  %v3874_v50 = vsel %vm3745_vm14, %v3858_v36, 0.0 }
 0x4e2   : > { %v3458_v21 = vadd.f32 0.1, %v3442_v42  ;;  %v3775_v7 = vpop.permute.xlu2 %3774  ;;  %vm3906_vm10 = vcmp.gt.f32.partialorder %v3874_v50, 1e-16  ;;  %v3890_v45 = vadd.f32 %v3874_v50, %v8582_v58  ;;  %v3795_v36 = vpop.permute.xlu0 %3794  ;;  %v3832_v50 = vsub.f32 %v3787_v47, %v8708_v10 }
 0x4e3   : > { %v3859_v13 = vmax.f32 %v3843_v23, 0.0  ;;  %v4188_v9 = vsel %vm3906_vm10, 1.0, %v9239_v48  ;;  %v3829_v40 = vsub.f32 %v3775_v7, %v8708_v10 }
 0x4e4   : > { %v3474_v8 = vmax.f32 %v3458_v21, 0.0  ;;  %v3954_v3 = vadd.f32 %v4188_v9, %v8589_v46 }
 0x4e5   : > { %v3845_v58 = vadd.f32 0.1, %v3829_v40 }
 0x4e6   : > { %v3490_v15 = vsel %vm3361_vm13, %v3474_v8, 0.0 }
 0x4e7   : > { %v8745_v19 = vadd.f32 %v3490_v15, %v8459_v17  ;;  %vm3522_vm11 = vcmp.gt.f32.partialorder %v3490_v15, 1e-16  ;;  %v3861_v54 = vmax.f32 %v3845_v58, 0.0 }
 0x4e8   : > { %v4186_v25 = vsel %vm3522_vm11, 1.0, %v9239_v48  ;;  %v3663_v41 = vpop.permute.xlu1 %3662 }
 0x4e9   : > { %v8749_v59 = vadd.f32 %v4186_v25, %v8465_v34  ;;  %vm3707_vm12 = vcmp.eq.s32.totalorder %v3663_v41, 1  ;;  %v4664_v34 = vunpack.i.h.bf16 %v8681_v33 }
 0x4ea   : > { %vm3726_vm2 = vmand %vm3707_vm12, %vm8717_vm4  ;;  %v3783_v14 = vpop.permute.xlu2 %3782 }
 0x4eb   : > { %vm3746_vm15 = vmand %vm3726_vm2, %vm8733_vm8  ;;  %vm3709_vm9 = vcmp.eq.s32.totalorder %v4664_v34, 1 }
 0x4ec   : > { %v3875_v17 = vsel %vm3746_vm15, %v3859_v13, 0.0  ;;  %vm3728_vm6 = vmand %vm3709_vm9, %vm8717_vm4 }
 0x4ed   : > { %v3891_v39 = vadd.f32 %v3875_v17, %v8488_v20  ;;  %vm3907_vm5 = vcmp.gt.f32.partialorder %v3875_v17, 1e-16  ;;  %v4663_v20 = vunpack.i.l.bf16 %v8681_v33  ;;  %vm3748_vm1 = vmand %vm3728_vm6, %vm8733_vm8 }
 0x4ee   : > { %v4189_v60 = vsel %vm3907_vm5, 1.0, %v9239_v48  ;;  %v3877_v23 = vsel %vm3748_vm1, %v3861_v54, 0.0 }
 0x4ef   : > { %v3955_v43 = vadd.f32 %v4189_v60, %v8500_v62  ;;  %v3970_v52 = vadd.f32 %v3891_v39, %v3890_v45  ;;  %vm8768_vm7 = vcmp.eq.s32.totalorder %v4663_v20, 1  ;;  %v3831_v62 = vsub.f32 %v3783_v14, %v8708_v10 }
 0x4f0   : > { %v4667_v44 = vpop.permute.xlu1 %4666  ;;  %vm3727_vm0 = vmand %vm8768_vm7, %vm8717_vm4  ;;  %vm3909_vm10 = vcmp.gt.f32.partialorder %v3877_v23, 1e-16  ;;  %v3848_v39 = vadd.f32 0.1, %v3832_v50  ;;  %v3893_v54 = vadd.f32 %v3877_v23, %v8622_v49 }
 0x4f1   : > { %v3995_v22 = vadd.f32 %v3955_v43, %v3954_v3  ;;  %v4669_v35 = vunpack.i.h.bf16 %v4667_v44  ;;  %v3847_v15 = vadd.f32 0.1, %v3831_v62  ;;  %v4668_v41 = vunpack.i.l.bf16 %v4667_v44  ;;  %vm3747_vm11 = vmand %vm3727_vm0, %vm8733_vm8 }
 0x4f2   : > { %v4191_v60 = vsel %vm3909_vm10, 1.0, %v9239_v48  ;;  %v3834_v43 = vsub.f32 %v3795_v36, %v8708_v10  ;;  %v3864_v21 = vmax.f32 %v3848_v39, 0.0 }
 0x4f3   : > { %v4676_v42 = vpop.permute.xlu2 %4675  ;;  %vm8773_vm3 = vcmp.eq.s32.totalorder %v4669_v35, 1  ;;  %v3863_v14 = vmax.f32 %v3847_v15, 0.0  ;;  %vm8803_vm15 = vcmp.eq.s32.totalorder %v4668_v41, 1  ;;  %v3803_v35 = vpop.permute.xlu0 %3802  ;;  %v3957_v36 = vadd.f32 %v4191_v60, %v8629_v6 }
 0x4f4   : > { %v4677_v33 = vunpack.i.l.bf16 %v4676_v42  ;;  %vm3730_vm13 = vmand %vm8773_vm3, %vm8717_vm4  ;;  %v4678_v49 = vunpack.i.h.bf16 %v4676_v42  ;;  %v3850_v23 = vadd.f32 0.1, %v3834_v43 }
 0x4f5   : > { %vm3750_vm12 = vmand %vm3730_vm13, %vm8733_vm8 }
 0x4f6   : > { %vm8787_vm14 = vcmp.eq.s32.totalorder %v4677_v33, 1  ;;  %v3879_v44 = vsel %vm3750_vm12, %v3863_v14, 0.0  ;;  %vm3729_vm1 = vmand %vm8803_vm15, %vm8717_vm4  ;;  %vm8834_vm13 = vcmp.eq.s32.totalorder %v4678_v49, 1 }
 0x4f7   : > { %vm3731_vm2 = vmand %vm8787_vm14, %vm8717_vm4  ;;  %vm3911_vm7 = vcmp.gt.f32.partialorder %v3879_v44, 1e-16 }
 0x4f8   : > { %vm3751_vm9 = vmand %vm3731_vm2, %vm8733_vm8  ;;  %v4193_v15 = vsel %vm3911_vm7, 1.0, %v9239_v48 }
 0x4f9   : > { %v3771_v8 = vpop.permute.xlu1 %3770  ;;  %vm3749_vm0 = vmand %vm3729_vm1, %vm8733_vm8 }
 0x4fa   : > { %v3828_v7 = vsub.f32 %v3771_v8, %v8708_v10  ;;  %vm3732_vm2 = vmand %vm8834_vm13, %vm8717_vm4 }
 0x4fb   : > { %v8793_v17 = vpop.permute.xlu2 %4680 }
 0x4fc   : > { %v3844_v25 = vadd.f32 0.1, %v3828_v7  ;;  %v4682_v45 = vunpack.i.l.bf16 %v8793_v17 }
 0x4fe   : > { %v3860_v9 = vmax.f32 %v3844_v25, 0.0  ;;  %vm8815_vm6 = vcmp.eq.s32.totalorder %v4682_v45, 1  ;;  %v3836_v45 = vsub.f32 %v3803_v35, %v8708_v10 }
 0x4ff   : > { %vm3733_vm3 = vmand %vm8815_vm6, %vm8717_vm4 }
 0x500   : > { %v3876_v34 = vsel %vm3747_vm11, %v3860_v9, 0.0  ;;  %vm3753_vm11 = vmand %vm3733_vm3, %vm8733_vm8  ;;  %v3866_v9 = vmax.f32 %v3850_v23, 0.0 }
 0x501   : > { %v3892_v3 = vadd.f32 %v3876_v34, %v8413_v26  ;;  %vm3908_vm5 = vcmp.gt.f32.partialorder %v3876_v34, 1e-16  ;;  %v3779_v40 = vpop.permute.xlu1 %3778  ;;  %v3895_v34 = vadd.f32 %v3879_v44, %v8659_v2  ;;  %v3811_v2 = vpop.permute.xlu0 %3810  ;;  %v4683_v44 = vunpack.i.h.bf16 %v8793_v17 }
 0x502   : > { %v4190_v58 = vsel %vm3908_vm5, 1.0, %v9239_v48  ;;  %v3830_v20 = vsub.f32 %v3779_v40, %v8708_v10  ;;  %v3882_v43 = vsel %vm3753_vm11, %v3866_v9, 0.0  ;;  %vm3752_vm5 = vmand %vm3732_vm2, %vm8733_vm8  ;;  %v3838_v17 = vsub.f32 %v3811_v2, %v8708_v10 }
 0x503   : > { %v3956_v46 = vadd.f32 %v4190_v58, %v8423_v32  ;;  %v3971_v62 = vadd.f32 %v3970_v52, %v3892_v3  ;;  %v3880_v32 = vsel %vm3751_vm9, %v3864_v21, 0.0  ;;  %v8828_v50 = vpop.permute.xlu2 %4685  ;;  %vm3914_vm9 = vcmp.gt.f32.partialorder %v3882_v43, 1e-16 }
 0x504   : > { %v3846_v33 = vadd.f32 0.1, %v3830_v20  ;;  %vm3912_vm14 = vcmp.gt.f32.partialorder %v3880_v32, 1e-16  ;;  %vm8870_vm6 = vcmp.eq.s32.totalorder %v4683_v44, 1 }
 0x505   : > { %v3996_v8 = vadd.f32 %v3995_v22, %v3956_v46  ;;  %v3972_v7 = vadd.f32 %v3971_v62, %v3893_v54  ;;  %v4687_v22 = vunpack.i.l.bf16 %v8828_v50  ;;  %v4194_v40 = vsel %vm3912_vm14, 1.0, %v9239_v48 }
 0x506   : > { %v3862_v52 = vmax.f32 %v3846_v33, 0.0  ;;  %v3852_v54 = vadd.f32 0.1, %v3836_v45  ;;  %v3960_v62 = vadd.f32 %v4194_v40, %v8570_v63 }
 0x507   : > { %v3997_v6 = vadd.f32 %v3996_v8, %v3957_v36  ;;  %vm8846_vm12 = vcmp.eq.s32.totalorder %v4687_v22, 1 }
 0x508   : > { %v3878_v25 = vsel %vm3749_vm0, %v3862_v52, 0.0  ;;  %vm3735_vm15 = vmand %vm8846_vm12, %vm8717_vm4  ;;  %v3868_v23 = vmax.f32 %v3852_v54, 0.0 }
 0x509   : > { %v3894_v41 = vadd.f32 %v3878_v25, %v8518_v61  ;;  %vm3910_vm10 = vcmp.gt.f32.partialorder %v3878_v25, 1e-16  ;;  %v3791_v13 = vpop.permute.xlu1 %3790  ;;  %v3959_v61 = vadd.f32 %v4193_v15, %v8668_v55  ;;  %vm8876_vm1 = vmand %vm3735_vm15, %vm8733_vm8  ;;  %v3898_v15 = vadd.f32 %v3882_v43, %v8694_v51 }
 0x50a   : > { %v4192_v39 = vsel %vm3910_vm10, 1.0, %v9239_v48  ;;  %v3833_v14 = vsub.f32 %v3791_v13, %v8708_v10  ;;  %vm3734_vm0 = vmand %vm8870_vm6, %vm8717_vm4  ;;  %v4688_v51 = vunpack.i.h.bf16 %v8828_v50 }
 0x50b   : > { %v3958_v60 = vadd.f32 %v4192_v39, %v8526_v5  ;;  %v3973_v47 = vadd.f32 %v3972_v7, %v3894_v41  ;;  %v3896_v5 = vadd.f32 %v3880_v32, %v8560_v28  ;;  %v8863_v46 = vpop.permute.xlu2 %4690  ;;  %v4196_v32 = vsel %vm3914_vm9, 1.0, %v9239_v48  ;;  %vm3754_vm14 = vmand %vm3734_vm0, %vm8733_vm8 }
 0x50c   : > { %v3849_v58 = vadd.f32 0.1, %v3833_v14  ;;  %v4692_v36 = vunpack.i.l.bf16 %v8863_v46  ;;  %v3884_v41 = vsel %vm8876_vm1, %v3868_v23, 0.0  ;;  %v3962_v9 = vadd.f32 %v4196_v32, %v8700_v11 }
 0x50d   : > { %v3974_v20 = vadd.f32 %v3973_v47, %v3895_v34  ;;  %v3998_v35 = vadd.f32 %v3997_v6, %v3958_v60  ;;  %v3819_v34 = vpop.permute.xlu0 %3818  ;;  %vm3916_vm11 = vcmp.gt.f32.partialorder %v3884_v41, 1e-16  ;;  %vm8904_vm10 = vcmp.eq.s32.totalorder %v4688_v51, 1 }
 0x50e   : > { %v3865_v55 = vmax.f32 %v3849_v58, 0.0  ;;  %vm8886_vm3 = vcmp.eq.s32.totalorder %v4692_v36, 1  ;;  %v3840_v43 = vsub.f32 %v3819_v34, %v8708_v10  ;;  %v4198_v58 = vsel %vm3916_vm11, 1.0, %v9239_v48 }
 0x50f   : > { %v3999_v28 = vadd.f32 %v3998_v35, %v3959_v61  ;;  %v3975_v26 = vadd.f32 %v3974_v20, %v3896_v5  ;;  %vm3737_vm13 = vmand %vm8886_vm3, %vm8717_vm4  ;;  %v3900_v44 = vadd.f32 %v3884_v41, %v8538_v29 }
 0x510   : > { %v3881_v21 = vsel %vm3752_vm5, %v3865_v55, 0.0  ;;  %vm3757_vm12 = vmand %vm3737_vm13, %vm8733_vm8 }
 0x511   : > { %v3897_v63 = vadd.f32 %v3881_v21, %v8445_v31  ;;  %vm3913_vm7 = vcmp.gt.f32.partialorder %v3881_v21, 1e-16  ;;  %v4000_v8 = vadd.f32 %v3999_v28, %v3960_v62  ;;  %v3799_v7 = vpop.permute.xlu1 %3798  ;;  %v3854_v31 = vadd.f32 0.1, %v3838_v17  ;;  %vm3736_vm5 = vmand %vm8904_vm10, %vm8717_vm4 }
 0x512   : > { %v4195_v52 = vsel %vm3913_vm7, 1.0, %v9239_v48  ;;  %v3835_v6 = vsub.f32 %v3799_v7, %v8708_v10  ;;  %v3964_v62 = vadd.f32 %v4198_v58, %v8546_v37  ;;  %v4693_v28 = vunpack.i.h.bf16 %v8863_v46  ;;  %vm3756_vm6 = vmand %vm3736_vm5, %vm8733_vm8 }
 0x513   : > { %v3961_v25 = vadd.f32 %v4195_v52, %v8453_v12  ;;  %v3976_v22 = vadd.f32 %v3975_v26, %v3897_v63  ;;  %v4696_v14 = vpop.permute.xlu2 %4695  ;;  %v3870_v11 = vmax.f32 %v3854_v31, 0.0  ;;  %v3856_v17 = vadd.f32 0.1, %v3840_v43 }
 0x514   : > { %v3851_v13 = vadd.f32 0.1, %v3835_v6  ;;  %v4697_v47 = vunpack.i.l.bf16 %v4696_v14  ;;  %vm8933_vm7 = vcmp.eq.s32.totalorder %v4693_v28, 1 }
 0x515   : > { %v4001_v12 = vadd.f32 %v4000_v8, %v3961_v25  ;;  %v3977_v45 = vadd.f32 %v3976_v22, %v3898_v15  ;;  %v3872_v49 = vmax.f32 %v3856_v17, 0.0  ;;  %vm3738_vm13 = vmand %vm8933_vm7, %vm8717_vm4  ;;  %v4698_v25 = vunpack.i.h.bf16 %v4696_v14 }
 0x516   : > { %v3867_v39 = vmax.f32 %v3851_v13, 0.0  ;;  %vm8917_vm15 = vcmp.eq.s32.totalorder %v4697_v47, 1 }
 0x517   : > { %v4002_v60 = vadd.f32 %v4001_v12, %v3962_v9  ;;  %vm3739_vm9 = vmand %vm8917_vm15, %vm8717_vm4  ;;  %vm8952_vm10 = vcmp.eq.s32.totalorder %v4698_v25, 1 }
 0x518   : > { %v3883_v3 = vsel %vm3754_vm14, %v3867_v39, 0.0  ;;  %vm3759_vm3 = vmand %vm3739_vm9, %vm8733_vm8 }
 0x519   : > { %v3899_v61 = vadd.f32 %v3883_v3, %v8601_v16  ;;  %vm3915_vm2 = vcmp.gt.f32.partialorder %v3883_v3, 1e-16  ;;  %v3807_v40 = vpop.permute.xlu1 %3806  ;;  %v3886_v16 = vsel %vm3757_vm12, %v3870_v11, 0.0  ;;  %vm3758_vm14 = vmand %vm3738_vm13, %vm8733_vm8 }
 0x51a   : > { %v4197_v2 = vsel %vm3915_vm2, 1.0, %v9239_v48  ;;  %v3837_v5 = vsub.f32 %v3807_v40, %v8708_v10  ;;  %vm3918_vm1 = vcmp.gt.f32.partialorder %v3886_v16, 1e-16  ;;  %v3902_v23 = vadd.f32 %v3886_v16, %v8641_v18  ;;  %vm3740_vm2 = vmand %vm8952_vm10, %vm8717_vm4  ;;  %v4020_v16 = vld [vmem:[#allocation8] sm:$0x1] (%p729_p8) }
 0x51b   : > { %v3963_v20 = vadd.f32 %v4197_v2, %v8608_v0  ;;  %v3978_v35 = vadd.f32 %v3977_v45, %v3899_v61  ;;  %v4200_v63 = vsel %vm3918_vm1, 1.0, %v9239_v48  ;;  %vm3760_vm15 = vmand %vm3740_vm2, %vm8733_vm8  ;;  %vm9677_vm4 = vcmask (%p729_p8), 0  }
 0x51c   : > { %v3853_v55 = vadd.f32 0.1, %v3837_v5  ;;  %v3966_v15 = vadd.f32 %v4200_v63, %v8648_v4  ;;  %vm9678_vm8 = vmmov (%p729_p8), %vm9677_vm4 }
 0x51d   : > { %v4003_v26 = vadd.f32 %v4002_v60, %v3963_v20  ;;  %v3979_v29 = vadd.f32 %v3978_v35, %v3900_v44 }
 0x51e   : > { %v3869_v0 = vmax.f32 %v3853_v55, 0.0 }
 0x51f   : > { %v4004_v21 = vadd.f32 %v4003_v26, %v3964_v62  ;;  %v4025_v62 = vld [vmem:[#allocation9] sm:$0x1] (%p729_p8) }
 0x520   : > { %v3885_v36 = vsel %vm3756_vm6, %v3869_v0, 0.0 }
 0x521   : > { %v3901_v37 = vadd.f32 %v3885_v36, %v8722_v38  ;;  %vm3917_vm0 = vcmp.gt.f32.partialorder %v3885_v36, 1e-16  ;;  %v3815_v46 = vpop.permute.xlu1 %3814  ;;  %v3888_v38 = vsel %vm3759_vm3, %v3872_v49, 0.0 }
 0x522   : > { %v4199_v8 = vsel %vm3917_vm0, 1.0, %v9239_v48  ;;  %v3839_v7 = vsub.f32 %v3815_v46, %v8708_v10  ;;  %vm3920_vm11 = vcmp.gt.f32.partialorder %v3888_v38, 1e-16  ;;  %v3904_v45 = vadd.f32 %v3888_v38, %v8745_v19 }
 0x523   : > { %v3965_v32 = vadd.f32 %v4199_v8, %v8731_v53  ;;  %v3980_v52 = vadd.f32 %v3979_v29, %v3901_v37  ;;  %v4202_v4 = vsel %vm3920_vm11, 1.0, %v9239_v48 }
 0x524   : > { %v3855_v6 = vadd.f32 0.1, %v3839_v7 }
 0x525   : > { %v4005_v22 = vadd.f32 %v4004_v21, %v3965_v32  ;;  %v3981_v42 = vadd.f32 %v3980_v52, %v3902_v23 }
 0x526   : > { %v3871_v31 = vmax.f32 %v3855_v6, 0.0 }
 0x527   : > { %v4006_v18 = vadd.f32 %v4005_v22, %v3966_v15 }
 0x528   : > { %v3887_v53 = vsel %vm3758_vm14, %v3871_v31, 0.0 }
 0x529   : > { %v3903_v13 = vadd.f32 %v3887_v53, %v8471_v57  ;;  %vm3919_vm12 = vcmp.gt.f32.partialorder %v3887_v53, 1e-16  ;;  %v3823_v9 = vpop.permute.xlu1 %3822  ;;  %v3968_v57 = vadd.f32 %v4202_v4, %v8749_v59 }
 0x52a   : > { %v4201_v51 = vsel %vm3919_vm12, 1.0, %v9239_v48  ;;  %v3841_v12 = vsub.f32 %v3823_v9, %v8708_v10 }
 0x52b   : > { %v3967_v39 = vadd.f32 %v4201_v51, %v8475_v30  ;;  %v3982_v14 = vadd.f32 %v3981_v42, %v3903_v13 }
 0x52c   : > { %v3857_v34 = vadd.f32 0.1, %v3841_v12 }
 0x52d   : > { %v3983_v60 = vadd.f32 %v3982_v14, %v3904_v45  ;;  %v4007_v47 = vadd.f32 %v4006_v18, %v3967_v39 }
 0x52e   : > { %v3873_v3 = vmax.f32 %v3857_v34, 0.0 }
 0x52f   : > { %v4008_v10 = vadd.f32 %v4007_v47, %v3968_v57 }
 0x530   : > { %v3889_v11 = vsel %vm3760_vm15, %v3873_v3, 0.0 }
 0x531   : > { %v3905_v19 = vadd.f32 %v3889_v11, %v8676_v27  ;;  %vm3921_vm5 = vcmp.gt.f32.partialorder %v3889_v11, 1e-16 }
 0x532   : > { %v4203_v30 = vsel %vm3921_vm5, 1.0, %v9239_v48 }
 0x533   : > { %v3984_v56 = vadd.f32 %v3983_v60, %v3905_v19  ;;  %v3969_v50 = vadd.f32 %v4203_v30, %v8686_v24 }
 0x535   : > { %3985 = vadd.xlane.f32.xlu0 %v3984_v56  ;;  %v4009_v61 = vadd.f32 %v4008_v10, %v3969_v50 }
 0x537   : > { %4010 = vadd.xlane.f32.xlu1 %v4009_v61 }
 0x5a8   : > { %v3986_v59 = vpop.xlane.xlu0 %3985 }
 0x5a9   : > { %v3987_v40 = vrot.slane %v3986_v59, 4 }
 0x5aa   : > { %v4011_v43 = vpop.xlane.xlu1 %4010 }
 0x5ab   : > { %v3988_v58 = vadd.f32 %v3987_v40, %v3986_v59  ;;  %v4012_v1 = vrot.slane %v4011_v43, 4 }
 0x5ad   : > { %v3989_v2 = vrot.slane %v3988_v58, 2  ;;  %v4013_v5 = vadd.f32 %v4012_v1, %v4011_v43 }
 0x5af   : > { %v4014_v44 = vrot.slane %v4013_v5, 2  ;;  %v3990_v27 = vadd.f32 %v3989_v2, %v3988_v58 }
 0x5b1   : > { %v4015_v20 = vadd.f32 %v4014_v44, %v4013_v5  ;;  %v3991_v35 = vrot.slane %v3990_v27, 1 }
 0x5b3   : > { %v3992_v48 = vadd.f32 %v3991_v35, %v3990_v27  ;;  %v4016_v54 = vrot.slane %v4015_v20, 1 }
 0x5b5   : > { %4252 = vpush %v3992_v48  ;;  %v4017_v24 = vadd.f32 %v4016_v54, %v4015_v20 }
 0x5b7   : > { %4254 = vpush %v4017_v24 }
 0x5e6   : > { %s4253_s16 = spop %4252 }
 0x5e7   : > { %s3994_s19 = sadd.f32 %s4812_s17, %s4253_s16   ;;  %731 = sbr.rel (!%p729_p8) target bundleno = 426 (0x1aa), region = 56 }
 0x5e8   : > { %s4255_s20 = spop %4254 }
 0x5e9   : > { %s4019_s21 = sadd.f32 %s4808_s1, %s4255_s20   ;;  %s9676_s17 = smov %s3994_s19  ;;  %v4021_v55 = vstv (%p729_p8), %s3994_s19 }
 0x5ea   :  { %v4022_v26 = vadd.f32 (%p729_p8), %v4021_v55, %v4020_v16 }
 0x5eb   : > { %s9675_s1 = smov %s4019_s21  ;;  %v4026_v28 = vstv (%p729_p8), %s4019_s21 }
 0x5ec   :  { %v4027_v29 = vadd.f32 %v4026_v28, %v4025_v62  ;;  %4024 = vst.msk [vmem:[#allocation8] sm:$0x1] %vm9677_vm4, %v4022_v26  ;;  %s4047_s1 = sshll.u32 %s8994_s5, 4  ;;  %s4048_s1 = int_to_ptr.hbm [resolvable:$true] %s4047_s1 }
 0x5ed   :  { %4039 = dma.vmem_to_hbm [thread:$0]  %s4035_s26, 16, %s4037_s24, [#allocation7]  }
 0x5ee   :  { %4028 = vst.msk [vmem:[#allocation9] sm:$0x1] %vm9678_vm8, %v4027_v29 }
 0x5ef   :  { %4050 = dma.vmem_to_hbm [thread:$0]  %s4046_s27, 16, %s4048_s1, [#allocation10]  }
 0x5f0   :  { %4802 = dma.done.wait [#allocation7], 16  }
 0x5f1   :  { %4803 = vsyncadd [#allocation7], 4294967280 }
 0x5f2   :  { %4804 = dma.done.wait [#allocation10], 16  }
 0x5f3   :  { %4805 = vsyncadd [#allocation10], 4294967280 }
 0x5f4   :  { %4059 = vsyncpa [#allocation6], 1 }
 0x5f5   :  { %4060 = vsyncpa [#allocation7], 1 }
 0x5f6   :  { %4061 = vsyncpa [#allocation10], 1 }

</bundles_post_ra>
